<compile_context>
chip_gen: v7x
topology: tpu7x:2x2x1
jax: 0.10.0
libtpu: 0.0.40
codegen_flags: <defaults>
</compile_context>

<pallas_src>
import functools
import math

import jax
import jax.numpy as jnp
from jax import lax
from jax.experimental import pallas as pl
from jax.experimental.pallas import tpu as pltpu

LANE = 128
LRELU_SLOPE = 0.01          # PyTorch F.leaky_relu default
LINEAR1 = 512               # module: linear_size1
LINEAR2 = 128               # module: linear_size2 (== LANE)


def _lrelu(v):
    return jnp.where(v >= 0.0, v, LRELU_SLOPE * v)


def _rup(n, m):
    return ((n + m - 1) // m) * m


def _vmem_capacity_bytes():
    try:
        return int(pltpu.get_tpu_info().vmem_capacity_bytes)
    except Exception:
        return 64 << 20          # v7x per-TC capacity: safe lower bound


# ------------------------------------------------------------------- kernel --

def _decoder_kernel(xrep_ref, wcol_ref, a_ref, gmat_ref, wl2_ref, wl3_ref,
                    consts_ref, out_ref, acc_ref, st_ref, *, resident_a):
    l = pl.program_id(0)            # GCN layer 0..2 (chained -> sequential)
    i = pl.program_id(1)            # row tile of A / of the output
    k = pl.program_id(2)            # contraction tile of A
    nk = pl.num_programs(2)
    tm = acc_ref.shape[0]
    tk = xrep_ref.shape[0]
    row0 = pl.multiple_of(i * tm, tm)
    col0 = pl.multiple_of(k * tk, tk)

    # ---- stage 1 (inv_transform + leaky_relu): computed once per node, on the
    # first row tile of layer 0, and stored into the persistent chain scratch
    # (also zero-initializes every other lane of st so later reads are defined).
    @pl.when(jnp.logical_and(l == 0, i == 0))
    def _():
        prod = xrep_ref[...] * wcol_ref[...]
        h = _lrelu(jnp.sum(prod, axis=1, keepdims=True))            # (tk, 1)
        lane = lax.broadcasted_iota(jnp.int32, (tk, LANE), 1)
        st_ref[pl.ds(col0, tk), :] = jnp.where(
            lane == 0, h, jnp.where(lane == 1, 1.0, 0.0))

    # ---- A pass: acc += A[i, k] @ st[k]  (RHS read straight from scratch) ----
    @pl.when(k == 0)
    def _():
        acc_ref[...] = jnp.zeros_like(acc_ref)

    if resident_a:
        a_blk = a_ref[pl.ds(row0, tm), pl.ds(col0, tk)]
    else:
        a_blk = a_ref[...]
    rhs = st_ref[pl.ds(col0, tk), :].astype(a_blk.dtype)
    acc_ref[...] += jnp.dot(a_blk, rhs, preferred_element_type=jnp.float32)

    last_k = k == nk - 1

    # ---- chain the layer state forward (blend-write only the new lanes) ----
    @pl.when(jnp.logical_and(last_k, l == 0))
    def _():
        acc = acc_ref[...]
        lane = lax.broadcasted_iota(jnp.int32, (tm, LANE), 1)
        rows = st_ref[pl.ds(row0, tm), :]
        st_ref[pl.ds(row0, tm), :] = jnp.where(
            lane == 2, acc[:, 0:1], jnp.where(lane == 3, 1.0, rows))

    @pl.when(jnp.logical_and(last_k, l == 1))
    def _():
        acc = acc_ref[...]
        lane = lax.broadcasted_iota(jnp.int32, (tm, LANE), 1)
        rows = st_ref[pl.ds(row0, tm), :]
        st_ref[pl.ds(row0, tm), :] = jnp.where(
            lane == 4, acc[:, 2:3],
            jnp.where(lane == 5, acc[:, 3:4],
                      jnp.where(lane == 6, 1.0, rows)))

    # ---- epilogue: folded conv1..3 + linear1 (one small matmul), linear2,
    # linear3, each fused with its leaky_relu.  All three run on the MXU.
    @pl.when(jnp.logical_and(last_k, l == 2))
    def _():
        acc = acc_ref[...]                       # lanes 4,5,6 = [A^3 h, A^2 1, A 1]
        consts = consts_ref[...]
        gmat = gmat_ref[...]
        z1 = jnp.dot(acc.astype(gmat.dtype), gmat,
                     preferred_element_type=jnp.float32)
        z1 = _lrelu(z1 + consts[0:1, :])                       # + folded bl1
        wl2 = wl2_ref[...]
        z2 = jnp.dot(z1.astype(wl2.dtype), wl2,
                     preferred_element_type=jnp.float32)
        z2 = _lrelu(z2 + consts[1:2, :LINEAR2])                # + bl2
        wl3 = wl3_ref[...]
        z3 = jnp.dot(z2.astype(wl3.dtype), wl3,
                     preferred_element_type=jnp.float32)
        out_ref[...] = _lrelu(z3 + consts[2:3, :LANE])         # + bl3 (padded)


# ------------------------------------------------------------- pallas_call ---

def _decoder_pallas_call(xrep, wcol, a, gmat, wl2, wl3, consts, *,
                         tm, tk, n_pad, resident_a):
    n_i = n_pad // tm
    n_k = n_pad // tk
    grid = (3, n_i, n_k)

    def stage1_map(l, i, k):
        # xrep/wcol are only needed while stage 1 runs (layer 0, first row
        # tile); pin them afterwards so the pipeline stops re-fetching.
        return (jnp.where(jnp.logical_and(l == 0, i == 0), k, 0), 0)

    def out_map(l, i, k):
        # keep the output block resident until layer 2 actually writes it.
        return (jnp.where(l == 2, i, 0), 0)

    def const_map(l, i, k):
        return (0, 0)

    if resident_a:
        a_spec = pl.BlockSpec((n_pad, n_pad), const_map)   # fetched once, reused 3x
    else:
        a_spec = pl.BlockSpec((tm, tk), lambda l, i, k: (i, k))

    in_specs = [
        pl.BlockSpec((tk, LANE), stage1_map),     # xrep (per-node x + ones lane)
        pl.BlockSpec((tk, LANE), stage1_map),     # wcol (per-node stage-1 weights)
        a_spec,                                   # A_norm
        pl.BlockSpec(gmat.shape, const_map),      # (128, 512) folded GCN + linear1
        pl.BlockSpec(wl2.shape, const_map),       # (512, 128)
        pl.BlockSpec(wl3.shape, const_map),       # (128, 128) lane-padded
        pl.BlockSpec(consts.shape, const_map),    # (8, 512)  [g4 ; bl2 ; bl3]
    ]
    scratch = [
        pltpu.VMEM((tm, LANE), jnp.float32),      # acc
        pltpu.VMEM((n_pad, LANE), jnp.float32),   # merged chain state
    ]

    a_bytes = jnp.dtype(a.dtype).itemsize
    w_bytes = jnp.dtype(wl2.dtype).itemsize
    a_vmem = (2 * n_pad * n_pad if resident_a else 2 * tm * tk) * a_bytes
    vmem_bytes = (
        a_vmem
        + 2 * (2 * tk + tm) * LANE * 4                          # xrep/wcol/out bufs
        + 2 * ((gmat.size + wl2.size + wl3.size) * w_bytes + consts.size * 4)
        + (tm + n_pad) * LANE * 4                               # acc + chain state
        + 4 * tm * LINEAR1 * 4                                  # epilogue temporaries
        + (16 << 20)                                            # compiler headroom
    )
    vmem_bytes = min(int(vmem_bytes), int(0.92 * _vmem_capacity_bytes()))

    return pl.pallas_call(
        functools.partial(_decoder_kernel, resident_a=resident_a),
        out_shape=jax.ShapeDtypeStruct((n_pad, LANE), jnp.float32),
        grid_spec=pltpu.PrefetchScalarGridSpec(
            num_scalar_prefetch=0,
            grid=grid,
            in_specs=in_specs,
            out_specs=pl.BlockSpec((tm, LANE), out_map),
            scratch_shapes=scratch,
        ),
        compiler_params=pltpu.CompilerParams(
            # The layer chain flows through per-core VMEM scratch, so every
            # axis must stay sequential on one TensorCore.
            # TODO(synk): stage the chain state through HBM/VMEM_SHARED so the
            # row axis can be "parallel" and shard across v7x's two TensorCores.
            dimension_semantics=("arbitrary", "arbitrary", "arbitrary"),
            vmem_limit_bytes=vmem_bytes,
        ),
    )(xrep, wcol, a, gmat, wl2, wl3, consts)


# -------------------------------------------------------------------- glue ---

def gcn_norm_dense(edge_index, num_nodes, *, n_pad=None, dtype=jnp.float32):
    """Dense D^{-1/2}(A+I)D^{-1/2} like PyG gcn_norm (edge_index[0]=src),
    built directly at padded size and in the matmul dtype."""
    if n_pad is None:
        n_pad = num_nodes
    src, dst = edge_index[0], edge_index[1]
    a = jnp.zeros((n_pad, n_pad), jnp.float32)
    a = a.at[dst, src].add(1.0)
    diag = jnp.arange(num_nodes, dtype=jnp.int32)
    a = a.at[diag, diag].add(1.0)                  # add_self_loops (real nodes)
    deg = a.sum(axis=1)
    dinv = jnp.where(deg > 0, lax.rsqrt(deg), 0.0)
    return (dinv[:, None] * a * dinv[None, :]).astype(dtype)
    # TODO(synk): for large graphs replace this dense O(N^2) path with an
    # edge/block-sparse SpMM driven by scalar-prefetched index tables.


def prepare_params(params, *, in_channels, out_channels, n_mols, n_nodes,
                   tm, tk, mm_dtype=jnp.bfloat16):
    """Pre-pad / pre-fold all parameters once.  bf16 is the default matmul
    dtype on every TPU generation (the kernel is HBM-bound on streaming A);
    pass mm_dtype=jnp.float32 for bit-accurate decoding."""
    assert in_channels + 1 <= LANE
    assert out_channels <= LANE
    assert params["bl2"].shape[0] == LINEAR2 and params["wl3"].shape[0] == LINEAR2
    assert n_nodes % n_mols == 0
    n0 = n_nodes // n_mols
    n_pad = _rup(n_nodes, math.lcm(tm, tk))

    # stage-1 (inv_transform) as per-node rows: node r uses column r % n_mols of
    # W_inv; the bias sits on lane `in_channels` (matched by xrep's ones lane).
    base = jnp.concatenate([params["w_inv"].T, params["b_inv"][:, None]], axis=1)
    wcol = jnp.tile(base, (n0, 1)).astype(jnp.float32)            # (n_nodes, in_c+1)
    wcol = jnp.pad(wcol, ((0, n_pad - n_nodes), (0, LANE - (in_channels + 1))))

    # fold conv1..conv3 (+ biases) and linear1 (+ bias):
    #   Z1pre = (A^3 h) g1 + (A^2 1) g2 + (A 1) g3 + g4
    # g1/g2/g3 sit on gmat rows 4/5/6 so they line up with the layer-2
    # accumulator lanes [A^3 h, A^2 1, A 1]; the fold is one (128,512) matmul.
    with jax.default_matmul_precision("highest"):
        w1, b1 = params["w1"], params["b1"]
        w2, b2 = params["w2"], params["b2"]
        w3, b3 = params["w3"], params["b3"]
        wl1, bl1 = params["wl1"], params["bl1"]
        g1 = w1 @ w2 @ w3 @ wl1                       # (1, 512)
        g2 = b1[None, :] @ w2 @ w3 @ wl1
        g3 = b2[None, :] @ w3 @ wl1
        g4 = b3[None, :] @ wl1 + bl1[None, :]
    gmat = jnp.zeros((LANE, LINEAR1), jnp.float32)
    gmat = gmat.at[4, :].set(g1[0])
    gmat = gmat.at[5, :].set(g2[0])
    gmat = gmat.at[6, :].set(g3[0])

    consts = jnp.zeros((8, LINEAR1), jnp.float32)
    consts = consts.at[0, :].set(g4[0])                          # folded linear1 bias
    consts = consts.at[1, :LINEAR2].set(params["bl2"])           # linear2 bias
    consts = consts.at[2, :out_channels].set(params["bl3"])      # linear3 bias

    wl2 = params["wl2"].astype(mm_dtype)                                    # (512, 128)
    wl3 = jnp.pad(params["wl3"],
                  ((0, 0), (0, LANE - out_channels))).astype(mm_dtype)      # (128, 128)
    return {"wcol": wcol, "gmat": gmat.astype(mm_dtype), "wl2": wl2,
            "wl3": wl3, "consts": consts}
    # NOTE: bn1/bn2 exist in the module's __init__ but are never used in forward.


def _auto_resident_a(n_pad, a_bytes, tm, tk):
    """True when a (worst-case double-buffered) full copy of A plus the chain
    state and working set comfortably fits this generation's VMEM."""
    cap = _vmem_capacity_bytes()
    resident = 2 * n_pad * n_pad * a_bytes
    chain = n_pad * LANE * 4
    working = (4 * tm * LINEAR1 + 2 * (tm + 2 * tk) * LANE) * 4 + (2 << 20)
    return resident + chain + working <= int(0.55 * cap)


def decoder_forward(prepared, x, edge_index, *, n_mols, out_channels,
                    tm, tk, resident_a=None):
    n0, in_c = x.shape
    n_nodes = n0 * n_mols
    n_pad = prepared["wcol"].shape[0]
    mm_dtype = prepared["wl2"].dtype
    a_bytes = jnp.dtype(mm_dtype).itemsize
    assert n_pad % tm == 0 and n_pad % tk == 0 and n_pad >= n_nodes
    if resident_a is None:
        resident_a = _auto_resident_a(n_pad, a_bytes, tm, tk)

    # glue (reshape plumbing only): node r sees x[r // n_mols]; the trailing
    # ones lane carries the inv_transform bias.  The linear runs in the kernel.
    xrep = jnp.repeat(x.astype(jnp.float32), n_mols, axis=0)
    xrep = jnp.concatenate([xrep, jnp.ones((n_nodes, 1), jnp.float32)], axis=1)
    xrep = jnp.pad(xrep, ((0, n_pad - n_nodes), (0, LANE - (in_c + 1))))

    # glue: dense normalized adjacency scattered from edge_index, built once at
    # padded size and in the matmul dtype (bf16 by default).
    a = gcn_norm_dense(edge_index, n_nodes, n_pad=n_pad, dtype=mm_dtype)

    out = _decoder_pallas_call(xrep, prepared["wcol"], a, prepared["gmat"],
                               prepared["wl2"], prepared["wl3"],
                               prepared["consts"],
                               tm=tm, tk=tk, n_pad=n_pad, resident_a=resident_a)
    return out[:n_nodes, :out_channels], edge_index


# ----------------------------------------------------------- init / reference

def init_params(key, in_channels, out_channels, n_mols):
    ks = jax.random.split(key, 14)

    def w(k, i, o):
        return jax.random.normal(k, (i, o), jnp.float32) * (1.0 / jnp.sqrt(i))

    def b(k, o):
        return jax.random.normal(k, (o,), jnp.float32) * 0.01

    p = {}
    p["w_inv"], p["b_inv"] = w(ks[0], in_channels, n_mols), b(ks[1], n_mols)
    p["w1"], p["b1"] = w(ks[2], 1, 9), b(ks[3], 9)
    p["w2"], p["b2"] = w(ks[4], 9, 3), b(ks[5], 3)
    p["w3"], p["b3"] = w(ks[6], 3, 3), b(ks[7], 3)
    p["wl1"], p["bl1"] = w(ks[8], 3, LINEAR1), b(ks[9], LINEAR1)
    p["wl2"], p["bl2"] = w(ks[10], LINEAR1, LINEAR2), b(ks[11], LINEAR2)
    p["wl3"], p["bl3"] = w(ks[12], LINEAR2, out_channels), b(ks[13], out_channels)
    return p


def reference_forward(params, x, edge_index):
    y = _lrelu(x @ params["w_inv"] + params["b_inv"])
    h = y.reshape(-1, 1)
    n_nodes = h.shape[0]
    a = gcn_norm_dense(edge_index, n_nodes)
    h = a @ (h @ params["w1"]) + params["b1"]
    h = a @ (h @ params["w2"]) + params["b2"]
    h = a @ (h @ params["w3"]) + params["b3"]
    h = _lrelu(h @ params["wl1"] + params["bl1"])
    h = _lrelu(h @ params["wl2"] + params["bl2"])
    h = _lrelu(h @ params["wl3"] + params["bl3"])
    return h


def _pick_tiles(n_nodes):
    """Default (tm, tk) for production graphs: big asymmetric tiles to amortize
    per-step pipeline overhead; clamp to the (padded) node count."""
    npow = int(pl.next_power_of_2(max(int(n_nodes), 8)))
    tm = min(512, max(8, npow))
    tk = min(1024, max(128, npow))
    return tm, tk


# --------------------------------------------------------------------- main --

if __name__ == "__main__":
    in_channels, out_channels = 4, 16
    batch_size, n_mols = 4, 8
    n0 = batch_size * n_mols                 # rows of x = 32
    n_nodes = n0 * n_mols                    # graph nodes after reshape = 256

    key = jax.random.PRNGKey(0)
    kx, kp = jax.random.split(key)
    x = jax.random.normal(kx, (n0, in_channels), jnp.float32)

    # undirected ring graph over the nodes, edge_index shape (2, 2N)
    nodes = jnp.arange(n_nodes, dtype=jnp.int32)
    nxt = (nodes + 1) % n_nodes
    edge_index = jnp.concatenate(
        [jnp.stack([nodes, nxt]), jnp.stack([nxt, nodes])], axis=1).astype(jnp.int32)

    params = init_params(kp, in_channels, out_channels, n_mols)
    with jax.default_matmul_precision("highest"):
        ref = jax.block_until_ready(reference_forward(params, x, edge_index))

    # tm = tk = 128 gives a (3, 2, 2) grid at these shapes, so the multi-tile
    # accumulation, the stage-1 hoisting and the chain-state plumbing are all
    # exercised (production sizes would use _pick_tiles).
    tm, tk = 128, 128

    def run(mm_dtype, resident_a):
        prep = prepare_params(params, in_channels=in_channels,
                              out_channels=out_channels, n_mols=n_mols,
                              n_nodes=n_nodes, tm=tm, tk=tk, mm_dtype=mm_dtype)
        fwd = jax.jit(functools.partial(decoder_forward, n_mols=n_mols,
                                        out_channels=out_channels, tm=tm, tk=tk,
                                        resident_a=resident_a))
        out, _ = fwd(prep, x, edge_index)
        return jax.block_until_ready(out)

    # ---- f32, streamed (tiled) A: exact check of the streaming code path ----
    out_tiled = run(jnp.float32, resident_a=False)
    assert out_tiled.shape == (n_nodes, out_channels), out_tiled.shape
    if not jnp.allclose(out_tiled, ref, atol=2e-3, rtol=2e-3):
        err = float(jnp.max(jnp.abs(out_tiled - ref)))
        raise AssertionError(f"f32 tiled-A output mismatch vs reference (max |err|={err})")

    # ---- f32, VMEM-resident A (fetched once, reused for all 3 layers) ----
    out_res = run(jnp.float32, resident_a=True)
    if not jnp.allclose(out_res, ref, atol=2e-3, rtol=2e-3):
        err = float(jnp.max(jnp.abs(out_res - ref)))
        raise AssertionError(f"f32 resident-A output mismatch vs reference (max |err|={err})")

    # ---- default path: bf16 A / weights, auto resident-vs-tiled selection ----
    out_bf16 = run(jnp.bfloat16, resident_a=None)
    assert out_bf16.shape == (n_nodes, out_channels)
    assert bool(jnp.all(jnp.isfinite(out_bf16)))
    assert float(jnp.max(jnp.abs(out_bf16 - ref))) < 0.5, "bf16 path diverged"

    print("KERNEL_OK")
</pallas_src>

<mosaic_0001>
module attributes {stable_mosaic.version = 11 : i64} {
  func.func private @main(%arg0: i32) attributes {dimension_semantics = [#tpu.dimension_semantics<core_parallel>], iteration_bounds = array<i64: 2>, tpu.core_type = #tpu.core_type<sc_scalar_subcore>, window_params = []} {
    return
  }
}

module attributes {stable_mosaic.version = 11 : i64} {
  func.func private @main(%arg0: i32) attributes {dimension_semantics = [#tpu.dimension_semantics<core_parallel>], iteration_bounds = array<i64: 2>, tpu.core_type = #tpu.core_type<sc_scalar_subcore>, window_params = []} {
    return
  }
}

module attributes {stable_mosaic.version = 11 : i64} {
  func.func @_decoder_kernel(%arg0: i32, %arg1: i32, %arg2: i32, %arg3: memref<128x128xf32, #tpu.memory_space<vmem>>, %arg4: memref<128x128xf32, #tpu.memory_space<vmem>>, %arg5: memref<128x128xf32, #tpu.memory_space<vmem>>, %arg6: memref<128x512xf32, #tpu.memory_space<vmem>>, %arg7: memref<512x128xf32, #tpu.memory_space<vmem>>, %arg8: memref<128x128xf32, #tpu.memory_space<vmem>>, %arg9: memref<8x512xf32, #tpu.memory_space<vmem>>, %arg10: memref<128x128xf32, #tpu.memory_space<vmem>>, %arg11: memref<128x128xf32, #tpu.memory_space<vmem>>, %arg12: memref<256x128xf32, #tpu.memory_space<vmem>>) attributes {dimension_semantics = [#tpu.dimension_semantics<arbitrary>, #tpu.dimension_semantics<arbitrary>, #tpu.dimension_semantics<arbitrary>], iteration_bounds = array<i64: 3, 2, 2>, scalar_prefetch = 0 : i64, scratch_operands = 2 : i64, tpu.core_type = #tpu.core_type<tc>, window_params = [{transform_indices = @transform_0, window_bounds = array<i64: 128, 128>}, {transform_indices = @transform_1, window_bounds = array<i64: 128, 128>}, {transform_indices = @transform_2, window_bounds = array<i64: 128, 128>}, {pipeline_mode = #tpu.pipeline_mode<synchronous>, transform_indices = @transform_3, window_bounds = array<i64: 128, 512>}, {pipeline_mode = #tpu.pipeline_mode<synchronous>, transform_indices = @transform_4, window_bounds = array<i64: 512, 128>}, {pipeline_mode = #tpu.pipeline_mode<synchronous>, transform_indices = @transform_5, window_bounds = array<i64: 128, 128>}, {pipeline_mode = #tpu.pipeline_mode<synchronous>, transform_indices = @transform_6, window_bounds = array<i64: 8, 512>}, {transform_indices = @transform_7, window_bounds = array<i64: 128, 128>}]} {
    %c128_i32 = arith.constant 128 : i32
    %0 = arith.muli %arg1, %c128_i32 : i32
    %1 = tpu.assume_multiple %0, 128 : i32
    %c128_i32_0 = arith.constant 128 : i32
    %2 = arith.muli %arg2, %c128_i32_0 : i32
    %3 = tpu.assume_multiple %2, 128 : i32
    %c0_i32 = arith.constant 0 : i32
    %4 = arith.cmpi eq, %arg0, %c0_i32 : i32
    %c0_i32_1 = arith.constant 0 : i32
    %5 = arith.cmpi eq, %arg1, %c0_i32_1 : i32
    %6 = arith.andi %4, %5 : i1
    %7 = arith.extui %6 : i1 to i32
    %c0_i32_2 = arith.constant 0 : i32
    %8 = arith.cmpi ne, %7, %c0_i32_2 : i32
    scf.if %8 {
      %c0_16 = arith.constant 0 : index
      %c0_17 = arith.constant 0 : index
      %32 = vector.load %arg3[%c0_16, %c0_17] : memref<128x128xf32, #tpu.memory_space<vmem>>, vector<128x128xf32>
      %c0_18 = arith.constant 0 : index
      %c0_19 = arith.constant 0 : index
      %33 = vector.load %arg4[%c0_18, %c0_19] : memref<128x128xf32, #tpu.memory_space<vmem>>, vector<128x128xf32>
      %34 = arith.mulf %32, %33 : vector<128x128xf32>
      %cst_20 = arith.constant dense<0.000000e+00> : vector<128xf32>
      %35 = vector.multi_reduction <add>, %34, %cst_20 [1] : vector<128x128xf32> to vector<128xf32>
      %36 = vector.shape_cast %35 : vector<128xf32> to vector<128x1xf32>
      %cst_21 = arith.constant 0.000000e+00 : f32
      %37 = vector.broadcast %cst_21 : f32 to vector<128x1xf32>
      %38 = arith.cmpf oge, %36, %37 : vector<128x1xf32>
      %cst_22 = arith.constant 0.00999999977 : f32
      %39 = vector.broadcast %cst_22 : f32 to vector<128x1xf32>
      %40 = arith.mulf %39, %36 : vector<128x1xf32>
      %41 = arith.select %38, %36, %40 : vector<128x1xi1>, vector<128x1xf32>
      %42 = tpu.iota {dimensions = array<i32: 1>} : vector<128x128xi32>
      %c0_i32_23 = arith.constant 0 : i32
      %43 = vector.broadcast %c0_i32_23 : i32 to vector<128x128xi32>
      %44 = arith.cmpi eq, %42, %43 : vector<128x128xi32>
      %c1_i32_24 = arith.constant 1 : i32
      %45 = vector.broadcast %c1_i32_24 : i32 to vector<128x128xi32>
      %46 = arith.cmpi eq, %42, %45 : vector<128x128xi32>
      %cst_25 = arith.constant 1.000000e+00 : f32
      %cst_26 = arith.constant 0.000000e+00 : f32
      %47 = vector.broadcast %cst_25 : f32 to vector<128x128xf32>
      %48 = vector.broadcast %cst_26 : f32 to vector<128x128xf32>
      %49 = arith.select %46, %47, %48 : vector<128x128xi1>, vector<128x128xf32>
      %50 = vector.shape_cast %41 : vector<128x1xf32> to vector<128x1xf32>
      %51 = vector.broadcast %50 : vector<128x1xf32> to vector<128x128xf32>
      %52 = arith.select %44, %51, %49 : vector<128x128xi1>, vector<128x128xf32>
      %53 = arith.index_cast %3 : i32 to index
      %c0_27 = arith.constant 0 : index
      %54 = vector.load %arg12[%53, %c0_27] : memref<256x128xf32, #tpu.memory_space<vmem>>, vector<128x128xf32>
      tpu.vector_store %arg12[%53, %c0_27], %52 {strides = array<i32>} : memref<256x128xf32, #tpu.memory_space<vmem>>, vector<128x128xf32>,
    } else {
    }
    %c0_i32_3 = arith.constant 0 : i32
    %9 = arith.cmpi eq, %arg2, %c0_i32_3 : i32
    %10 = arith.extui %9 : i1 to i32
    %c0_i32_4 = arith.constant 0 : i32
    %11 = arith.cmpi ne, %10, %c0_i32_4 : i32
    scf.if %11 {
      %cst_16 = arith.constant 0.000000e+00 : f32
      %32 = vector.broadcast %cst_16 : f32 to vector<128x128xf32>
      %c0_17 = arith.constant 0 : index
      %c0_18 = arith.constant 0 : index
      %33 = vector.load %arg11[%c0_17, %c0_18] : memref<128x128xf32, #tpu.memory_space<vmem>>, vector<128x128xf32>
      tpu.vector_store %arg11[%c0_17, %c0_18], %32 {strides = array<i32>} : memref<128x128xf32, #tpu.memory_space<vmem>>, vector<128x128xf32>,
    } else {
    }
    %c0 = arith.constant 0 : index
    %c0_5 = arith.constant 0 : index
    %12 = vector.load %arg5[%c0, %c0_5] : memref<128x128xf32, #tpu.memory_space<vmem>>, vector<128x128xf32>
    %13 = arith.index_cast %3 : i32 to index
    %c0_6 = arith.constant 0 : index
    %14 = vector.load %arg12[%13, %c0_6] : memref<256x128xf32, #tpu.memory_space<vmem>>, vector<128x128xf32>
    %c0_7 = arith.constant 0 : index
    %c0_8 = arith.constant 0 : index
    %15 = vector.load %arg11[%c0_7, %c0_8] : memref<128x128xf32, #tpu.memory_space<vmem>>, vector<128x128xf32>
    %cst = arith.constant dense<0.000000e+00> : vector<128x128xf32>
    %16 = tpu.matmul %12, %14, %cst {dimension_numbers = #tpu.dot_dimension_numbers<[1], [0], [0], [1], [0, 0, 1, 1], [], []>} : vector<128x128xf32>, vector<128x128xf32>, vector<128x128xf32> -> vector<128x128xf32>
    %17 = arith.addf %15, %16 : vector<128x128xf32>
    %c0_9 = arith.constant 0 : index
    %c0_10 = arith.constant 0 : index
    %18 = vector.load %arg11[%c0_9, %c0_10] : memref<128x128xf32, #tpu.memory_space<vmem>>, vector<128x128xf32>
    tpu.vector_store %arg11[%c0_9, %c0_10], %17 {strides = array<i32>} : memref<128x128xf32, #tpu.memory_space<vmem>>, vector<128x128xf32>,
    %c1_i32 = arith.constant 1 : i32
    %19 = arith.cmpi eq, %arg2, %c1_i32 : i32
    %c0_i32_11 = arith.constant 0 : i32
    %20 = arith.cmpi eq, %arg0, %c0_i32_11 : i32
    %21 = arith.andi %19, %20 : i1
    %22 = arith.extui %21 : i1 to i32
    %c0_i32_12 = arith.constant 0 : i32
    %23 = arith.cmpi ne, %22, %c0_i32_12 : i32
    scf.if %23 {
      %c0_16 = arith.constant 0 : index
      %c0_17 = arith.constant 0 : index
      %32 = vector.load %arg11[%c0_16, %c0_17] : memref<128x128xf32, #tpu.memory_space<vmem>>, vector<128x128xf32>
      %33 = tpu.iota {dimensions = array<i32: 1>} : vector<128x128xi32>
      %34 = arith.index_cast %1 : i32 to index
      %c0_18 = arith.constant 0 : index
      %35 = vector.load %arg12[%34, %c0_18] : memref<256x128xf32, #tpu.memory_space<vmem>>, vector<128x128xf32>
      %c2_i32_19 = arith.constant 2 : i32
      %36 = vector.broadcast %c2_i32_19 : i32 to vector<128x128xi32>
      %37 = arith.cmpi eq, %33, %36 : vector<128x128xi32>
      %38 = vector.extract_strided_slice %32 {offsets = [0, 0], sizes = [128, 1], strides = [1, 1]} : vector<128x128xf32> to vector<128x1xf32>
      %c3_i32 = arith.constant 3 : i32
      %39 = vector.broadcast %c3_i32 : i32 to vector<128x128xi32>
      %40 = arith.cmpi eq, %33, %39 : vector<128x128xi32>
      %cst_20 = arith.constant 1.000000e+00 : f32
      %41 = vector.broadcast %cst_20 : f32 to vector<128x128xf32>
      %42 = arith.select %40, %41, %35 : vector<128x128xi1>, vector<128x128xf32>
      %43 = vector.shape_cast %38 : vector<128x1xf32> to vector<128x1xf32>
      %44 = vector.broadcast %43 : vector<128x1xf32> to vector<128x128xf32>
      %45 = arith.select %37, %44, %42 : vector<128x128xi1>, vector<128x128xf32>
      %46 = arith.index_cast %1 : i32 to index
      %c0_21 = arith.constant 0 : index
      %47 = vector.load %arg12[%46, %c0_21] : memref<256x128xf32, #tpu.memory_space<vmem>>, vector<128x128xf32>
      tpu.vector_store %arg12[%46, %c0_21], %45 {strides = array<i32>} : memref<256x128xf32, #tpu.memory_space<vmem>>, vector<128x128xf32>,
    } else {
    }
    %c1_i32_13 = arith.constant 1 : i32
    %24 = arith.cmpi eq, %arg0, %c1_i32_13 : i32
    %25 = arith.andi %19, %24 : i1
    %26 = arith.extui %25 : i1 to i32
    %c0_i32_14 = arith.constant 0 : i32
    %27 = arith.cmpi ne, %26, %c0_i32_14 : i32
    scf.if %27 {
      %c0_16 = arith.constant 0 : index
      %c0_17 = arith.constant 0 : index
      %32 = vector.load %arg11[%c0_16, %c0_17] : memref<128x128xf32, #tpu.memory_space<vmem>>, vector<128x128xf32>
      %33 = tpu.iota {dimensions = array<i32: 1>} : vector<128x128xi32>
      %34 = arith.index_cast %1 : i32 to index
      %c0_18 = arith.constant 0 : index
      %35 = vector.load %arg12[%34, %c0_18] : memref<256x128xf32, #tpu.memory_space<vmem>>, vector<128x128xf32>
      %c4_i32 = arith.constant 4 : i32
      %36 = vector.broadcast %c4_i32 : i32 to vector<128x128xi32>
      %37 = arith.cmpi eq, %33, %36 : vector<128x128xi32>
      %38 = vector.extract_strided_slice %32 {offsets = [0, 2], sizes = [128, 1], strides = [1, 1]} : vector<128x128xf32> to vector<128x1xf32>
      %c5_i32 = arith.constant 5 : i32
      %39 = vector.broadcast %c5_i32 : i32 to vector<128x128xi32>
      %40 = arith.cmpi eq, %33, %39 : vector<128x128xi32>
      %41 = vector.extract_strided_slice %32 {offsets = [0, 3], sizes = [128, 1], strides = [1, 1]} : vector<128x128xf32> to vector<128x1xf32>
      %c6_i32 = arith.constant 6 : i32
      %42 = vector.broadcast %c6_i32 : i32 to vector<128x128xi32>
      %43 = arith.cmpi eq, %33, %42 : vector<128x128xi32>
      %cst_19 = arith.constant 1.000000e+00 : f32
      %44 = vector.broadcast %cst_19 : f32 to vector<128x128xf32>
      %45 = arith.select %43, %44, %35 : vector<128x128xi1>, vector<128x128xf32>
      %46 = vector.shape_cast %41 : vector<128x1xf32> to vector<128x1xf32>
      %47 = vector.broadcast %46 : vector<128x1xf32> to vector<128x128xf32>
      %48 = arith.select %40, %47, %45 : vector<128x128xi1>, vector<128x128xf32>
      %49 = vector.shape_cast %38 : vector<128x1xf32> to vector<128x1xf32>
      %50 = vector.broadcast %49 : vector<128x1xf32> to vector<128x128xf32>
      %51 = arith.select %37, %50, %48 : vector<128x128xi1>, vector<128x128xf32>
      %52 = arith.index_cast %1 : i32 to index
      %c0_20 = arith.constant 0 : index
      %53 = vector.load %arg12[%52, %c0_20] : memref<256x128xf32, #tpu.memory_space<vmem>>, vector<128x128xf32>
      tpu.vector_store %arg12[%52, %c0_20], %51 {strides = array<i32>} : memref<256x128xf32, #tpu.memory_space<vmem>>, vector<128x128xf32>,
    } else {
    }
    %c2_i32 = arith.constant 2 : i32
    %28 = arith.cmpi eq, %arg0, %c2_i32 : i32
    %29 = arith.andi %19, %28 : i1
    %30 = arith.extui %29 : i1 to i32
    %c0_i32_15 = arith.constant 0 : i32
    %31 = arith.cmpi ne, %30, %c0_i32_15 : i32
    scf.if %31 {
      %c0_16 = arith.constant 0 : index
      %c0_17 = arith.constant 0 : index
      %32 = vector.load %arg11[%c0_16, %c0_17] : memref<128x128xf32, #tpu.memory_space<vmem>>, vector<128x128xf32>
      %c0_18 = arith.constant 0 : index
      %c0_19 = arith.constant 0 : index
      %33 = vector.load %arg9[%c0_18, %c0_19] : memref<8x512xf32, #tpu.memory_space<vmem>>, vector<8x512xf32>
      %c0_20 = arith.constant 0 : index
      %c0_21 = arith.constant 0 : index
      %34 = vector.load %arg6[%c0_20, %c0_21] : memref<128x512xf32, #tpu.memory_space<vmem>>, vector<128x512xf32>
      %cst_22 = arith.constant dense<0.000000e+00> : vector<128x512xf32>
      %35 = tpu.matmul %32, %34, %cst_22 {dimension_numbers = #tpu.dot_dimension_numbers<[1], [0], [0], [1], [0, 0, 1, 1], [], []>} : vector<128x128xf32>, vector<128x512xf32>, vector<128x512xf32> -> vector<128x512xf32>
      %36 = vector.extract_strided_slice %33 {offsets = [0, 0], sizes = [1, 512], strides = [1, 1]} : vector<8x512xf32> to vector<1x512xf32>
      %37 = vector.broadcast %36 : vector<1x512xf32> to vector<128x512xf32>
      %38 = arith.addf %35, %37 : vector<128x512xf32>
      %cst_23 = arith.constant 0.000000e+00 : f32
      %39 = vector.broadcast %cst_23 : f32 to vector<128x512xf32>
      %40 = arith.cmpf oge, %38, %39 : vector<128x512xf32>
      %cst_24 = arith.constant 0.00999999977 : f32
      %41 = vector.broadcast %cst_24 : f32 to vector<128x512xf32>
      %42 = arith.mulf %41, %38 : vector<128x512xf32>
      %43 = arith.select %40, %38, %42 : vector<128x512xi1>, vector<128x512xf32>
      %c0_25 = arith.constant 0 : index
      %c0_26 = arith.constant 0 : index
      %44 = vector.load %arg7[%c0_25, %c0_26] : memref<512x128xf32, #tpu.memory_space<vmem>>, vector<512x128xf32>
      %cst_27 = arith.constant dense<0.000000e+00> : vector<128x128xf32>
      %45 = tpu.matmul %43, %44, %cst_27 {dimension_numbers = #tpu.dot_dimension_numbers<[1], [0], [0], [1], [0, 0, 1, 1], [], []>} : vector<128x512xf32>, vector<512x128xf32>, vector<128x128xf32> -> vector<128x128xf32>
      %46 = vector.extract_strided_slice %33 {offsets = [1, 0], sizes = [1, 128], strides = [1, 1]} : vector<8x512xf32> to vector<1x128xf32>
      %47 = vector.broadcast %46 : vector<1x128xf32> to vector<128x128xf32>
      %48 = arith.addf %45, %47 : vector<128x128xf32>
      %cst_28 = arith.constant 0.000000e+00 : f32
      %49 = vector.broadcast %cst_28 : f32 to vector<128x128xf32>
      %50 = arith.cmpf oge, %48, %49 : vector<128x128xf32>
      %cst_29 = arith.constant 0.00999999977 : f32
      %51 = vector.broadcast %cst_29 : f32 to vector<128x128xf32>
      %52 = arith.mulf %51, %48 : vector<128x128xf32>
      %53 = arith.select %50, %48, %52 : vector<128x128xi1>, vector<128x128xf32>
      %c0_30 = arith.constant 0 : index
      %c0_31 = arith.constant 0 : index
      %54 = vector.load %arg8[%c0_30, %c0_31] : memref<128x128xf32, #tpu.memory_space<vmem>>, vector<128x128xf32>
      %cst_32 = arith.constant dense<0.000000e+00> : vector<128x128xf32>
      %55 = tpu.matmul %53, %54, %cst_32 {dimension_numbers = #tpu.dot_dimension_numbers<[1], [0], [0], [1], [0, 0, 1, 1], [], []>} : vector<128x128xf32>, vector<128x128xf32>, vector<128x128xf32> -> vector<128x128xf32>
      %56 = vector.extract_strided_slice %33 {offsets = [2, 0], sizes = [1, 128], strides = [1, 1]} : vector<8x512xf32> to vector<1x128xf32>
      %57 = vector.broadcast %56 : vector<1x128xf32> to vector<128x128xf32>
      %58 = arith.addf %55, %57 : vector<128x128xf32>
      %cst_33 = arith.constant 0.000000e+00 : f32
      %59 = vector.broadcast %cst_33 : f32 to vector<128x128xf32>
      %60 = arith.cmpf oge, %58, %59 : vector<128x128xf32>
      %cst_34 = arith.constant 0.00999999977 : f32
      %61 = vector.broadcast %cst_34 : f32 to vector<128x128xf32>
      %62 = arith.mulf %61, %58 : vector<128x128xf32>
      %63 = arith.select %60, %58, %62 : vector<128x128xi1>, vector<128x128xf32>
      %c0_35 = arith.constant 0 : index
      %c0_36 = arith.constant 0 : index
      %64 = vector.load %arg10[%c0_35, %c0_36] : memref<128x128xf32, #tpu.memory_space<vmem>>, vector<128x128xf32>
      tpu.vector_store %arg10[%c0_35, %c0_36], %63 {strides = array<i32>} : memref<128x128xf32, #tpu.memory_space<vmem>>, vector<128x128xf32>,
    } else {
    }
    return
  }
  func.func @transform_0(%arg0: i32, %arg1: i32, %arg2: i32) -> (i32, i32) {
    %c0_i32 = arith.constant 0 : i32
    %0 = arith.cmpi eq, %arg0, %c0_i32 : i32
    %c0_i32_0 = arith.constant 0 : i32
    %1 = arith.cmpi eq, %arg1, %c0_i32_0 : i32
    %2 = arith.andi %0, %1 : i1
    %c0_i32_1 = arith.constant 0 : i32
    %3 = arith.select %2, %arg2, %c0_i32_1 : i32
    %c0_i32_2 = arith.constant 0 : i32
    %c0_i32_3 = arith.constant 0 : i32
    return %3, %c0_i32_2 : i32, i32
  }
  func.func @transform_1(%arg0: i32, %arg1: i32, %arg2: i32) -> (i32, i32) {
    %c0_i32 = arith.constant 0 : i32
    %0 = arith.cmpi eq, %arg0, %c0_i32 : i32
    %c0_i32_0 = arith.constant 0 : i32
    %1 = arith.cmpi eq, %arg1, %c0_i32_0 : i32
    %2 = arith.andi %0, %1 : i1
    %c0_i32_1 = arith.constant 0 : i32
    %3 = arith.select %2, %arg2, %c0_i32_1 : i32
    %c0_i32_2 = arith.constant 0 : i32
    %c0_i32_3 = arith.constant 0 : i32
    return %3, %c0_i32_2 : i32, i32
  }
  func.func @transform_2(%arg0: i32, %arg1: i32, %arg2: i32) -> (i32, i32) {
    %c0_i32 = arith.constant 0 : i32
    return %arg1, %arg2 : i32, i32
  }
  func.func @transform_3(%arg0: i32, %arg1: i32, %arg2: i32) -> (i32, i32) {
    %c0_i32 = arith.constant 0 : i32
    %c0_i32_0 = arith.constant 0 : i32
    %c0_i32_1 = arith.constant 0 : i32
    return %c0_i32, %c0_i32_0 : i32, i32
  }
  func.func @transform_4(%arg0: i32, %arg1: i32, %arg2: i32) -> (i32, i32) {
    %c0_i32 = arith.constant 0 : i32
    %c0_i32_0 = arith.constant 0 : i32
    %c0_i32_1 = arith.constant 0 : i32
    return %c0_i32, %c0_i32_0 : i32, i32
  }
  func.func @transform_5(%arg0: i32, %arg1: i32, %arg2: i32) -> (i32, i32) {
    %c0_i32 = arith.constant 0 : i32
    %c0_i32_0 = arith.constant 0 : i32
    %c0_i32_1 = arith.constant 0 : i32
    return %c0_i32, %c0_i32_0 : i32, i32
  }
  func.func @transform_6(%arg0: i32, %arg1: i32, %arg2: i32) -> (i32, i32) {
    %c0_i32 = arith.constant 0 : i32
    %c0_i32_0 = arith.constant 0 : i32
    %c0_i32_1 = arith.constant 0 : i32
    return %c0_i32, %c0_i32_0 : i32, i32
  }
  func.func @transform_7(%arg0: i32, %arg1: i32, %arg2: i32) -> (i32, i32) {
    %c2_i32 = arith.constant 2 : i32
    %0 = arith.cmpi eq, %arg0, %c2_i32 : i32
    %c0_i32 = arith.constant 0 : i32
    %1 = arith.select %0, %arg1, %c0_i32 : i32
    %c0_i32_0 = arith.constant 0 : i32
    %c0_i32_1 = arith.constant 0 : i32
    return %1, %c0_i32_0 : i32, i32
  }
}

</mosaic_0001>

<bundles_post_ra>
// kernel: decoder_forward.1
= control target key start
LH: loop header
LB: loop body
LE: loop exit
PB: predicated region body
PF: predicated region fallthrough
CT: control target
= control target key end

     0   :  { %s4757_s0 = inlined_call_operand.vmem [shape: f32[256,128], index: 0, kind: input, shape index: {}]   ;;  %s4758_s1 = inlined_call_operand.vmem [shape: f32[256,128], index: 1, kind: input, shape index: {}]   ;;  %s4759_s2 = inlined_call_operand.vmem [shape: f32[256,256], index: 2, kind: input, shape index: {}]   ;;  %s4760_s3 = inlined_call_operand.vmem [shape: f32[128,512], index: 3, kind: input, shape index: {}]   ;;  %s4761_s4 = inlined_call_operand.vmem [shape: f32[512,128], index: 4, kind: input, shape index: {}]   ;;  %s4762_s5 = inlined_call_operand.vmem [shape: f32[128,128], index: 5, kind: input, shape index: {}]   ;;  %s4763_s6 = inlined_call_operand.vmem [shape: f32[8,512], index: 6, kind: input, shape index: {}]   ;;  %s4764_s7 = inlined_call_operand.vmem [shape: f32[256,128], index: 7, kind: output, shape index: {}]  }
   0x1   :  { %4768 = sst [smem:[#allocation9_spill]] %s4759_s2 }
   0x2   :  { %s3529_s24 = smov 0   ;;  %s3531_s25 = smov 0  }
   0x3   :  { %s3533_s26 = smov 0   ;;  %s3535_s27 = smov 0  }
   0x4   :  { %s3537_s28 = smov 0   ;;  %s3539_s29 = smov 0  }
   0x5   :  { %s3541_s30 = smov 0   ;;  %s3543_s8 = smov 0  }
   0x6   :  { %s3545_s9 = smov 0  }
   0x7 LB: > { %4769 = sst [smem:[#allocation5_spill]] %s3477_s8  ;;  %s29_s10 = sadd.s32 1, %s3469_s29  ;;  %s3481_s9 = sphi %s3545_s9, %s17_s9   ;;  %s3477_s8 = sphi %s3543_s8, %s4783_s8   ;;  %s3473_s30 = sphi %s3541_s30, %s4789_s30   ;;  %s3469_s29 = sphi %s3539_s29, %s4788_s29   ;;  %s3465_s28 = sphi %s3537_s28, %s4780_s28   ;;  %s3461_s27 = sphi %s3535_s27, %s4787_s27   ;;  %s3457_s26 = sphi %s3533_s26, %s4786_s26   ;;  %s3453_s25 = sphi %s3531_s25, %s4785_s25   ;;  %s3449_s24 = sphi %s3529_s24, %s4784_s24  }
   0x8   : > { %p30_p0 = scmp.ge.s32.totalorder %s29_s10, 2  ;;  %s32_s11 = sadd.s32 1, %s3473_s30 }
   0x9   : > { %p124_p1 = scmp.ne.s32.totalorder %s3453_s25, %s3449_s24  ;;  %p125_p2 = scmp.eq.s32.totalorder %s3481_s9, 0 }
   0xa   : > { %s4791_s10 = smov (%p30_p0, %s29_s10), 0  ;;  %s4793_s11 = smov (!%p30_p0, %s32_s11), %s3473_s30 }
   0xb   : > { %4770 = sst [smem:[#allocation6_spill]] %s4791_s10  ;;  %p34_p3 = scmp.ge.s32.totalorder %s4793_s11, 2 }
   0xc   : > { %s36_s12 = sadd.s32 1, %s3477_s8  ;;  %s113_s13 = ssub.s32 %s3469_s29, %s4791_s10 }
   0xd   : > { %p126_p4 = por %p125_p2, %p124_p1  ;;  %s4795_s11 = smov (%p34_p3, %s4793_s11), 0 }
   0xe   : > { %4771 = sst [smem:[#allocation7_spill]] %s4795_s11  ;;  %s4797_s12 = smov (!%p34_p3, %s36_s12), %s3477_s8 }
   0xf   : > { %s112_s14 = ssub.s32 %s3473_s30, %s4795_s11  ;;  %s117_s15 = sadd.s32 1, %s3453_s25 }
  0x10   : > { %p38_p5 = scmp.ge.s32.totalorder %s4797_s12, 3  ;;  %s114_s16 = sor.u32 %s113_s13, %s112_s14 }
  0x11   : > { %p115_p6 = scmp.eq.s32.totalorder %s114_s16, 0  ;;  %p2745_p7 = scmp.ge.s32.totalorder %s3481_s9, 12 }
  0x12   : > { %s4799_s12 = smov (%p38_p5, %s4797_s12), 0 }
  0x13   : > { %4772 = sst [smem:[#allocation8_spill]] %s4799_s12  ;;  %276 = sbr.rel (%p2745_p7) target bundleno = 44 (0x2c), region = 32 }
  0x14   : > { %s3594_s17 = scalar_select %p115_p6, %s3453_s25, %s117_s15  }
  0x1a   : > { %317 = sbr.rel (!%p126_p4) target bundleno = 44 (0x2c), region = 44  ;;  %s319_s18 = sand.u32 (%p126_p4), 1, %s3453_s25  }
  0x1b   : > { %s2765_s19 = sshll.u32 (%p126_p4), %s3473_s30, 5  ;;  %s2746_s20 = sshll.u32 (%p126_p4), %s319_s18, 7 }
  0x1c   : > { %s324_s21 = sadd.s32 (%p126_p4), %s3469_s29, %s2765_s19  ;;  %s4773_s2 = sld [smem:[#allocation9_spill]] (%p126_p4) }
  0x1d   : > { %s2749_s22 = sshll.u32 (%p126_p4), %s324_s21, 3  ;;  %s321_s14 = scalar_lea.vmem (%p126_p4), [#allocation4], %s2746_s20 }
  0x22   : > { %s3603_s13 = scalar_lea.vmem %s4773_s2, %s2749_s22 }
  0x23   : > { %v384_v0 = vld [vmem:[%s3603_s13] sm:$0xff]  ;;  %v386_v1 = vld [vmem:[%s3603_s13 + $0x10] sm:$0xff] }
  0x24   : > { %v388_v2 = vld [vmem:[%s3603_s13 + $0x20] sm:$0xff]  ;;  %385 = vst [vmem:[%s321_s14] sm:$0xff] %v384_v0  ;;  %387 = vst [vmem:[%s321_s14 + $0x8] sm:$0xff] %v386_v1  ;;  %v390_v3 = vld [vmem:[%s3603_s13 + $0x30] sm:$0xff] }
  0x25   : > { %389 = vst [vmem:[%s321_s14 + $0x10] sm:$0xff] %v388_v2  ;;  %v392_v4 = vld [vmem:[%s3603_s13 + $0x40] sm:$0xff]  ;;  %v394_v5 = vld [vmem:[%s3603_s13 + $0x50] sm:$0xff]  ;;  %391 = vst [vmem:[%s321_s14 + $0x18] sm:$0xff] %v390_v3 }
  0x26   : > { %393 = vst [vmem:[%s321_s14 + $0x20] sm:$0xff] %v392_v4  ;;  %395 = vst [vmem:[%s321_s14 + $0x28] sm:$0xff] %v394_v5  ;;  %v396_v6 = vld [vmem:[%s3603_s13 + $0x60] sm:$0xff]  ;;  %v398_v7 = vld [vmem:[%s3603_s13 + $0x70] sm:$0xff] }
  0x27   : > { %v400_v8 = vld [vmem:[%s3603_s13 + $0x80] sm:$0xff]  ;;  %397 = vst [vmem:[%s321_s14 + $0x30] sm:$0xff] %v396_v6  ;;  %399 = vst [vmem:[%s321_s14 + $0x38] sm:$0xff] %v398_v7  ;;  %v402_v9 = vld [vmem:[%s3603_s13 + $0x90] sm:$0xff] }
  0x28   : > { %401 = vst [vmem:[%s321_s14 + $0x40] sm:$0xff] %v400_v8  ;;  %v404_v10 = vld [vmem:[%s3603_s13 + $0xa0] sm:$0xff]  ;;  %v406_v11 = vld [vmem:[%s3603_s13 + $0xb0] sm:$0xff]  ;;  %403 = vst [vmem:[%s321_s14 + $0x48] sm:$0xff] %v402_v9 }
  0x29   : > { %405 = vst [vmem:[%s321_s14 + $0x50] sm:$0xff] %v404_v10  ;;  %407 = vst [vmem:[%s321_s14 + $0x58] sm:$0xff] %v406_v11  ;;  %v408_v12 = vld [vmem:[%s3603_s13 + $0xc0] sm:$0xff]  ;;  %v410_v13 = vld [vmem:[%s3603_s13 + $0xd0] sm:$0xff] }
  0x2a   : > { %v412_v14 = vld [vmem:[%s3603_s13 + $0xe0] sm:$0xff]  ;;  %409 = vst [vmem:[%s321_s14 + $0x60] sm:$0xff] %v408_v12  ;;  %411 = vst [vmem:[%s321_s14 + $0x68] sm:$0xff] %v410_v13  ;;  %v414_v15 = vld [vmem:[%s3603_s13 + $0xf0] sm:$0xff] }
  0x2b   : > { %413 = vst [vmem:[%s321_s14 + $0x70] sm:$0xff] %v412_v14  ;;  %415 = vst [vmem:[%s321_s14 + $0x78] sm:$0xff] %v414_v15 }
  0x2c PF: > { %p2750_p8 = scmp.ge.s32.totalorder %s3481_s9, 1  ;;  %p420_p9 = scmp.lt.s32.totalorder %s3481_s9, 13 }
  0x2e   : > { %p421_p10 = pnand %p2750_p8, %p420_p9 }
  0x2f   : > { %s427_s11 = sand.u32 (!%p421_p10), 1, %s3449_s24   ;;  %p480_p11 = scmp.eq.s32.totalorder (!%p421_p10), %s3465_s28, 0 }
  0x30   : > { %424 = sbr.rel (%p421_p10) target bundleno = 1629 (0x65d), region = 82  ;;  %s2751_s15 = sshll.u32 (!%p421_p10), %s427_s11, 7 }
  0x31   : > { %p481_p12 = scmp.eq.s32.totalorder (!%p421_p10), %s3461_s27, 0  ;;  %p513_p13 = scmp.eq.s32.totalorder (!%p421_p10), %s3465_s28, 2 }
  0x32   : > { %s3656_s22 = scalar_lea.vmem (!%p421_p10), [#allocation4], %s2751_s15 }
  0x33   : > { %p3629_p0 = pnand (!%p421_p10), %p481_p12, %p480_p11 }
  0x37   : > { %s514_s19 = scalar_select %p513_p13, %s3461_s27, 0 }
  0x38   : > { %s2752_s20 = scalar_select %p3629_p0, 0, %s3457_s26  ;;  %v659_v0 = vlaneseq (!%p3629_p0)  ;;  %v3483_v3 = vmov (!%p3629_p0), 0.0  }
  0x39   : > { %s2758_s21 = sshll.u32 %s514_s19, 4  ;;  %530 = sbr.rel (%p3629_p0) target bundleno = 244 (0xf4), region = 90 }
  0x3a   : > { %s2753_s23 = sshll.u32 %s2752_s20, 4  ;;  %p516_p1 = scmp.lt.s32.totalorder %s2758_s21, 31  ;;  %v3692_v1 = vand.u32 (!%p3629_p0), 127, %v659_v0 }
  0x3b   : > { %p486_p2 = scmp.lt.s32.totalorder %s2753_s23, 31  ;;  %s4775_s8 = sshll.u32 (!%p3629_p0), %s3457_s26, 7 }
  0x3c   : > { %s4801_s21 = smov (!%p516_p1, %s2758_s21), 31  ;;  %vm662_vm0 = vcmp.eq.s32.totalorder (!%p3629_p0), %v3692_v1, 1  ;;  %vm661_vm1 = vcmp.eq.s32.totalorder (!%p3629_p0), %v3692_v1, 0 }
  0x3d   : > { %s4803_s23 = smov (!%p486_p2, %s2753_s23), 31  ;;  %s2759_s24 = sshll.u32 %s4801_s21, 3  ;;  %v3696_v4 = vsel (!%p3629_p0), %vm662_vm0, 1.0, %v3483_v3 }
  0x3e   : > { %s2754_s13 = sshll.u32 %s4803_s23, 3  ;;  %s3644_s2 = scalar_lea.vmem %s4764_s7, %s2759_s24 }
  0x3f   : > { %s3649_s10 = scalar_lea.vmem %s4757_s0, %s2754_s13  ;;  %s3654_s20 = scalar_lea.vmem %s4758_s1, %s2754_s13 }
  0x40   : > { %v533_v16 = vld [vmem:[%s3649_s10 + $0x10] sm:$0xff]  ;;  %v531_v18 = vld [vmem:[%s3649_s10] sm:$0xff]  ;;  %v534_v21 = vld [vmem:[%s3649_s10 + $0x18] sm:$0xff] }
  0x41   : > { %v549_v17 = vld [vmem:[%s3654_s20 + $0x10] sm:$0xff]  ;;  %v547_v20 = vld [vmem:[%s3654_s20] sm:$0xff]  ;;  %v550_v22 = vld [vmem:[%s3654_s20 + $0x18] sm:$0xff] }
  0x42   : > { %v565_v19 = vmul.f32 %v549_v17, %v533_v16  ;;  %v563_v23 = vmul.f32 %v547_v20, %v531_v18  ;;  %v532_v24 = vld [vmem:[%s3649_s10 + $0x8] sm:$0xff]  ;;  %v566_v26 = vmul.f32 %v550_v22, %v534_v21  ;;  %v535_v30 = vld [vmem:[%s3649_s10 + $0x20] sm:$0xff]  ;;  %v538_v34 = vld [vmem:[%s3649_s10 + $0x38] sm:$0xff] }
  0x43   : > { %v548_v25 = vld [vmem:[%s3654_s20 + $0x8] sm:$0xff]  ;;  %v551_v31 = vld [vmem:[%s3654_s20 + $0x20] sm:$0xff]  ;;  %v554_v35 = vld [vmem:[%s3654_s20 + $0x38] sm:$0xff] }
  0x44   : > { %583 = vadd.xlane.f32.xlu1 %v565_v19  ;;  %579 = vadd.xlane.f32.xlu0 %v563_v23  ;;  %v564_v27 = vmul.f32 %v548_v25, %v532_v24  ;;  %v536_v28 = vld [vmem:[%s3649_s10 + $0x28] sm:$0xff]  ;;  %v567_v33 = vmul.f32 %v551_v31, %v535_v30  ;;  %v537_v36 = vld [vmem:[%s3649_s10 + $0x30] sm:$0xff]  ;;  %v570_v38 = vmul.f32 %v554_v35, %v538_v34  ;;  %v539_v42 = vld [vmem:[%s3649_s10 + $0x40] sm:$0xff] }
  0x45   : > { %v552_v29 = vld [vmem:[%s3654_s20 + $0x28] sm:$0xff]  ;;  %v553_v37 = vld [vmem:[%s3654_s20 + $0x30] sm:$0xff]  ;;  %v555_v43 = vld [vmem:[%s3654_s20 + $0x40] sm:$0xff] }
  0x46   : > { %v568_v32 = vmul.f32 %v552_v29, %v536_v28  ;;  %v569_v39 = vmul.f32 %v553_v37, %v537_v36  ;;  %v540_v40 = vld [vmem:[%s3649_s10 + $0x48] sm:$0xff]  ;;  %v571_v45 = vmul.f32 %v555_v43, %v539_v42  ;;  %v542_v46 = vld [vmem:[%s3649_s10 + $0x58] sm:$0xff]  ;;  %v541_v48 = vld [vmem:[%s3649_s10 + $0x50] sm:$0xff] }
  0x47   : > { %v556_v41 = vld [vmem:[%s3654_s20 + $0x48] sm:$0xff]  ;;  %v558_v47 = vld [vmem:[%s3654_s20 + $0x58] sm:$0xff]  ;;  %v557_v49 = vld [vmem:[%s3654_s20 + $0x50] sm:$0xff] }
  0x48   : > { %585 = vadd.xlane.f32.xlu1 %v566_v26  ;;  %581 = vadd.xlane.f32.xlu0 %v564_v27  ;;  %v572_v44 = vmul.f32 %v556_v41, %v540_v40  ;;  %v574_v50 = vmul.f32 %v558_v47, %v542_v46  ;;  %v573_v51 = vmul.f32 %v557_v49, %v541_v48  ;;  %v544_v52 = vld [vmem:[%s3649_s10 + $0x68] sm:$0xff]  ;;  %v543_v54 = vld [vmem:[%s3649_s10 + $0x60] sm:$0xff]  ;;  %v546_v58 = vld [vmem:[%s3649_s10 + $0x78] sm:$0xff] }
  0x49   : > { %v560_v53 = vld [vmem:[%s3654_s20 + $0x68] sm:$0xff]  ;;  %v559_v55 = vld [vmem:[%s3654_s20 + $0x60] sm:$0xff]  ;;  %v562_v59 = vld [vmem:[%s3654_s20 + $0x78] sm:$0xff] }
  0x4a   : > { %v576_v56 = vmul.f32 %v560_v53, %v544_v52  ;;  %v575_v57 = vmul.f32 %v559_v55, %v543_v54  ;;  %v545_v60 = vld [vmem:[%s3649_s10 + $0x70] sm:$0xff]  ;;  %v578_v62 = vmul.f32 %v562_v59, %v546_v58  ;;  %s3703_s10 = scalar_lea.vmem [#allocation3], %s4775_s8 }
  0x4b   : > { %v561_v61 = vld [vmem:[%s3654_s20 + $0x70] sm:$0xff] }
  0x4c   : > { %589 = vadd.xlane.f32.xlu1 %v568_v32  ;;  %587 = vadd.xlane.f32.xlu0 %v567_v33  ;;  %v577_v63 = vmul.f32 %v561_v61, %v545_v60 }
  0x50   : > { %593 = vadd.xlane.f32.xlu1 %v570_v38  ;;  %591 = vadd.xlane.f32.xlu0 %v569_v39 }
  0x54   : > { %597 = vadd.xlane.f32.xlu1 %v572_v44  ;;  %595 = vadd.xlane.f32.xlu0 %v571_v45 }
  0x58   : > { %601 = vadd.xlane.f32.xlu1 %v574_v50  ;;  %599 = vadd.xlane.f32.xlu0 %v573_v51 }
  0x5c   : > { %605 = vadd.xlane.f32.xlu1 %v576_v56  ;;  %603 = vadd.xlane.f32.xlu0 %v575_v57 }
  0x60   : > { %609 = vadd.xlane.f32.xlu1 %v578_v62  ;;  %607 = vadd.xlane.f32.xlu0 %v577_v63 }
  0xd1   : > { %v584_v2 = vpop.xlane.xlu1 %583  ;;  %v580_v6 = vpop.xlane.xlu0 %579 }
  0xd2   : > { %vm613_vm2 = vcmp.ge.f32.partialorder %v584_v2, 0.0  ;;  %v629_v5 = vmul.f32 0.01, %v584_v2  ;;  %vm611_vm3 = vcmp.ge.f32.partialorder %v580_v6, 0.0  ;;  %v627_v7 = vmul.f32 0.01, %v580_v6 }
  0xd4   : > { %v645_v8 = vsel %vm613_vm2, %v584_v2, %v629_v5  ;;  %v643_v10 = vsel %vm611_vm3, %v580_v6, %v627_v7 }
  0xd5   : > { %v666_v9 = vsel %vm661_vm1, %v645_v8, %v3696_v4  ;;  %v586_v11 = vpop.xlane.xlu1 %585  ;;  %v664_v12 = vsel %vm661_vm1, %v643_v10, %v3696_v4  ;;  %v582_v14 = vpop.xlane.xlu0 %581 }
  0xd6   : > { %683 = vst [vmem:[%s3703_s10 + $0x10] sm:$0xff] %v666_v9  ;;  %vm614_vm4 = vcmp.ge.f32.partialorder %v586_v11, 0.0  ;;  %v630_v13 = vmul.f32 0.01, %v586_v11  ;;  %681 = vst [vmem:[%s3703_s10] sm:$0xff] %v664_v12  ;;  %vm612_vm5 = vcmp.ge.f32.partialorder %v582_v14, 0.0 }
  0xd7   : > { %v628_v15 = vmul.f32 0.01, %v582_v14 }
  0xd8   : > { %v646_v16 = vsel %vm614_vm4, %v586_v11, %v630_v13 }
  0xd9   : > { %v667_v17 = vsel %vm661_vm1, %v646_v16, %v3696_v4  ;;  %v644_v18 = vsel %vm612_vm5, %v582_v14, %v628_v15  ;;  %v590_v19 = vpop.xlane.xlu1 %589  ;;  %v588_v22 = vpop.xlane.xlu0 %587 }
  0xda   : > { %684 = vst [vmem:[%s3703_s10 + $0x18] sm:$0xff] %v667_v17  ;;  %v665_v20 = vsel %vm661_vm1, %v644_v18, %v3696_v4  ;;  %vm616_vm6 = vcmp.ge.f32.partialorder %v590_v19, 0.0  ;;  %v632_v21 = vmul.f32 0.01, %v590_v19  ;;  %vm615_vm7 = vcmp.ge.f32.partialorder %v588_v22, 0.0 }
  0xdb   : > { %682 = vst [vmem:[%s3703_s10 + $0x8] sm:$0xff] %v665_v20  ;;  %v631_v23 = vmul.f32 0.01, %v588_v22 }
  0xdc   : > { %v648_v24 = vsel %vm616_vm6, %v590_v19, %v632_v21 }
  0xdd   : > { %v669_v25 = vsel %vm661_vm1, %v648_v24, %v3696_v4  ;;  %v647_v26 = vsel %vm615_vm7, %v588_v22, %v631_v23  ;;  %v594_v27 = vpop.xlane.xlu1 %593  ;;  %v592_v30 = vpop.xlane.xlu0 %591 }
  0xde   : > { %686 = vst [vmem:[%s3703_s10 + $0x28] sm:$0xff] %v669_v25  ;;  %v668_v28 = vsel %vm661_vm1, %v647_v26, %v3696_v4  ;;  %vm618_vm8 = vcmp.ge.f32.partialorder %v594_v27, 0.0  ;;  %v634_v29 = vmul.f32 0.01, %v594_v27  ;;  %vm617_vm9 = vcmp.ge.f32.partialorder %v592_v30, 0.0 }
  0xdf   : > { %685 = vst [vmem:[%s3703_s10 + $0x20] sm:$0xff] %v668_v28  ;;  %v633_v31 = vmul.f32 0.01, %v592_v30 }
  0xe0   : > { %v650_v32 = vsel %vm618_vm8, %v594_v27, %v634_v29 }
  0xe1   : > { %v671_v33 = vsel %vm661_vm1, %v650_v32, %v3696_v4  ;;  %v649_v34 = vsel %vm617_vm9, %v592_v30, %v633_v31  ;;  %v598_v35 = vpop.xlane.xlu1 %597  ;;  %v596_v38 = vpop.xlane.xlu0 %595 }
  0xe2   : > { %688 = vst [vmem:[%s3703_s10 + $0x38] sm:$0xff] %v671_v33  ;;  %v670_v36 = vsel %vm661_vm1, %v649_v34, %v3696_v4  ;;  %vm620_vm10 = vcmp.ge.f32.partialorder %v598_v35, 0.0  ;;  %v636_v37 = vmul.f32 0.01, %v598_v35  ;;  %vm619_vm11 = vcmp.ge.f32.partialorder %v596_v38, 0.0 }
  0xe3   : > { %687 = vst [vmem:[%s3703_s10 + $0x30] sm:$0xff] %v670_v36  ;;  %v635_v39 = vmul.f32 0.01, %v596_v38 }
  0xe4   : > { %v652_v40 = vsel %vm620_vm10, %v598_v35, %v636_v37 }
  0xe5   : > { %v673_v41 = vsel %vm661_vm1, %v652_v40, %v3696_v4  ;;  %v651_v42 = vsel %vm619_vm11, %v596_v38, %v635_v39  ;;  %v602_v43 = vpop.xlane.xlu1 %601  ;;  %v600_v46 = vpop.xlane.xlu0 %599 }
  0xe6   : > { %690 = vst [vmem:[%s3703_s10 + $0x48] sm:$0xff] %v673_v41  ;;  %v672_v44 = vsel %vm661_vm1, %v651_v42, %v3696_v4  ;;  %vm622_vm12 = vcmp.ge.f32.partialorder %v602_v43, 0.0  ;;  %v638_v45 = vmul.f32 0.01, %v602_v43  ;;  %vm621_vm13 = vcmp.ge.f32.partialorder %v600_v46, 0.0 }
  0xe7   : > { %689 = vst [vmem:[%s3703_s10 + $0x40] sm:$0xff] %v672_v44  ;;  %v637_v47 = vmul.f32 0.01, %v600_v46 }
  0xe8   : > { %v654_v48 = vsel %vm622_vm12, %v602_v43, %v638_v45 }
  0xe9   : > { %v675_v49 = vsel %vm661_vm1, %v654_v48, %v3696_v4  ;;  %v653_v50 = vsel %vm621_vm13, %v600_v46, %v637_v47  ;;  %v606_v51 = vpop.xlane.xlu1 %605  ;;  %v604_v54 = vpop.xlane.xlu0 %603 }
  0xea   : > { %692 = vst [vmem:[%s3703_s10 + $0x58] sm:$0xff] %v675_v49  ;;  %v674_v52 = vsel %vm661_vm1, %v653_v50, %v3696_v4  ;;  %vm624_vm14 = vcmp.ge.f32.partialorder %v606_v51, 0.0  ;;  %v640_v53 = vmul.f32 0.01, %v606_v51  ;;  %vm623_vm15 = vcmp.ge.f32.partialorder %v604_v54, 0.0 }
  0xeb   : > { %691 = vst [vmem:[%s3703_s10 + $0x50] sm:$0xff] %v674_v52  ;;  %v639_v55 = vmul.f32 0.01, %v604_v54 }
  0xec   : > { %v656_v56 = vsel %vm624_vm14, %v606_v51, %v640_v53 }
  0xed   : > { %v677_v57 = vsel %vm661_vm1, %v656_v56, %v3696_v4  ;;  %v655_v58 = vsel %vm623_vm15, %v604_v54, %v639_v55  ;;  %v610_v59 = vpop.xlane.xlu1 %609  ;;  %v608_v62 = vpop.xlane.xlu0 %607 }
  0xee   : > { %694 = vst [vmem:[%s3703_s10 + $0x68] sm:$0xff] %v677_v57  ;;  %v676_v60 = vsel %vm661_vm1, %v655_v58, %v3696_v4  ;;  %vm626_vm0 = vcmp.ge.f32.partialorder %v610_v59, 0.0  ;;  %v642_v61 = vmul.f32 0.01, %v610_v59  ;;  %vm625_vm2 = vcmp.ge.f32.partialorder %v608_v62, 0.0 }
  0xef   : > { %693 = vst [vmem:[%s3703_s10 + $0x60] sm:$0xff] %v676_v60  ;;  %v641_v63 = vmul.f32 0.01, %v608_v62 }
  0xf0   : > { %v658_v0 = vsel %vm626_vm0, %v610_v59, %v642_v61 }
  0xf1   : > { %v679_v2 = vsel %vm661_vm1, %v658_v0, %v3696_v4  ;;  %v657_v3 = vsel %vm625_vm2, %v608_v62, %v641_v63 }
  0xf2   : > { %696 = vst [vmem:[%s3703_s10 + $0x78] sm:$0xff] %v679_v2  ;;  %v678_v5 = vsel %vm661_vm1, %v657_v3, %v3696_v4 }
  0xf3   : > { %695 = vst [vmem:[%s3703_s10 + $0x70] sm:$0xff] %v678_v5 }
  0xf4 PF: > { %p2762_p3 = scmp.ne.s32.totalorder %s3457_s26, 0 }
  0xf5   : > { %v3484_v6 = vmov (!%p2762_p3), 0.0  }
  0xf6   : > { %700 = sbr.rel (%p2762_p3) target bundleno = 254 (0xfe), region = 94  ;;  %701 = vst [vmem:[#allocation2] sm:$0xff] (!%p2762_p3), %v3484_v6  ;;  %702 = vst [vmem:[#allocation2 + $0x8] sm:$0xff] (!%p2762_p3), %v3484_v6 }
  0xf7   : > { %703 = vst [vmem:[#allocation2 + $0x10] sm:$0xff] (!%p2762_p3), %v3484_v6  ;;  %704 = vst [vmem:[#allocation2 + $0x18] sm:$0xff] (!%p2762_p3), %v3484_v6 }
  0xf8   : > { %705 = vst [vmem:[#allocation2 + $0x20] sm:$0xff] (!%p2762_p3), %v3484_v6  ;;  %706 = vst [vmem:[#allocation2 + $0x28] sm:$0xff] (!%p2762_p3), %v3484_v6 }
  0xf9   : > { %707 = vst [vmem:[#allocation2 + $0x30] sm:$0xff] (!%p2762_p3), %v3484_v6  ;;  %708 = vst [vmem:[#allocation2 + $0x38] sm:$0xff] (!%p2762_p3), %v3484_v6 }
  0xfa   : > { %709 = vst [vmem:[#allocation2 + $0x40] sm:$0xff] (!%p2762_p3), %v3484_v6  ;;  %710 = vst [vmem:[#allocation2 + $0x48] sm:$0xff] (!%p2762_p3), %v3484_v6 }
  0xfb   : > { %711 = vst [vmem:[#allocation2 + $0x50] sm:$0xff] (!%p2762_p3), %v3484_v6  ;;  %712 = vst [vmem:[#allocation2 + $0x58] sm:$0xff] (!%p2762_p3), %v3484_v6 }
  0xfc   : > { %713 = vst [vmem:[#allocation2 + $0x60] sm:$0xff] (!%p2762_p3), %v3484_v6  ;;  %714 = vst [vmem:[#allocation2 + $0x68] sm:$0xff] (!%p2762_p3), %v3484_v6 }
  0xfd   : > { %715 = vst [vmem:[#allocation2 + $0x70] sm:$0xff] %v3484_v6  ;;  %716 = vst [vmem:[#allocation2 + $0x78] sm:$0xff] %v3484_v6 }
  0xfe PF: > { %v717_v1 = vld [vmem:[%s3656_s22] sm:$0xff]  ;;  %s4776_s12 = sshll.u32 %s3457_s26, 7  ;;  %v718_v31 = vld [vmem:[%s3656_s22 + $0x8] sm:$0xff]  ;;  %v719_v33 = vld [vmem:[%s3656_s22 + $0x10] sm:$0xff]  ;;  %p943_p4 = scmp.eq.s32.totalorder %s3457_s26, 1 }
  0xff   : > { %v725_v4 = vld [vmem:[%s3656_s22 + $0x40] sm:$0xff]  ;;  %s3771_s15 = scalar_lea.vmem [#allocation3], %s4776_s12  ;;  %3022 = vmatprep.mubr.f32.mxu0 %v717_v1  ;;  %v726_v32 = vld [vmem:[%s3656_s22 + $0x48] sm:$0xff]  ;;  %v727_v34 = vld [vmem:[%s3656_s22 + $0x50] sm:$0xff] }
 0x100   : > { %v734_v7 = vld [vmem:[%s3771_s15] sm:$0xff]  ;;  %v735_v8 = vld [vmem:[%s3771_s15 + $0x8] sm:$0xff]  ;;  %v736_v9 = vld [vmem:[%s3771_s15 + $0x10] sm:$0xff]  ;;  %3034 = vmatprep.mubr.f32.mxu1 %v725_v4  ;;  %p3808_p5 = pnand %p943_p4, %p480_p11 }
 0x101   : > { %v3102_v10 = vpack.c.bf16 %v735_v8, %v734_v7  ;;  %v737_v11 = vld [vmem:[%s3771_s15 + $0x18] sm:$0xff]  ;;  %v738_v13 = vld [vmem:[%s3771_s15 + $0x20] sm:$0xff]  ;;  %v739_v14 = vld [vmem:[%s3771_s15 + $0x28] sm:$0xff]  ;;  %s4778_s18 = sshll.u32 (!%p3808_p5), %s3461_s27, 7 }
 0x102   : > { %v3106_v12 = vpack.c.bf16 %v737_v11, %v736_v9  ;;  %v3110_v15 = vpack.c.bf16 %v739_v14, %v738_v13  ;;  %v740_v16 = vld [vmem:[%s3771_s15 + $0x30] sm:$0xff]  ;;  %v741_v17 = vld [vmem:[%s3771_s15 + $0x38] sm:$0xff]  ;;  %v742_v19 = vld [vmem:[%s3771_s15 + $0x40] sm:$0xff]  ;;  %s3818_s21 = scalar_lea.vmem (!%p3808_p5), [#allocation3], %s4778_s18 }
 0x103   : > { %3103 = vmatprep.subr.bf16.mxu0 %v3102_v10  ;;  %3294 = vmatprep.subr.bf16.mxu1 %v3102_v10  ;;  %v3114_v18 = vpack.c.bf16 %v741_v17, %v740_v16  ;;  %v743_v20 = vld [vmem:[%s3771_s15 + $0x48] sm:$0xff]  ;;  %v744_v22 = vld [vmem:[%s3771_s15 + $0x50] sm:$0xff]  ;;  %v745_v23 = vld [vmem:[%s3771_s15 + $0x58] sm:$0xff] }
 0x104   : > { %3105 = vmatpush3.bf16.msra.mxu0 %v3102_v10  ;;  %3302 = vmatpush3.bf16.msra.mxu1 %v3102_v10  ;;  %v3118_v21 = vpack.c.bf16 %v743_v20, %v742_v19  ;;  %v3122_v24 = vpack.c.bf16 %v745_v23, %v744_v22  ;;  %v746_v25 = vld [vmem:[%s3771_s15 + $0x60] sm:$0xff]  ;;  %v747_v26 = vld [vmem:[%s3771_s15 + $0x68] sm:$0xff]  ;;  %v748_v28 = vld [vmem:[%s3771_s15 + $0x70] sm:$0xff] }
 0x105   : > { %3107 = vmatprep.subr.bf16.mxu0 %v3106_v12  ;;  %3295 = vmatprep.subr.bf16.mxu1 %v3106_v12  ;;  %v3126_v27 = vpack.c.bf16 %v747_v26, %v746_v25  ;;  %v749_v29 = vld [vmem:[%s3771_s15 + $0x78] sm:$0xff]  ;;  %v721_v37 = vld [vmem:[%s3656_s22 + $0x20] sm:$0xff]  ;;  %v722_v39 = vld [vmem:[%s3656_s22 + $0x28] sm:$0xff] }
 0x106   : > { %v3130_v30 = vpack.c.bf16 %v749_v29, %v748_v28  ;;  %v720_v35 = vld [vmem:[%s3656_s22 + $0x18] sm:$0xff]  ;;  %v729_v38 = vld [vmem:[%s3656_s22 + $0x60] sm:$0xff]  ;;  %v730_v40 = vld [vmem:[%s3656_s22 + $0x68] sm:$0xff] }
 0x107   : > { %v728_v36 = vld [vmem:[%s3656_s22 + $0x58] sm:$0xff]  ;;  %v723_v41 = vld [vmem:[%s3656_s22 + $0x30] sm:$0xff]  ;;  %v751_v45 = vld [vmem:[#allocation2 + $0x8] sm:$0xff] }
 0x108   : > { %3109 = vmatpush3.bf16.msra.mxu0 %v3106_v12  ;;  %3303 = vmatpush3.bf16.msra.mxu1 %v3106_v12  ;;  %v731_v42 = vld [vmem:[%s3656_s22 + $0x70] sm:$0xff]  ;;  %v724_v43 = vld [vmem:[%s3656_s22 + $0x38] sm:$0xff]  ;;  %v759_v46 = vld [vmem:[#allocation2 + $0x48] sm:$0xff] }
 0x109   : > { %3111 = vmatprep.subr.bf16.mxu0 %v3110_v15  ;;  %3296 = vmatprep.subr.bf16.mxu1 %v3110_v15  ;;  %v732_v44 = vld [vmem:[%s3656_s22 + $0x78] sm:$0xff]  ;;  %v750_v47 = vld [vmem:[#allocation2] sm:$0xff]  ;;  %v752_v59 = vld [vmem:[#allocation2 + $0x10] sm:$0xff] }
 0x10a   : > { %v758_v48 = vld [vmem:[#allocation2 + $0x40] sm:$0xff]  ;;  %v753_v57 = vld [vmem:[#allocation2 + $0x18] sm:$0xff]  ;;  %v760_v60 = vld [vmem:[#allocation2 + $0x50] sm:$0xff] }
 0x10b   : > { %v761_v58 = vld [vmem:[#allocation2 + $0x58] sm:$0xff]  ;;  %v755_v1 = vld [vmem:[#allocation2 + $0x28] sm:$0xff]  ;;  %v754_v7 = vld [vmem:[#allocation2 + $0x20] sm:$0xff] }
 0x10c   : > { %3113 = vmatpush3.bf16.msra.mxu0 %v3110_v15  ;;  %3304 = vmatpush3.bf16.msra.mxu1 %v3110_v15  ;;  %v763_v4 = vld [vmem:[#allocation2 + $0x68] sm:$0xff]  ;;  %v762_v8 = vld [vmem:[#allocation2 + $0x60] sm:$0xff]  ;;  %v757_v17 = vld [vmem:[#allocation2 + $0x38] sm:$0xff] }
 0x10d   : > { %3115 = vmatprep.subr.bf16.mxu0 %v3114_v18  ;;  %3297 = vmatprep.subr.bf16.mxu1 %v3114_v18  ;;  %v756_v19 = vld [vmem:[#allocation2 + $0x30] sm:$0xff] }
 0x10e   : > { %v764_v20 = vld [vmem:[#allocation2 + $0x70] sm:$0xff] }
 0x110   : > { %3117 = vmatpush3.bf16.msra.mxu0 %v3114_v18  ;;  %3305 = vmatpush3.bf16.msra.mxu1 %v3114_v18  ;;  %v765_v18 = vld [vmem:[#allocation2 + $0x78] sm:$0xff] }
 0x111   : > { %3119 = vmatprep.subr.bf16.mxu0 %v3118_v21  ;;  %3298 = vmatprep.subr.bf16.mxu1 %v3118_v21 }
 0x114   : > { %3121 = vmatpush3.bf16.msra.mxu0 %v3118_v21  ;;  %3306 = vmatpush3.bf16.msra.mxu1 %v3118_v21 }
 0x115   : > { %3123 = vmatprep.subr.bf16.mxu0 %v3122_v24  ;;  %3299 = vmatprep.subr.bf16.mxu1 %v3122_v24 }
 0x118   : > { %3125 = vmatpush3.bf16.msra.mxu0 %v3122_v24  ;;  %3307 = vmatpush3.bf16.msra.mxu1 %v3122_v24 }
 0x119   : > { %3127 = vmatprep.subr.bf16.mxu0 %v3126_v27  ;;  %3300 = vmatprep.subr.bf16.mxu1 %v3126_v27 }
 0x11c   : > { %3129 = vmatpush3.bf16.msra.mxu0 %v3126_v27  ;;  %3308 = vmatpush3.bf16.msra.mxu1 %v3126_v27 }
 0x11d   : > { %3131 = vmatprep.subr.bf16.mxu0 %v3130_v30  ;;  %3301 = vmatprep.subr.bf16.mxu1 %v3130_v30 }
 0x120   : > { %3133 = vmatpush3.bf16.msra.mxu0 %v3130_v30  ;;  %3309 = vmatpush3.bf16.msra.mxu1 %v3130_v30 }
 0x123   : > { %3023 = vmatmul.mubr.f32.vlgmr.msra.gmra.mrb[0].mxu0 %v718_v31  ;;  %3035 = vmatmul.mubr.f32.vlgmr.msra.gmra.mrb[0].mxu1 %v726_v32  ;;  %v3485_v31 = vmov (!%p3808_p5), 0  }
 0x124   : > { %3025 = vmatprep.mubr.f32.mxu0 %v719_v33  ;;  %3037 = vmatprep.mubr.f32.mxu1 %v727_v34 }
 0x125   : > { %3405 = vset.pattern.permute.xlu1 (!%p3808_p5), %v3485_v31  ;;  %3404 = vset.pattern.permute.xlu0 (!%p3808_p5), %v3485_v31 }
 0x127   : > { %3026 = vmatmul.mubr.f32.gmra.mrb[2].mxu0 %v720_v35  ;;  %3038 = vmatmul.mubr.f32.gmra.mrb[2].mxu1 %v728_v36 }
 0x128   : > { %3028 = vmatprep.mubr.f32.mxu0 %v721_v37  ;;  %3040 = vmatprep.mubr.f32.mxu1 %v729_v38 }
 0x12b   : > { %3029 = vmatmul.mubr.f32.gmra.mrb[4].mxu0 %v722_v39  ;;  %3041 = vmatmul.mubr.f32.gmra.mrb[4].mxu1 %v730_v40 }
 0x12c   : > { %3031 = vmatprep.mubr.f32.mxu0 %v723_v41  ;;  %3043 = vmatprep.mubr.f32.mxu1 %v731_v42 }
 0x12f   : > { %3032 = vmatmul.mubr.f32.gmra.mrb[6].mxu0 %v724_v43  ;;  %3044 = vmatmul.mubr.f32.gmra.mrb[6].mxu1 %v732_v44 }
 0x1f6   : > { %v3024_v49 = vpop.f32.mrb[0].mxu0  ;;  %v3036_v50 = vpop.f32.mrb[0].mxu1 }
 0x1f7   : > { %v912_v51 = vadd.f32 %v3024_v49, %v751_v45  ;;  %v920_v52 = vadd.f32 %v3036_v50, %v759_v46  ;;  %v832_v53 = vpop.f32.mrb[1].mxu0  ;;  %v872_v54 = vpop.f32.mrb[1].mxu1  ;;  %v964_v46 = vlaneseq (!%p3808_p5)  ;;  %v967_v49 = vld [vmem:[%s3818_s21] sm:$0xff] (!%p3808_p5) }
 0x1f8   : > { %v911_v55 = vadd.f32 %v832_v53, %v750_v47  ;;  %v919_v56 = vadd.f32 %v872_v54, %v758_v48  ;;  %v969_v48 = vld [vmem:[%s3818_s21 + $0x10] sm:$0xff] (!%p3808_p5)  ;;  %v968_v53 = vld [vmem:[%s3818_s21 + $0x8] sm:$0xff] (!%p3808_p5) }
 0x1f9   : > { %928 = vst [vmem:[#allocation2 + $0x8] sm:$0xff] %v912_v51  ;;  %936 = vst [vmem:[#allocation2 + $0x48] sm:$0xff] %v920_v52  ;;  %v3814_v47 = vand.u32 (!%p3808_p5), 127, %v964_v46  ;;  %v970_v52 = vld [vmem:[%s3818_s21 + $0x18] sm:$0xff] (!%p3808_p5) }
 0x1fa   : > { %927 = vst [vmem:[#allocation2] sm:$0xff] %v911_v55  ;;  %935 = vst [vmem:[#allocation2 + $0x40] sm:$0xff] %v919_v56  ;;  %v3027_v61 = vpop.f32.mrb[2].mxu0  ;;  %v3039_v62 = vpop.f32.mrb[2].mxu1 }
 0x1fb   : > { %v914_v63 = vadd.f32 %v3027_v61, %v753_v57  ;;  %v922_v0 = vadd.f32 %v3039_v62, %v761_v58  ;;  %v842_v2 = vpop.f32.mrb[3].mxu0  ;;  %v882_v3 = vpop.f32.mrb[3].mxu1  ;;  %vm984_vm1 = vcmp.eq.s32.totalorder (!%p3808_p5), %v3814_v47, 3  ;;  %vm983_vm3 = vcmp.eq.s32.totalorder (!%p3808_p5), %v3814_v47, 2  ;;  %v971_v61 = vld [vmem:[%s3818_s21 + $0x20] sm:$0xff] (!%p3808_p5) }
 0x1fc   : > { %v913_v5 = vadd.f32 %v842_v2, %v752_v59  ;;  %v921_v6 = vadd.f32 %v882_v3, %v760_v60  ;;  %v987_v50 = vsel (!%p3808_p5), %vm984_vm1, 1.0, %v969_v48  ;;  %v985_v51 = vsel (!%p3808_p5), %vm984_vm1, 1.0, %v967_v49  ;;  %v972_v60 = vld [vmem:[%s3818_s21 + $0x28] sm:$0xff] (!%p3808_p5) }
 0x1fd   : > { %930 = vst [vmem:[#allocation2 + $0x18] sm:$0xff] %v914_v63  ;;  %938 = vst [vmem:[#allocation2 + $0x58] sm:$0xff] %v922_v0  ;;  %v988_v58 = vsel (!%p3808_p5), %vm984_vm1, 1.0, %v970_v52  ;;  %v986_v59 = vsel (!%p3808_p5), %vm984_vm1, 1.0, %v968_v53  ;;  %v990_v3 = vsel (!%p3808_p5), %vm984_vm1, 1.0, %v972_v60 }
 0x1fe   : > { %929 = vst [vmem:[#allocation2 + $0x10] sm:$0xff] %v913_v5  ;;  %937 = vst [vmem:[#allocation2 + $0x50] sm:$0xff] %v921_v6  ;;  %v3030_v9 = vpop.f32.mrb[4].mxu0  ;;  %v3042_v10 = vpop.f32.mrb[4].mxu1  ;;  %v989_v5 = vsel (!%p3808_p5), %vm984_vm1, 1.0, %v971_v61  ;;  %v974_v6 = vld [vmem:[%s3818_s21 + $0x38] sm:$0xff] (!%p3808_p5) }
 0x1ff   : > { %v916_v11 = vadd.f32 %v3030_v9, %v755_v1  ;;  %v924_v12 = vadd.f32 %v3042_v10, %v763_v4  ;;  %v852_v13 = vpop.f32.mrb[5].mxu0  ;;  %v892_v14 = vpop.f32.mrb[5].mxu1  ;;  %v973_v1 = vld [vmem:[%s3818_s21 + $0x30] sm:$0xff] (!%p3808_p5)  ;;  %v992_v10 = vsel (!%p3808_p5), %vm984_vm1, 1.0, %v974_v6 }
 0x200   : > { %v915_v15 = vadd.f32 %v852_v13, %v754_v7  ;;  %v923_v16 = vadd.f32 %v892_v14, %v762_v8  ;;  %947 = sbr.rel (%p3808_p5) target bundleno = 676 (0x2a4), region = 98  ;;  %v949_v33 = vld [vmem:[#allocation2 + $0x8] sm:$0xff] (!%p3808_p5)  ;;  %v975_v13 = vld [vmem:[%s3818_s21 + $0x40] sm:$0xff] (!%p3808_p5) }
 0x201   : > { %932 = vst [vmem:[#allocation2 + $0x28] sm:$0xff] %v916_v11  ;;  %940 = vst [vmem:[#allocation2 + $0x68] sm:$0xff] %v924_v12  ;;  %v948_v30 = vld [vmem:[#allocation2] sm:$0xff] (!%p3808_p5)  ;;  %v957_v38 = vld [vmem:[#allocation2 + $0x48] sm:$0xff] (!%p3808_p5)  ;;  %v991_v11 = vsel (!%p3808_p5), %vm984_vm1, 1.0, %v973_v1 }
 0x202   : > { %931 = vst [vmem:[#allocation2 + $0x20] sm:$0xff] %v915_v15  ;;  %939 = vst [vmem:[#allocation2 + $0x60] sm:$0xff] %v923_v16  ;;  %v3033_v21 = vpop.f32.mrb[6].mxu0  ;;  %v3045_v22 = vpop.f32.mrb[6].mxu1  ;;  %1003 = vperm.xlu0 (!%p3808_p5), %3404, %v948_v30   ;;  %v956_v39 = vld [vmem:[#allocation2 + $0x40] sm:$0xff] (!%p3808_p5)  ;;  %v976_v12 = vld [vmem:[%s3818_s21 + $0x48] sm:$0xff] (!%p3808_p5) }
 0x203   : > { %v918_v23 = vadd.f32 %v3033_v21, %v757_v17  ;;  %v926_v24 = vadd.f32 %v3045_v22, %v765_v18  ;;  %v862_v25 = vpop.f32.mrb[7].mxu0  ;;  %v902_v26 = vpop.f32.mrb[7].mxu1  ;;  %v994_v18 = vsel (!%p3808_p5), %vm984_vm1, 1.0, %v976_v12  ;;  %v977_v21 = vld [vmem:[%s3818_s21 + $0x50] sm:$0xff] (!%p3808_p5) }
 0x204   : > { %v917_v27 = vadd.f32 %v862_v25, %v756_v19  ;;  %v925_v28 = vadd.f32 %v902_v26, %v764_v20  ;;  %v951_v32 = vld [vmem:[#allocation2 + $0x18] sm:$0xff] (!%p3808_p5)  ;;  %v993_v19 = vsel (!%p3808_p5), %vm984_vm1, 1.0, %v975_v13 }
 0x205   : > { %934 = vst [vmem:[#allocation2 + $0x38] sm:$0xff] %v918_v23  ;;  %942 = vst [vmem:[#allocation2 + $0x78] sm:$0xff] %v926_v24  ;;  %v950_v29 = vld [vmem:[#allocation2 + $0x10] sm:$0xff] (!%p3808_p5)  ;;  %v959_v40 = vld [vmem:[#allocation2 + $0x58] sm:$0xff] (!%p3808_p5) }
 0x206   : > { %933 = vst [vmem:[#allocation2 + $0x30] sm:$0xff] %v917_v27  ;;  %941 = vst [vmem:[#allocation2 + $0x70] sm:$0xff] %v925_v28  ;;  %1013 = vperm.xlu1 (!%p3808_p5), %3405, %v950_v29   ;;  %1008 = vperm.xlu0 (!%p3808_p5), %3404, %v949_v33   ;;  %v958_v41 = vld [vmem:[#allocation2 + $0x50] sm:$0xff] (!%p3808_p5)  ;;  %v978_v20 = vld [vmem:[%s3818_s21 + $0x58] sm:$0xff] (!%p3808_p5)  ;;  %v995_v27 = vsel (!%p3808_p5), %vm984_vm1, 1.0, %v977_v21 }
 0x207   : > { %v996_v26 = vsel %vm984_vm1, 1.0, %v978_v20  ;;  %v980_v28 = vld [vmem:[%s3818_s21 + $0x68] sm:$0xff]  ;;  %v979_v29 = vld [vmem:[%s3818_s21 + $0x60] sm:$0xff] }
 0x208   : > { %v953_v34 = vld [vmem:[#allocation2 + $0x28] sm:$0xff] }
 0x209   : > { %v952_v35 = vld [vmem:[#allocation2 + $0x20] sm:$0xff]  ;;  %v961_v42 = vld [vmem:[#allocation2 + $0x68] sm:$0xff] }
 0x20a   : > { %1018 = vperm.xlu1 %3405, %v951_v32   ;;  %1023 = vperm.xlu0 %3404, %v952_v35   ;;  %v960_v43 = vld [vmem:[#allocation2 + $0x60] sm:$0xff]  ;;  %v997_v35 = vsel %vm984_vm1, 1.0, %v979_v29 }
 0x20c   : > { %v955_v36 = vld [vmem:[#allocation2 + $0x38] sm:$0xff] }
 0x20d   : > { %v954_v37 = vld [vmem:[#allocation2 + $0x30] sm:$0xff]  ;;  %v963_v44 = vld [vmem:[#allocation2 + $0x78] sm:$0xff] }
 0x20e   : > { %1028 = vperm.xlu1 %3405, %v953_v34   ;;  %1033 = vperm.xlu0 %3404, %v954_v37   ;;  %v962_v45 = vld [vmem:[#allocation2 + $0x70] sm:$0xff]  ;;  %v998_v34 = vsel %vm984_vm1, 1.0, %v980_v28 }
 0x20f   : > { %v981_v37 = vld [vmem:[%s3818_s21 + $0x70] sm:$0xff] }
 0x212   : > { %1038 = vperm.xlu1 %3405, %v955_v36   ;;  %1043 = vperm.xlu0 %3404, %v956_v39   ;;  %v982_v36 = vld [vmem:[%s3818_s21 + $0x78] sm:$0xff] }
 0x216   : > { %1048 = vperm.xlu1 %3405, %v957_v38   ;;  %1053 = vperm.xlu0 %3404, %v958_v41  }
 0x21a   : > { %1058 = vperm.xlu1 %3405, %v959_v40   ;;  %1063 = vperm.xlu0 %3404, %v960_v43   ;;  %v999_v43 = vsel %vm984_vm1, 1.0, %v981_v37 }
 0x21e   : > { %1068 = vperm.xlu1 %3405, %v961_v42   ;;  %1073 = vperm.xlu0 %3404, %v962_v45   ;;  %v1000_v42 = vsel %vm984_vm1, 1.0, %v982_v36 }
 0x222   : > { %1078 = vperm.xlu1 %3405, %v963_v44  }
 0x281   : > { %v1004_v55 = vpop.permute.xlu0 %1003 }
 0x282   : > { %v1081_v57 = vsel %vm983_vm3, %v1004_v55, %v985_v51 }
 0x283   : > { %1097 = vst [vmem:[%s3818_s21] sm:$0xff] %v1081_v57 }
 0x285   : > { %v1014_v54 = vpop.permute.xlu1 %1013  ;;  %v1009_v63 = vpop.permute.xlu0 %1008 }
 0x286   : > { %v1083_v56 = vsel %vm983_vm3, %v1014_v54, %v987_v50  ;;  %v1082_v2 = vsel %vm983_vm3, %v1009_v63, %v986_v59 }
 0x287   : > { %1099 = vst [vmem:[%s3818_s21 + $0x10] sm:$0xff] %v1083_v56  ;;  %1098 = vst [vmem:[%s3818_s21 + $0x8] sm:$0xff] %v1082_v2 }
 0x289   : > { %v1019_v62 = vpop.permute.xlu1 %1018  ;;  %v1024_v7 = vpop.permute.xlu0 %1023 }
 0x28a   : > { %v1084_v0 = vsel %vm983_vm3, %v1019_v62, %v988_v58  ;;  %v1085_v9 = vsel %vm983_vm3, %v1024_v7, %v989_v5 }
 0x28b   : > { %1100 = vst [vmem:[%s3818_s21 + $0x18] sm:$0xff] %v1084_v0  ;;  %1101 = vst [vmem:[%s3818_s21 + $0x20] sm:$0xff] %v1085_v9 }
 0x28d   : > { %v1029_v4 = vpop.permute.xlu1 %1028  ;;  %v1034_v15 = vpop.permute.xlu0 %1033 }
 0x28e   : > { %v1086_v8 = vsel %vm983_vm3, %v1029_v4, %v990_v3  ;;  %v1087_v17 = vsel %vm983_vm3, %v1034_v15, %v991_v11 }
 0x28f   : > { %1102 = vst [vmem:[%s3818_s21 + $0x28] sm:$0xff] %v1086_v8  ;;  %1103 = vst [vmem:[%s3818_s21 + $0x30] sm:$0xff] %v1087_v17 }
 0x291   : > { %v1039_v14 = vpop.permute.xlu1 %1038  ;;  %v1044_v23 = vpop.permute.xlu0 %1043 }
 0x292   : > { %v1088_v16 = vsel %vm983_vm3, %v1039_v14, %v992_v10  ;;  %v1089_v25 = vsel %vm983_vm3, %v1044_v23, %v993_v19 }
 0x293   : > { %1104 = vst [vmem:[%s3818_s21 + $0x38] sm:$0xff] %v1088_v16  ;;  %1105 = vst [vmem:[%s3818_s21 + $0x40] sm:$0xff] %v1089_v25 }
 0x295   : > { %v1049_v22 = vpop.permute.xlu1 %1048  ;;  %v1054_v31 = vpop.permute.xlu0 %1053 }
 0x296   : > { %v1090_v24 = vsel %vm983_vm3, %v1049_v22, %v994_v18  ;;  %v1091_v33 = vsel %vm983_vm3, %v1054_v31, %v995_v27 }
 0x297   : > { %1106 = vst [vmem:[%s3818_s21 + $0x48] sm:$0xff] %v1090_v24  ;;  %1107 = vst [vmem:[%s3818_s21 + $0x50] sm:$0xff] %v1091_v33 }
 0x299   : > { %v1059_v30 = vpop.permute.xlu1 %1058  ;;  %v1064_v39 = vpop.permute.xlu0 %1063 }
 0x29a   : > { %v1092_v32 = vsel %vm983_vm3, %v1059_v30, %v996_v26  ;;  %v1093_v41 = vsel %vm983_vm3, %v1064_v39, %v997_v35 }
 0x29b   : > { %1108 = vst [vmem:[%s3818_s21 + $0x58] sm:$0xff] %v1092_v32  ;;  %1109 = vst [vmem:[%s3818_s21 + $0x60] sm:$0xff] %v1093_v41 }
 0x29d   : > { %v1069_v38 = vpop.permute.xlu1 %1068  ;;  %v1074_v45 = vpop.permute.xlu0 %1073 }
 0x29e   : > { %v1094_v40 = vsel %vm983_vm3, %v1069_v38, %v998_v34  ;;  %v1095_v48 = vsel %vm983_vm3, %v1074_v45, %v999_v43 }
 0x29f   : > { %1110 = vst [vmem:[%s3818_s21 + $0x68] sm:$0xff] %v1094_v40  ;;  %1111 = vst [vmem:[%s3818_s21 + $0x70] sm:$0xff] %v1095_v48 }
 0x2a1   : > { %v1079_v44 = vpop.permute.xlu1 %1078 }
 0x2a2   : > { %v1096_v46 = vsel %vm983_vm3, %v1079_v44, %v1000_v42 }
 0x2a3   : > { %1112 = vst [vmem:[%s3818_s21 + $0x78] sm:$0xff] %v1096_v46 }
 0x2a4 PF: > { %p1113_p6 = scmp.eq.s32.totalorder %s3465_s28, 1 }
 0x2a6   : > { %p1114_p7 = pnand %p1113_p6, %p943_p4 }
 0x2a7   : > { %v1120_v49 = vld [vmem:[#allocation2 + $0x10] sm:$0xff] (!%p1114_p7)  ;;  %v1118_v50 = vld [vmem:[#allocation2] sm:$0xff] (!%p1114_p7)  ;;  %v3486_v51 = vmov (!%p1114_p7), 3   ;;  %v1121_v52 = vld [vmem:[#allocation2 + $0x18] sm:$0xff] (!%p1114_p7)  ;;  %v3487_v2 = vmov (!%p1114_p7), 2   ;;  %v1134_v12 = vlaneseq (!%p1114_p7)  ;;  %s4779_s22 = sshll.u32 (!%p1114_p7), %s3461_s27, 7 }
 0x2a8   : > { %1117 = sbr.rel (%p1114_p7) target bundleno = 872 (0x368), region = 102  ;;  %3407 = vset.pattern.permute.xlu1 (!%p1114_p7), %v3486_v51  ;;  %3406 = vset.pattern.permute.xlu0 (!%p1114_p7), %v3486_v51  ;;  %v1119_v53 = vld [vmem:[#allocation2 + $0x8] sm:$0xff] (!%p1114_p7)  ;;  %v1122_v54 = vld [vmem:[#allocation2 + $0x20] sm:$0xff] (!%p1114_p7)  ;;  %v1129_v59 = vld [vmem:[#allocation2 + $0x58] sm:$0xff] (!%p1114_p7)  ;;  %s3938_s23 = scalar_lea.vmem (!%p1114_p7), [#allocation3], %s4779_s22 }
 0x2a9   : > { %1184 = vperm.xlu1 (!%p1114_p7), %3407, %v1120_v49   ;;  %1174 = vperm.xlu0 (!%p1114_p7), %3406, %v1118_v50   ;;  %v1123_v47 = vld [vmem:[#allocation2 + $0x28] sm:$0xff] (!%p1114_p7)  ;;  %v1125_v55 = vld [vmem:[#allocation2 + $0x38] sm:$0xff] (!%p1114_p7)  ;;  %v1126_v58 = vld [vmem:[#allocation2 + $0x40] sm:$0xff] (!%p1114_p7)  ;;  %v3929_v15 = vand.u32 (!%p1114_p7), 127, %v1134_v12 }
 0x2aa   : > { %v1124_v56 = vld [vmem:[#allocation2 + $0x30] sm:$0xff] (!%p1114_p7)  ;;  %v1127_v57 = vld [vmem:[#allocation2 + $0x48] sm:$0xff] (!%p1114_p7)  ;;  %v1130_v62 = vld [vmem:[#allocation2 + $0x60] sm:$0xff] (!%p1114_p7) }
 0x2ab   : > { %v1128_v60 = vld [vmem:[#allocation2 + $0x50] sm:$0xff] (!%p1114_p7)  ;;  %v1131_v61 = vld [vmem:[#allocation2 + $0x68] sm:$0xff] (!%p1114_p7)  ;;  %v1133_v63 = vld [vmem:[#allocation2 + $0x78] sm:$0xff] (!%p1114_p7)  ;;  %vm1155_vm4 = vcmp.eq.s32.totalorder (!%p1114_p7), %v3929_v15, 6  ;;  %vm1154_vm5 = vcmp.eq.s32.totalorder (!%p1114_p7), %v3929_v15, 5  ;;  %vm1153_vm6 = vcmp.eq.s32.totalorder (!%p1114_p7), %v3929_v15, 4 }
 0x2ac   : > { %v1132_v0 = vld [vmem:[#allocation2 + $0x70] sm:$0xff] (!%p1114_p7)  ;;  %v1137_v18 = vld [vmem:[%s3938_s23] sm:$0xff] (!%p1114_p7)  ;;  %v1138_v19 = vld [vmem:[%s3938_s23 + $0x8] sm:$0xff] (!%p1114_p7) }
 0x2ad   : > { %1189 = vperm.xlu1 (!%p1114_p7), %3407, %v1121_v52   ;;  %1179 = vperm.xlu0 (!%p1114_p7), %3406, %v1119_v53   ;;  %v1156_v22 = vsel (!%p1114_p7), %vm1155_vm4, 1.0, %v1137_v18  ;;  %v1157_v23 = vsel (!%p1114_p7), %vm1155_vm4, 1.0, %v1138_v19  ;;  %v1139_v24 = vld [vmem:[%s3938_s23 + $0x10] sm:$0xff] (!%p1114_p7)  ;;  %v1140_v25 = vld [vmem:[%s3938_s23 + $0x18] sm:$0xff] (!%p1114_p7)  ;;  %v1142_v34 = vld [vmem:[%s3938_s23 + $0x28] sm:$0xff] (!%p1114_p7) }
 0x2ae   : > { %v1158_v30 = vsel (!%p1114_p7), %vm1155_vm4, 1.0, %v1139_v24  ;;  %v1159_v31 = vsel (!%p1114_p7), %vm1155_vm4, 1.0, %v1140_v25  ;;  %v1141_v35 = vld [vmem:[%s3938_s23 + $0x20] sm:$0xff] (!%p1114_p7)  ;;  %v1161_v40 = vsel (!%p1114_p7), %vm1155_vm4, 1.0, %v1142_v34  ;;  %v1144_v44 = vld [vmem:[%s3938_s23 + $0x38] sm:$0xff] (!%p1114_p7)  ;;  %v1143_v45 = vld [vmem:[%s3938_s23 + $0x30] sm:$0xff] (!%p1114_p7) }
 0x2af   : > { %v1160_v41 = vsel %vm1155_vm4, 1.0, %v1141_v35  ;;  %v1163_v51 = vsel %vm1155_vm4, 1.0, %v1144_v44 }
 0x2b1   : > { %1199 = vperm.xlu1 %3407, %v1123_v47   ;;  %1194 = vperm.xlu0 %3406, %v1122_v54  }
 0x2b5   : > { %1209 = vperm.xlu1 %3407, %v1125_v55   ;;  %1204 = vperm.xlu0 %3406, %v1124_v56  }
 0x2b9   : > { %1219 = vperm.xlu1 %3407, %v1127_v57   ;;  %1214 = vperm.xlu0 %3406, %v1126_v58  }
 0x2bd   : > { %1229 = vperm.xlu1 %3407, %v1129_v59   ;;  %1224 = vperm.xlu0 %3406, %v1128_v60  }
 0x2c1   : > { %1239 = vperm.xlu1 %3407, %v1131_v61   ;;  %1234 = vperm.xlu0 %3406, %v1130_v62  }
 0x2c5   : > { %1249 = vperm.xlu1 %3407, %v1133_v63   ;;  %1244 = vperm.xlu0 %3406, %v1132_v0  }
 0x2c9   : > { %3409 = vset.pattern.permute.xlu1 %v3487_v2  ;;  %3408 = vset.pattern.permute.xlu0 %v3487_v2  ;;  %v1147_v2 = vld [vmem:[%s3938_s23 + $0x50] sm:$0xff] }
 0x2ca   : > { %1273 = vperm.xlu1 %3409, %v1119_v53   ;;  %1269 = vperm.xlu0 %3408, %v1118_v50  }
 0x2ce   : > { %1277 = vperm.xlu1 %3409, %v1120_v49   ;;  %1281 = vperm.xlu0 %3408, %v1121_v52   ;;  %v1162_v52 = vsel %vm1155_vm4, 1.0, %v1143_v45 }
 0x2d2   : > { %1285 = vperm.xlu1 %3409, %v1122_v54   ;;  %1289 = vperm.xlu0 %3408, %v1123_v47   ;;  %v1146_v54 = vld [vmem:[%s3938_s23 + $0x48] sm:$0xff] }
 0x2d6   : > { %1293 = vperm.xlu1 %3409, %v1124_v56   ;;  %1297 = vperm.xlu0 %3408, %v1125_v55   ;;  %v1145_v55 = vld [vmem:[%s3938_s23 + $0x40] sm:$0xff] }
 0x2da   : > { %1301 = vperm.xlu1 %3409, %v1126_v58   ;;  %1305 = vperm.xlu0 %3408, %v1127_v57  }
 0x2de   : > { %1309 = vperm.xlu1 %3409, %v1128_v60   ;;  %1313 = vperm.xlu0 %3408, %v1129_v59   ;;  %v1165_v60 = vsel %vm1155_vm4, 1.0, %v1146_v54 }
 0x2e2   : > { %1317 = vperm.xlu1 %3409, %v1130_v62   ;;  %1321 = vperm.xlu0 %3408, %v1131_v61   ;;  %v1164_v61 = vsel %vm1155_vm4, 1.0, %v1145_v55 }
 0x2e6   : > { %1325 = vperm.xlu1 %3409, %v1132_v0   ;;  %1329 = vperm.xlu0 %3408, %v1133_v63   ;;  %v1148_v0 = vld [vmem:[%s3938_s23 + $0x58] sm:$0xff] }
 0x328   : > { %v1185_v3 = vpop.permute.xlu1 %1184  ;;  %v1175_v5 = vpop.permute.xlu0 %1174 }
 0x329   : > { %v1252_v26 = vsel %vm1154_vm5, %v1175_v5, %v1156_v22  ;;  %v1254_v36 = vsel %vm1154_vm5, %v1185_v3, %v1158_v30 }
 0x32c   : > { %v1190_v6 = vpop.permute.xlu1 %1189  ;;  %v1180_v1 = vpop.permute.xlu0 %1179 }
 0x32d   : > { %v1253_v27 = vsel %vm1154_vm5, %v1180_v1, %v1157_v23  ;;  %v1255_v37 = vsel %vm1154_vm5, %v1190_v6, %v1159_v31 }
 0x330   : > { %v1200_v4 = vpop.permute.xlu1 %1199  ;;  %v1195_v7 = vpop.permute.xlu0 %1194 }
 0x331   : > { %v1257_v46 = vsel %vm1154_vm5, %v1200_v4, %v1161_v40  ;;  %v1256_v48 = vsel %vm1154_vm5, %v1195_v7, %v1160_v41  ;;  %v1167_v4 = vsel %vm1155_vm4, 1.0, %v1148_v0  ;;  %v1166_v7 = vsel %vm1155_vm4, 1.0, %v1147_v2 }
 0x334   : > { %v1210_v8 = vpop.permute.xlu1 %1209  ;;  %v1205_v9 = vpop.permute.xlu0 %1204 }
 0x335   : > { %v1259_v56 = vsel %vm1154_vm5, %v1210_v8, %v1163_v51  ;;  %v1258_v57 = vsel %vm1154_vm5, %v1205_v9, %v1162_v52 }
 0x338   : > { %v3921_v10 = vpop.permute.xlu1 %1219  ;;  %v3923_v11 = vpop.permute.xlu0 %1214 }
 0x339   : > { %v1261_v3 = vsel %vm1154_vm5, %v3921_v10, %v1165_v60  ;;  %v1260_v5 = vsel %vm1154_vm5, %v3923_v11, %v1164_v61  ;;  %v1150_v10 = vld [vmem:[%s3938_s23 + $0x68] sm:$0xff]  ;;  %v1149_v11 = vld [vmem:[%s3938_s23 + $0x60] sm:$0xff] }
 0x33a   : > { %v1169_v23 = vsel %vm1155_vm4, 1.0, %v1150_v10  ;;  %v1168_v24 = vsel %vm1155_vm4, 1.0, %v1149_v11 }
 0x33c   : > { %v3925_v13 = vpop.permute.xlu1 %1229  ;;  %v3927_v14 = vpop.permute.xlu0 %1224 }
 0x33d   : > { %v1263_v12 = vsel %vm1154_vm5, %v3925_v13, %v1167_v4  ;;  %v1262_v18 = vsel %vm1154_vm5, %v3927_v14, %v1166_v7 }
 0x340   : > { %v3931_v16 = vpop.permute.xlu1 %1239  ;;  %v3933_v17 = vpop.permute.xlu0 %1234 }
 0x341   : > { %v1265_v14 = vsel %vm1154_vm5, %v3931_v16, %v1169_v23 }
 0x344   : > { %v3942_v20 = vpop.permute.xlu1 %1249  ;;  %v3944_v21 = vpop.permute.xlu0 %1244 }
 0x349   : > { %v1274_v28 = vpop.permute.xlu1 %1273  ;;  %v1270_v29 = vpop.permute.xlu0 %1269 }
 0x34a   : > { %v1333_v32 = vsel %vm1153_vm6, %v1274_v28, %v1253_v27  ;;  %v1332_v33 = vsel %vm1153_vm6, %v1270_v29, %v1252_v26  ;;  %v1152_v26 = vld [vmem:[%s3938_s23 + $0x78] sm:$0xff]  ;;  %v1151_v27 = vld [vmem:[%s3938_s23 + $0x70] sm:$0xff]  ;;  %v1264_v28 = vsel %vm1154_vm5, %v3933_v17, %v1168_v24 }
 0x34b   : > { %1349 = vst [vmem:[%s3938_s23 + $0x8] sm:$0xff] %v1333_v32  ;;  %1348 = vst [vmem:[%s3938_s23] sm:$0xff] %v1332_v33  ;;  %v1171_v31 = vsel %vm1155_vm4, 1.0, %v1152_v26  ;;  %v1170_v32 = vsel %vm1155_vm4, 1.0, %v1151_v27 }
 0x34c   : > { %v1267_v17 = vsel %vm1154_vm5, %v3942_v20, %v1171_v31  ;;  %v1266_v34 = vsel %vm1154_vm5, %v3944_v21, %v1170_v32 }
 0x34d   : > { %v1278_v38 = vpop.permute.xlu1 %1277  ;;  %v1282_v39 = vpop.permute.xlu0 %1281 }
 0x34e   : > { %v1334_v42 = vsel %vm1153_vm6, %v1278_v38, %v1254_v36  ;;  %v1335_v43 = vsel %vm1153_vm6, %v1282_v39, %v1255_v37 }
 0x34f   : > { %1350 = vst [vmem:[%s3938_s23 + $0x10] sm:$0xff] %v1334_v42  ;;  %1351 = vst [vmem:[%s3938_s23 + $0x18] sm:$0xff] %v1335_v43 }
 0x351   : > { %v1286_v49 = vpop.permute.xlu1 %1285  ;;  %v1290_v50 = vpop.permute.xlu0 %1289 }
 0x352   : > { %v1336_v53 = vsel %vm1153_vm6, %v1286_v49, %v1256_v48  ;;  %v1337_v47 = vsel %vm1153_vm6, %v1290_v50, %v1257_v46 }
 0x353   : > { %1352 = vst [vmem:[%s3938_s23 + $0x20] sm:$0xff] %v1336_v53  ;;  %1353 = vst [vmem:[%s3938_s23 + $0x28] sm:$0xff] %v1337_v47 }
 0x355   : > { %v1294_v58 = vpop.permute.xlu1 %1293  ;;  %v1298_v59 = vpop.permute.xlu0 %1297 }
 0x356   : > { %v1338_v62 = vsel %vm1153_vm6, %v1294_v58, %v1258_v57  ;;  %v1339_v63 = vsel %vm1153_vm6, %v1298_v59, %v1259_v56 }
 0x357   : > { %1354 = vst [vmem:[%s3938_s23 + $0x30] sm:$0xff] %v1338_v62  ;;  %1355 = vst [vmem:[%s3938_s23 + $0x38] sm:$0xff] %v1339_v63 }
 0x359   : > { %v1302_v6 = vpop.permute.xlu1 %1301  ;;  %v1306_v1 = vpop.permute.xlu0 %1305 }
 0x35a   : > { %v1340_v8 = vsel %vm1153_vm6, %v1302_v6, %v1260_v5  ;;  %v1341_v9 = vsel %vm1153_vm6, %v1306_v1, %v1261_v3 }
 0x35b   : > { %1356 = vst [vmem:[%s3938_s23 + $0x40] sm:$0xff] %v1340_v8  ;;  %1357 = vst [vmem:[%s3938_s23 + $0x48] sm:$0xff] %v1341_v9 }
 0x35d   : > { %v1310_v19 = vpop.permute.xlu1 %1309  ;;  %v1314_v22 = vpop.permute.xlu0 %1313 }
 0x35e   : > { %v1342_v25 = vsel %vm1153_vm6, %v1310_v19, %v1262_v18  ;;  %v1343_v13 = vsel %vm1153_vm6, %v1314_v22, %v1263_v12 }
 0x35f   : > { %1358 = vst [vmem:[%s3938_s23 + $0x50] sm:$0xff] %v1342_v25  ;;  %1359 = vst [vmem:[%s3938_s23 + $0x58] sm:$0xff] %v1343_v13 }
 0x361   : > { %v1318_v29 = vpop.permute.xlu1 %1317  ;;  %v1322_v30 = vpop.permute.xlu0 %1321 }
 0x362   : > { %v1344_v33 = vsel %vm1153_vm6, %v1318_v29, %v1264_v28  ;;  %v1345_v16 = vsel %vm1153_vm6, %v1322_v30, %v1265_v14 }
 0x363   : > { %1360 = vst [vmem:[%s3938_s23 + $0x60] sm:$0xff] %v1344_v33  ;;  %1361 = vst [vmem:[%s3938_s23 + $0x68] sm:$0xff] %v1345_v16 }
 0x365   : > { %v1326_v35 = vpop.permute.xlu1 %1325  ;;  %v1330_v36 = vpop.permute.xlu0 %1329 }
 0x366   : > { %v1346_v37 = vsel %vm1153_vm6, %v1326_v35, %v1266_v34  ;;  %v1347_v38 = vsel %vm1153_vm6, %v1330_v36, %v1267_v17 }
 0x367   : > { %1362 = vst [vmem:[%s3938_s23 + $0x70] sm:$0xff] %v1346_v37  ;;  %1363 = vst [vmem:[%s3938_s23 + $0x78] sm:$0xff] %v1347_v38 }
 0x368 PF: > { %p1365_p8 = pnand %p943_p4, %p513_p13 }
 0x369   : > { %v1390_v20 = vld [vmem:[%s4760_s3 + $0x8] sm:$0xff] (!%p1365_p8)  ;;  %v1392_v15 = vld [vmem:[%s4760_s3 + $0x18] sm:$0xff] (!%p1365_p8)  ;;  %v1389_v41 = vld [vmem:[%s4760_s3] sm:$0xff] (!%p1365_p8)  ;;  %v3488_v43 = vmov (!%p1365_p8), 0.0  }
 0x36a   : > { %1368 = sbr.rel (%p1365_p8) target bundleno = 1629 (0x65d), region = 106  ;;  %v1394_v21 = vld [vmem:[%s4760_s3 + $0x28] sm:$0xff] (!%p1365_p8)  ;;  %v1396_v40 = vld [vmem:[%s4760_s3 + $0x38] sm:$0xff] (!%p1365_p8)  ;;  %v1393_v42 = vld [vmem:[%s4760_s3 + $0x20] sm:$0xff] (!%p1365_p8)  ;;  %1533 = vmatprep.mubr.f32.mxu0 (!%p1365_p8), %v3488_v43  ;;  %1694 = vmatprep.mubr.f32.mxu1 (!%p1365_p8), %v3488_v43 }
 0x36b   : > { %v3134_v39 = vpack.c.bf16 (!%p1365_p8), %v1394_v21, %v1390_v20  ;;  %v3166_v44 = vpack.c.bf16 (!%p1365_p8), %v1396_v40, %v1392_v15  ;;  %v3136_v45 = vpack.c.bf16 (!%p1365_p8), %v1393_v42, %v1389_v41  ;;  %v1391_v46 = vld [vmem:[%s4760_s3 + $0x10] sm:$0xff] (!%p1365_p8)  ;;  %v1398_v49 = vld [vmem:[%s4760_s3 + $0x48] sm:$0xff] (!%p1365_p8)  ;;  %v1400_v52 = vld [vmem:[%s4760_s3 + $0x58] sm:$0xff] (!%p1365_p8) }
 0x36c   : > { %v1395_v48 = vld [vmem:[%s4760_s3 + $0x30] sm:$0xff] (!%p1365_p8)  ;;  %v1402_v51 = vld [vmem:[%s4760_s3 + $0x68] sm:$0xff] (!%p1365_p8)  ;;  %v1404_v53 = vld [vmem:[%s4760_s3 + $0x78] sm:$0xff] (!%p1365_p8) }
 0x36d   : > { %3135 = vmatprep.subr.bf16.mxu0 (!%p1365_p8), %v3134_v39  ;;  %v3168_v50 = vpack.c.bf16 (!%p1365_p8), %v1395_v48, %v1391_v46  ;;  %3167 = vmatprep.subr.bf16.mxu1 (!%p1365_p8), %v3166_v44  ;;  %v3138_v47 = vpack.c.bf16 (!%p1365_p8), %v1402_v51, %v1398_v49  ;;  %v3170_v54 = vpack.c.bf16 (!%p1365_p8), %v1404_v53, %v1400_v52  ;;  %v1397_v55 = vld [vmem:[%s4760_s3 + $0x40] sm:$0xff] (!%p1365_p8)  ;;  %v1399_v57 = vld [vmem:[%s4760_s3 + $0x50] sm:$0xff] (!%p1365_p8)  ;;  %v1406_v60 = vld [vmem:[%s4760_s3 + $0x88] sm:$0xff] (!%p1365_p8) }
 0x36e   : > { %3137 = vmatpush1.bf16.msra.mxu0 (!%p1365_p8), %v3136_v45  ;;  %v1401_v56 = vld [vmem:[%s4760_s3 + $0x60] sm:$0xff] (!%p1365_p8)  ;;  %v1403_v59 = vld [vmem:[%s4760_s3 + $0x70] sm:$0xff] (!%p1365_p8)  ;;  %v1410_v61 = vld [vmem:[%s4760_s3 + $0xa8] sm:$0xff] (!%p1365_p8) }
 0x36f   : > { %3169 = vmatpush1.bf16.msra.mxu1 (!%p1365_p8), %v3168_v50  ;;  %v3140_v58 = vpack.c.bf16 (!%p1365_p8), %v1401_v56, %v1397_v55  ;;  %3139 = vmatprep.subr.bf16.mxu0 (!%p1365_p8), %v3138_v47  ;;  %v3172_v62 = vpack.c.bf16 (!%p1365_p8), %v1403_v59, %v1399_v57  ;;  %v3142_v63 = vpack.c.bf16 (!%p1365_p8), %v1410_v61, %v1406_v60  ;;  %v1408_v0 = vld [vmem:[%s4760_s3 + $0x98] sm:$0xff] (!%p1365_p8)  ;;  %v1405_v3 = vld [vmem:[%s4760_s3 + $0x80] sm:$0xff] (!%p1365_p8)  ;;  %v1407_v1 = vld [vmem:[%s4760_s3 + $0x90] sm:$0xff] (!%p1365_p8) }
 0x370   : > { %3171 = vmatprep.subr.bf16.mxu1 (!%p1365_p8), %v3170_v54  ;;  %v1412_v2 = vld [vmem:[%s4760_s3 + $0xb8] sm:$0xff] (!%p1365_p8)  ;;  %v1409_v6 = vld [vmem:[%s4760_s3 + $0xa0] sm:$0xff] (!%p1365_p8)  ;;  %v1411_v4 = vld [vmem:[%s4760_s3 + $0xb0] sm:$0xff] (!%p1365_p8) }
 0x371   : > { %v3174_v5 = vpack.c.bf16 %v1412_v2, %v1408_v0  ;;  %v3144_v7 = vpack.c.bf16 %v1409_v6, %v1405_v3  ;;  %v1414_v8 = vld [vmem:[%s4760_s3 + $0xc8] sm:$0xff]  ;;  %v1416_v10 = vld [vmem:[%s4760_s3 + $0xd8] sm:$0xff]  ;;  %v3176_v11 = vpack.c.bf16 %v1411_v4, %v1407_v1  ;;  %v1413_v19 = vld [vmem:[%s4760_s3 + $0xc0] sm:$0xff] }
 0x372   : > { %3141 = vmatpush1.bf16.msra.mxu0 %v3140_v58  ;;  %v1418_v9 = vld [vmem:[%s4760_s3 + $0xe8] sm:$0xff]  ;;  %v1420_v18 = vld [vmem:[%s4760_s3 + $0xf8] sm:$0xff]  ;;  %v1417_v22 = vld [vmem:[%s4760_s3 + $0xe0] sm:$0xff] }
 0x373   : > { %3173 = vmatpush1.bf16.msra.mxu1 %v3172_v62  ;;  %3143 = vmatprep.subr.bf16.mxu0 %v3142_v63  ;;  %v3146_v12 = vpack.c.bf16 %v1418_v9, %v1414_v8  ;;  %v3178_v23 = vpack.c.bf16 %v1420_v18, %v1416_v10  ;;  %v1415_v24 = vld [vmem:[%s4760_s3 + $0xd0] sm:$0xff]  ;;  %v1422_v13 = vld [vmem:[%s4760_s3 + $0x108] sm:$0xff]  ;;  %v1424_v27 = vld [vmem:[%s4760_s3 + $0x118] sm:$0xff]  ;;  %v3148_v28 = vpack.c.bf16 %v1417_v22, %v1413_v19 }
 0x374   : > { %3175 = vmatprep.subr.bf16.mxu1 %v3174_v5  ;;  %v1419_v25 = vld [vmem:[%s4760_s3 + $0xf0] sm:$0xff]  ;;  %v1426_v26 = vld [vmem:[%s4760_s3 + $0x128] sm:$0xff]  ;;  %v1428_v14 = vld [vmem:[%s4760_s3 + $0x138] sm:$0xff] }
 0x375   : > { %v3180_v29 = vpack.c.bf16 %v1419_v25, %v1415_v24  ;;  %v3150_v30 = vpack.c.bf16 %v1426_v26, %v1422_v13  ;;  %v1421_v31 = vld [vmem:[%s4760_s3 + $0x100] sm:$0xff]  ;;  %v1423_v33 = vld [vmem:[%s4760_s3 + $0x110] sm:$0xff]  ;;  %v3182_v16 = vpack.c.bf16 %v1428_v14, %v1424_v27  ;;  %v1430_v34 = vld [vmem:[%s4760_s3 + $0x148] sm:$0xff] }
 0x376   : > { %3145 = vmatpush1.bf16.msra.mxu0 %v3144_v7  ;;  %v1425_v32 = vld [vmem:[%s4760_s3 + $0x120] sm:$0xff]  ;;  %v1427_v17 = vld [vmem:[%s4760_s3 + $0x130] sm:$0xff]  ;;  %v1434_v35 = vld [vmem:[%s4760_s3 + $0x168] sm:$0xff] }
 0x377   : > { %3177 = vmatpush1.bf16.msra.mxu1 %v3176_v11  ;;  %3147 = vmatprep.subr.bf16.mxu0 %v3146_v12  ;;  %v1432_v36 = vld [vmem:[%s4760_s3 + $0x158] sm:$0xff]  ;;  %v3152_v38 = vpack.c.bf16 %v1425_v32, %v1421_v31  ;;  %v3184_v20 = vpack.c.bf16 %v1427_v17, %v1423_v33  ;;  %v3154_v21 = vpack.c.bf16 %v1434_v35, %v1430_v34  ;;  %v1429_v15 = vld [vmem:[%s4760_s3 + $0x140] sm:$0xff]  ;;  %v1431_v40 = vld [vmem:[%s4760_s3 + $0x150] sm:$0xff] }
 0x378   : > { %3179 = vmatprep.subr.bf16.mxu1 %v3178_v23  ;;  %v1436_v37 = vld [vmem:[%s4760_s3 + $0x178] sm:$0xff]  ;;  %v1433_v39 = vld [vmem:[%s4760_s3 + $0x160] sm:$0xff]  ;;  %v1435_v42 = vld [vmem:[%s4760_s3 + $0x170] sm:$0xff] }
 0x379   : > { %v3186_v41 = vpack.c.bf16 %v1436_v37, %v1432_v36  ;;  %v1438_v44 = vld [vmem:[%s4760_s3 + $0x188] sm:$0xff]  ;;  %v1440_v46 = vld [vmem:[%s4760_s3 + $0x198] sm:$0xff]  ;;  %v3156_v49 = vpack.c.bf16 %v1433_v39, %v1429_v15  ;;  %v3188_v50 = vpack.c.bf16 %v1435_v42, %v1431_v40  ;;  %v1437_v52 = vld [vmem:[%s4760_s3 + $0x180] sm:$0xff] }
 0x37a   : > { %3149 = vmatpush1.bf16.msra.mxu0 %v3148_v28  ;;  %v1442_v45 = vld [vmem:[%s4760_s3 + $0x1a8] sm:$0xff]  ;;  %v1444_v48 = vld [vmem:[%s4760_s3 + $0x1b8] sm:$0xff]  ;;  %v1441_v53 = vld [vmem:[%s4760_s3 + $0x1a0] sm:$0xff] }
 0x37b   : > { %3181 = vmatpush1.bf16.msra.mxu1 %v3180_v29  ;;  %3151 = vmatprep.subr.bf16.mxu0 %v3150_v30  ;;  %v3158_v51 = vpack.c.bf16 %v1442_v45, %v1438_v44  ;;  %v1439_v47 = vld [vmem:[%s4760_s3 + $0x190] sm:$0xff]  ;;  %v3190_v54 = vpack.c.bf16 %v1444_v48, %v1440_v46  ;;  %v1446_v56 = vld [vmem:[%s4760_s3 + $0x1c8] sm:$0xff]  ;;  %v1448_v58 = vld [vmem:[%s4760_s3 + $0x1d8] sm:$0xff]  ;;  %v3160_v60 = vpack.c.bf16 %v1441_v53, %v1437_v52 }
 0x37c   : > { %3183 = vmatprep.subr.bf16.mxu1 %v3182_v16  ;;  %v1443_v55 = vld [vmem:[%s4760_s3 + $0x1b0] sm:$0xff]  ;;  %v1450_v57 = vld [vmem:[%s4760_s3 + $0x1e8] sm:$0xff]  ;;  %v1452_v59 = vld [vmem:[%s4760_s3 + $0x1f8] sm:$0xff] }
 0x37d   : > { %v3192_v61 = vpack.c.bf16 %v1443_v55, %v1439_v47  ;;  %v3162_v62 = vpack.c.bf16 %v1450_v57, %v1446_v56  ;;  %v1445_v63 = vld [vmem:[%s4760_s3 + $0x1c0] sm:$0xff]  ;;  %v3194_v2 = vpack.c.bf16 %v1452_v59, %v1448_v58  ;;  %v1447_v3 = vld [vmem:[%s4760_s3 + $0x1d0] sm:$0xff]  ;;  %v2000_v1 = vld [vmem:[%s4761_s4 + $0x88] sm:$0xff] }
 0x37e   : > { %3153 = vmatpush1.bf16.msra.mxu0 %v3152_v38  ;;  %v1449_v0 = vld [vmem:[%s4760_s3 + $0x1e0] sm:$0xff]  ;;  %v1451_v5 = vld [vmem:[%s4760_s3 + $0x1f0] sm:$0xff]  ;;  %v2032_v8 = vld [vmem:[%s4761_s4 + $0x188] sm:$0xff] }
 0x37f   : > { %3185 = vmatpush1.bf16.msra.mxu1 %v3184_v20  ;;  %3155 = vmatprep.subr.bf16.mxu0 %v3154_v21  ;;  %v1999_v6 = vld [vmem:[%s4761_s4 + $0x80] sm:$0xff]  ;;  %v3164_v4 = vpack.c.bf16 %v1449_v0, %v1445_v63  ;;  %v3196_v9 = vpack.c.bf16 %v1451_v5, %v1447_v3  ;;  %v1984_v12 = vld [vmem:[%s4761_s4 + $0x8] sm:$0xff]  ;;  %v2001_v23 = vld [vmem:[%s4761_s4 + $0x90] sm:$0xff] }
 0x380   : > { %3187 = vmatprep.subr.bf16.mxu1 %v3186_v41  ;;  %v2031_v7 = vld [vmem:[%s4761_s4 + $0x180] sm:$0xff]  ;;  %v3198_v10 = vpack.c.bf16 %v2000_v1, %v1999_v6  ;;  %v2016_v22 = vld [vmem:[%s4761_s4 + $0x108] sm:$0xff]  ;;  %v2002_v24 = vld [vmem:[%s4761_s4 + $0x98] sm:$0xff] }
 0x381   : > { %v1983_v11 = vld [vmem:[%s4761_s4] sm:$0xff]  ;;  %v3230_v18 = vpack.c.bf16 %v2032_v8, %v2031_v7  ;;  %v2033_v13 = vld [vmem:[%s4761_s4 + $0x190] sm:$0xff]  ;;  %v2034_v26 = vld [vmem:[%s4761_s4 + $0x198] sm:$0xff]  ;;  %v3202_v28 = vpack.c.bf16 %v2002_v24, %v2001_v23 }
 0x382   : > { %3157 = vmatpush1.bf16.msra.mxu0 %v3156_v49  ;;  %v2015_v19 = vld [vmem:[%s4761_s4 + $0x100] sm:$0xff]  ;;  %v3200_v27 = vpack.c.bf16 %v1984_v12, %v1983_v11  ;;  %v1985_v29 = vld [vmem:[%s4761_s4 + $0x10] sm:$0xff]  ;;  %v1986_v30 = vld [vmem:[%s4761_s4 + $0x18] sm:$0xff]  ;;  %v3234_v32 = vpack.c.bf16 %v2034_v26, %v2033_v13 }
 0x383   : > { %3189 = vmatpush1.bf16.msra.mxu1 %v3188_v50  ;;  %3159 = vmatprep.subr.bf16.mxu0 %v3158_v51  ;;  %v1369_v25 = vld [vmem:[#allocation2] sm:$0xff]  ;;  %v3232_v14 = vpack.c.bf16 %v2016_v22, %v2015_v19  ;;  %v2017_v31 = vld [vmem:[%s4761_s4 + $0x110] sm:$0xff]  ;;  %v2018_v33 = vld [vmem:[%s4761_s4 + $0x118] sm:$0xff]  ;;  %v3204_v37 = vpack.c.bf16 %v1986_v30, %v1985_v29 }
 0x384   : > { %3191 = vmatprep.subr.bf16.mxu1 %v3190_v54  ;;  %v2003_v16 = vld [vmem:[%s4761_s4 + $0xa0] sm:$0xff]  ;;  %v2004_v17 = vld [vmem:[%s4761_s4 + $0xa8] sm:$0xff]  ;;  %v3236_v38 = vpack.c.bf16 %v2018_v33, %v2017_v31  ;;  %v2005_v42 = vld [vmem:[%s4761_s4 + $0xb0] sm:$0xff] }
 0x385   : > { %v1370_v34 = vld [vmem:[#allocation2 + $0x8] sm:$0xff]  ;;  %v2035_v35 = vld [vmem:[%s4761_s4 + $0x1a0] sm:$0xff]  ;;  %v3206_v20 = vpack.c.bf16 %v2004_v17, %v2003_v16  ;;  %v2006_v44 = vld [vmem:[%s4761_s4 + $0xb8] sm:$0xff] }
 0x386   : > { %3161 = vmatpush1.bf16.msra.mxu0 %v3160_v60  ;;  %v2036_v36 = vld [vmem:[%s4761_s4 + $0x1a8] sm:$0xff]  ;;  %v1987_v21 = vld [vmem:[%s4761_s4 + $0x20] sm:$0xff]  ;;  %v1371_v45 = vld [vmem:[#allocation2 + $0x10] sm:$0xff]  ;;  %v3210_v51 = vpack.c.bf16 %v2006_v44, %v2005_v42 }
 0x387   : > { %3193 = vmatpush1.bf16.msra.mxu1 %v3192_v61  ;;  %3163 = vmatprep.subr.bf16.mxu0 %v3162_v62  ;;  %v1988_v15 = vld [vmem:[%s4761_s4 + $0x28] sm:$0xff]  ;;  %v2019_v39 = vld [vmem:[%s4761_s4 + $0x120] sm:$0xff]  ;;  %v3238_v40 = vpack.c.bf16 %v2036_v36, %v2035_v35  ;;  %v2037_v46 = vld [vmem:[%s4761_s4 + $0x1b0] sm:$0xff] }
 0x388   : > { %3195 = vmatprep.subr.bf16.mxu1 %v3194_v2  ;;  %v2020_v41 = vld [vmem:[%s4761_s4 + $0x128] sm:$0xff]  ;;  %v2038_v48 = vld [vmem:[%s4761_s4 + $0x1b8] sm:$0xff]  ;;  %v3208_v49 = vpack.c.bf16 %v1988_v15, %v1987_v21  ;;  %v1989_v52 = vld [vmem:[%s4761_s4 + $0x30] sm:$0xff] }
 0x389   : > { %v3240_v50 = vpack.c.bf16 %v2020_v41, %v2019_v39  ;;  %v1990_v53 = vld [vmem:[%s4761_s4 + $0x38] sm:$0xff]  ;;  %v2021_v47 = vld [vmem:[%s4761_s4 + $0x130] sm:$0xff]  ;;  %v3242_v54 = vpack.c.bf16 %v2038_v48, %v2037_v46  ;;  %v2007_v56 = vld [vmem:[%s4761_s4 + $0xc0] sm:$0xff] }
 0x38a   : > { %3165 = vmatpush1.bf16.msra.mxu0 %v3164_v4  ;;  %v2022_v55 = vld [vmem:[%s4761_s4 + $0x138] sm:$0xff]  ;;  %v2008_v57 = vld [vmem:[%s4761_s4 + $0xc8] sm:$0xff]  ;;  %v2039_v59 = vld [vmem:[%s4761_s4 + $0x1c0] sm:$0xff]  ;;  %v3212_v61 = vpack.c.bf16 %v1990_v53, %v1989_v52 }
 0x38b   : > { %3197 = vmatpush1.bf16.msra.mxu1 %v3196_v9  ;;  %3199 = vmatprep.subr.bf16.mxu0 %v3198_v10  ;;  %v1372_v58 = vld [vmem:[#allocation2 + $0x18] sm:$0xff]  ;;  %v2040_v60 = vld [vmem:[%s4761_s4 + $0x1c8] sm:$0xff]  ;;  %v3244_v62 = vpack.c.bf16 %v2022_v55, %v2021_v47  ;;  %v3214_v63 = vpack.c.bf16 %v2008_v57, %v2007_v56  ;;  %v1991_v0 = vld [vmem:[%s4761_s4 + $0x40] sm:$0xff] }
 0x38c   : > { %3231 = vmatprep.subr.bf16.mxu1 %v3230_v18  ;;  %v1992_v2 = vld [vmem:[%s4761_s4 + $0x48] sm:$0xff]  ;;  %v2023_v3 = vld [vmem:[%s4761_s4 + $0x140] sm:$0xff]  ;;  %v3246_v5 = vpack.c.bf16 %v2040_v60, %v2039_v59  ;;  %v2009_v1 = vld [vmem:[%s4761_s4 + $0xd0] sm:$0xff] }
 0x38d   : > { %1534 = vmatmul.mubr.f32.vlgmr.msra.gmra.mrb[0].mxu0 %v1369_v25  ;;  %v2024_v6 = vld [vmem:[%s4761_s4 + $0x148] sm:$0xff]  ;;  %v2010_v4 = vld [vmem:[%s4761_s4 + $0xd8] sm:$0xff]  ;;  %v1373_v7 = vld [vmem:[#allocation2 + $0x20] sm:$0xff]  ;;  %v3216_v10 = vpack.c.bf16 %v1992_v2, %v1991_v0 }
 0x38e   : > { %1695 = vmatmul.mubr.f32.vlgmr.msra.gmra.mrb[0].mxu1 %v1369_v25  ;;  %1539 = vmatprep.mubr.f32.mxu0 %v3488_v43  ;;  %v2041_v8 = vld [vmem:[%s4761_s4 + $0x1d0] sm:$0xff]  ;;  %v2042_v9 = vld [vmem:[%s4761_s4 + $0x1d8] sm:$0xff]  ;;  %v3248_v11 = vpack.c.bf16 %v2024_v6, %v2023_v3  ;;  %v3218_v12 = vpack.c.bf16 %v2010_v4, %v2009_v1  ;;  %v2011_v25 = vld [vmem:[%s4761_s4 + $0xe0] sm:$0xff] }
 0x38f   : > { %1700 = vmatprep.mubr.f32.mxu1 %v3488_v43  ;;  %3201 = vmatpush3.bf16.msra.mxu0 %v3200_v27  ;;  %v1993_v18 = vld [vmem:[%s4761_s4 + $0x50] sm:$0xff]  ;;  %v1994_v19 = vld [vmem:[%s4761_s4 + $0x58] sm:$0xff]  ;;  %v3250_v23 = vpack.c.bf16 %v2042_v9, %v2041_v8  ;;  %v2012_v13 = vld [vmem:[%s4761_s4 + $0xe8] sm:$0xff] }
 0x390   : > { %3233 = vmatpush3.bf16.msra.mxu1 %v3232_v14  ;;  %3203 = vmatprep.subr.bf16.mxu0 %v3202_v28  ;;  %v2025_v22 = vld [vmem:[%s4761_s4 + $0x150] sm:$0xff]  ;;  %v2026_v24 = vld [vmem:[%s4761_s4 + $0x158] sm:$0xff]  ;;  %v1374_v26 = vld [vmem:[#allocation2 + $0x28] sm:$0xff]  ;;  %v3220_v28 = vpack.c.bf16 %v1994_v19, %v1993_v18  ;;  %v3222_v30 = vpack.c.bf16 %v2012_v13, %v2011_v25 }
 0x391   : > { %1540 = vmatmul.mubr.f32.gmra.mrb[2].mxu0 %v1370_v34  ;;  %3235 = vmatprep.subr.bf16.mxu1 %v3234_v32  ;;  %v2043_v27 = vld [vmem:[%s4761_s4 + $0x1e0] sm:$0xff]  ;;  %v2044_v14 = vld [vmem:[%s4761_s4 + $0x1e8] sm:$0xff]  ;;  %v3252_v29 = vpack.c.bf16 %v2026_v24, %v2025_v22  ;;  %v2014_v35 = vld [vmem:[%s4761_s4 + $0xf8] sm:$0xff] }
 0x392   : > { %1701 = vmatmul.mubr.f32.gmra.mrb[2].mxu1 %v1370_v34  ;;  %1545 = vmatprep.mubr.f32.mxu0 %v3488_v43  ;;  %v1995_v31 = vld [vmem:[%s4761_s4 + $0x60] sm:$0xff]  ;;  %v1996_v32 = vld [vmem:[%s4761_s4 + $0x68] sm:$0xff]  ;;  %v3254_v16 = vpack.c.bf16 %v2044_v14, %v2043_v27  ;;  %v2013_v34 = vld [vmem:[%s4761_s4 + $0xf0] sm:$0xff] }
 0x393   : > { %1706 = vmatprep.mubr.f32.mxu1 %v3488_v43  ;;  %3205 = vmatpush3.bf16.msra.mxu0 %v3204_v37  ;;  %v2027_v33 = vld [vmem:[%s4761_s4 + $0x160] sm:$0xff]  ;;  %v2028_v17 = vld [vmem:[%s4761_s4 + $0x168] sm:$0xff]  ;;  %v1375_v36 = vld [vmem:[#allocation2 + $0x30] sm:$0xff]  ;;  %v3224_v37 = vpack.c.bf16 %v1996_v32, %v1995_v31 }
 0x394   : > { %3237 = vmatpush3.bf16.msra.mxu1 %v3236_v38  ;;  %3207 = vmatprep.subr.bf16.mxu0 %v3206_v20  ;;  %v3256_v38 = vpack.c.bf16 %v2028_v17, %v2027_v33  ;;  %v3226_v20 = vpack.c.bf16 %v2014_v35, %v2013_v34  ;;  %v1376_v21 = vld [vmem:[#allocation2 + $0x38] sm:$0xff]  ;;  %v1377_v15 = vld [vmem:[#allocation2 + $0x40] sm:$0xff]  ;;  %v1378_v39 = vld [vmem:[#allocation2 + $0x48] sm:$0xff] }
 0x395   : > { %1546 = vmatmul.mubr.f32.gmra.mrb[4].mxu0 %v1371_v45  ;;  %3239 = vmatprep.subr.bf16.mxu1 %v3238_v40  ;;  %v1379_v40 = vld [vmem:[#allocation2 + $0x50] sm:$0xff]  ;;  %v1380_v41 = vld [vmem:[#allocation2 + $0x58] sm:$0xff]  ;;  %v1381_v42 = vld [vmem:[#allocation2 + $0x60] sm:$0xff] }
 0x396   : > { %1707 = vmatmul.mubr.f32.gmra.mrb[4].mxu1 %v1371_v45  ;;  %1551 = vmatprep.mubr.f32.mxu0 %v3488_v43  ;;  %v1382_v44 = vld [vmem:[#allocation2 + $0x68] sm:$0xff]  ;;  %v1383_v45 = vld [vmem:[#allocation2 + $0x70] sm:$0xff]  ;;  %v1384_v46 = vld [vmem:[#allocation2 + $0x78] sm:$0xff] }
 0x397   : > { %1712 = vmatprep.mubr.f32.mxu1 %v3488_v43  ;;  %3209 = vmatpush3.bf16.msra.mxu0 %v3208_v49  ;;  %v2045_v48 = vld [vmem:[%s4761_s4 + $0x1f0] sm:$0xff]  ;;  %v2046_v49 = vld [vmem:[%s4761_s4 + $0x1f8] sm:$0xff]  ;;  %v2389_v55 = vld [vmem:[%s4762_s5] sm:$0xff] }
 0x398   : > { %3241 = vmatpush3.bf16.msra.mxu1 %v3240_v50  ;;  %3211 = vmatprep.subr.bf16.mxu0 %v3210_v51  ;;  %v1997_v50 = vld [vmem:[%s4761_s4 + $0x70] sm:$0xff]  ;;  %v1998_v51 = vld [vmem:[%s4761_s4 + $0x78] sm:$0xff]  ;;  %v3258_v52 = vpack.c.bf16 %v2046_v49, %v2045_v48  ;;  %v2390_v56 = vld [vmem:[%s4762_s5 + $0x8] sm:$0xff] }
 0x399   : > { %1552 = vmatmul.mubr.f32.gmra.mrb[6].mxu0 %v1372_v58  ;;  %3243 = vmatprep.subr.bf16.mxu1 %v3242_v54  ;;  %v3228_v53 = vpack.c.bf16 %v1998_v51, %v1997_v50  ;;  %v2030_v47 = vld [vmem:[%s4761_s4 + $0x178] sm:$0xff]  ;;  %v4508_v57 = vpack.c.bf16 %v2390_v56, %v2389_v55  ;;  %v2391_v1 = vld [vmem:[%s4762_s5 + $0x10] sm:$0xff]  ;;  %v2393_v8 = vld [vmem:[%s4762_s5 + $0x20] sm:$0xff] }
 0x39a   : > { %1713 = vmatmul.mubr.f32.gmra.mrb[6].mxu1 %v1372_v58  ;;  %1557 = vmatprep.mubr.f32.mxu0 %v3488_v43  ;;  %v1453_v58 = vlaneseq  ;;  %v1388_v0 = vld [vmem:[%s4763_s6 + $0x18] sm:$0xff]  ;;  %v2394_v9 = vld [vmem:[%s4762_s5 + $0x28] sm:$0xff]  ;;  %v2397_v22 = vld [vmem:[%s4762_s5 + $0x40] sm:$0xff] }
 0x39b   : > { %1718 = vmatprep.mubr.f32.mxu1 %v3488_v43  ;;  %3213 = vmatpush3.bf16.msra.mxu0 %v3212_v61  ;;  %v4518_v61 = vld [vmem:[%s4763_s6] sm:$0xff]  ;;  %v2392_v4 = vld [vmem:[%s4762_s5 + $0x18] sm:$0xff] }
 0x39c   : > { %3245 = vmatpush3.bf16.msra.mxu1 %v3244_v62  ;;  %3215 = vmatprep.subr.bf16.mxu0 %v3214_v63  ;;  %v4512_v59 = vshrl.u32 %v1453_v58, 7  ;;  %v1387_v62 = vld [vmem:[%s4763_s6 + $0x10] sm:$0xff]  ;;  %v1386_v63 = vld [vmem:[%s4763_s6 + $0x8] sm:$0xff]  ;;  %v2396_v19 = vld [vmem:[%s4762_s5 + $0x38] sm:$0xff] }
 0x39d   : > { %1558 = vmatmul.mubr.f32.gmra.mrb[8].mxu0 %v1373_v7  ;;  %3247 = vmatprep.subr.bf16.mxu1 %v3246_v5 }
 0x39e   : > { %1719 = vmatmul.mubr.f32.gmra.mrb[8].mxu1 %v1373_v7  ;;  %1563 = vmatprep.mubr.f32.mxu0 %v3488_v43  ;;  %v1455_v60 = vsub.s32 0, %v4512_v59 }
 0x39f   : > { %1724 = vmatprep.mubr.f32.mxu1 %v3488_v43  ;;  %3217 = vmatpush3.bf16.msra.mxu0 %v3216_v10  ;;  %v2395_v10 = vld [vmem:[%s4762_s5 + $0x30] sm:$0xff] }
 0x3a0   : > { %3249 = vmatpush3.bf16.msra.mxu1 %v3248_v11  ;;  %3219 = vmatprep.subr.bf16.mxu0 %v3218_v12  ;;  %v4530_v2 = vrot.slane %v4518_v61, %v1455_v60  ;;  %v4532_v3 = vrot.slane %v1387_v62, %v1455_v60  ;;  %v4534_v5 = vrot.slane %v1386_v63, %v1455_v60 }
 0x3a1   : > { %1564 = vmatmul.mubr.f32.gmra.mrb[10].mxu0 %v1374_v26  ;;  %3251 = vmatprep.subr.bf16.mxu1 %v3250_v23  ;;  %v4536_v6 = vrot.slane %v1388_v0, %v1455_v60  ;;  %v2398_v23 = vld [vmem:[%s4762_s5 + $0x48] sm:$0xff]  ;;  %v4570_v32 = vpack.c.bf16 %v2396_v19, %v2395_v10 }
 0x3a2   : > { %1725 = vmatmul.mubr.f32.gmra.mrb[10].mxu1 %v1374_v26  ;;  %1569 = vmatprep.mubr.f32.mxu0 %v3488_v43  ;;  %v4565_v26 = vpack.c.bf16 %v2392_v4, %v2391_v1  ;;  %v4572_v33 = vpack.c.bf16 %v2398_v23, %v2397_v22 }
 0x3a3   : > { %1730 = vmatprep.mubr.f32.mxu1 %v3488_v43  ;;  %3221 = vmatpush3.bf16.msra.mxu0 %v3220_v28  ;;  %v4568_v28 = vpack.c.bf16 %v2394_v9, %v2393_v8 }
 0x3a4   : > { %3253 = vmatpush3.bf16.msra.mxu1 %v3252_v29  ;;  %3223 = vmatprep.subr.bf16.mxu0 %v3222_v30 }
 0x3a5   : > { %1570 = vmatmul.mubr.f32.gmra.mrb[12].mxu0 %v1375_v36  ;;  %3255 = vmatprep.subr.bf16.mxu1 %v3254_v16 }
 0x3a6   : > { %1731 = vmatmul.mubr.f32.gmra.mrb[12].mxu1 %v1375_v36  ;;  %1575 = vmatprep.mubr.f32.mxu0 %v3488_v43 }
 0x3a7   : > { %1736 = vmatprep.mubr.f32.mxu1 %v3488_v43  ;;  %3225 = vmatpush3.bf16.msra.mxu0 %v3224_v37 }
 0x3a8   : > { %3257 = vmatpush3.bf16.msra.mxu1 %v3256_v38  ;;  %3227 = vmatprep.subr.bf16.mxu0 %v3226_v20 }
 0x3a9   : > { %1576 = vmatmul.mubr.f32.gmra.mrb[14].mxu0 %v1376_v21  ;;  %3259 = vmatprep.subr.bf16.mxu1 %v3258_v52 }
 0x3aa   : > { %1737 = vmatmul.mubr.f32.gmra.mrb[14].mxu1 %v1376_v21  ;;  %1581 = vmatprep.mubr.f32.mxu0 %v3488_v43 }
 0x3ab   : > { %1742 = vmatprep.mubr.f32.mxu1 %v3488_v43  ;;  %3229 = vmatpush3.bf16.msra.mxu0 %v3228_v53 }
 0x3ac   : > { %3263 = vmatprep.subr.bf16.mxu0 %v4508_v57 }
 0x3ad   : > { %1582 = vmatmul.mubr.f32.gmra.mrb[16].mxu0 %v1377_v15 }
 0x3ae   : > { %1743 = vmatmul.mubr.f32.gmra.mrb[16].mxu1 %v1377_v15  ;;  %1587 = vmatprep.mubr.f32.mxu0 %v3488_v43 }
 0x3af   : > { %1748 = vmatprep.mubr.f32.mxu1 %v3488_v43 }
 0x3b1   : > { %1588 = vmatmul.mubr.f32.gmra.mrb[18].mxu0 %v1378_v39 }
 0x3b2   : > { %1749 = vmatmul.mubr.f32.gmra.mrb[18].mxu1 %v1378_v39  ;;  %1593 = vmatprep.mubr.f32.mxu0 %v3488_v43 }
 0x3b3   : > { %1754 = vmatprep.mubr.f32.mxu1 %v3488_v43 }
 0x3b5   : > { %1594 = vmatmul.mubr.f32.gmra.mrb[20].mxu0 %v1379_v40 }
 0x3b6   : > { %1755 = vmatmul.mubr.f32.gmra.mrb[20].mxu1 %v1379_v40  ;;  %1599 = vmatprep.mubr.f32.mxu0 %v3488_v43 }
 0x3b7   : > { %1760 = vmatprep.mubr.f32.mxu1 %v3488_v43 }
 0x3b9   : > { %1600 = vmatmul.mubr.f32.gmra.mrb[22].mxu0 %v1380_v41 }
 0x3ba   : > { %1761 = vmatmul.mubr.f32.gmra.mrb[22].mxu1 %v1380_v41  ;;  %1605 = vmatprep.mubr.f32.mxu0 %v3488_v43 }
 0x3bb   : > { %1766 = vmatprep.mubr.f32.mxu1 %v3488_v43 }
 0x3bd   : > { %1606 = vmatmul.mubr.f32.gmra.mrb[24].mxu0 %v1381_v42 }
 0x3be   : > { %1767 = vmatmul.mubr.f32.gmra.mrb[24].mxu1 %v1381_v42  ;;  %1611 = vmatprep.mubr.f32.mxu0 %v3488_v43 }
 0x3bf   : > { %1772 = vmatprep.mubr.f32.mxu1 %v3488_v43 }
 0x3c1   : > { %1612 = vmatmul.mubr.f32.gmra.mrb[26].mxu0 %v1382_v44 }
 0x3c2   : > { %1773 = vmatmul.mubr.f32.gmra.mrb[26].mxu1 %v1382_v44  ;;  %1617 = vmatprep.mubr.f32.mxu0 %v3488_v43 }
 0x3c3   : > { %1778 = vmatprep.mubr.f32.mxu1 %v3488_v43 }
 0x3c5   : > { %1618 = vmatmul.mubr.f32.gmra.mrb[28].mxu0 %v1383_v45 }
 0x3c6   : > { %1779 = vmatmul.mubr.f32.gmra.mrb[28].mxu1 %v1383_v45  ;;  %1623 = vmatprep.mubr.f32.mxu0 %v3488_v43 }
 0x3c7   : > { %1784 = vmatprep.mubr.f32.mxu1 %v3488_v43  ;;  %v2029_v43 = vld [vmem:[%s4761_s4 + $0x170] sm:$0xff] }
 0x3c8   : > { %v3260_v54 = vpack.c.bf16 %v2030_v47, %v2029_v43 }
 0x3c9   : > { %1624 = vmatmul.mubr.f32.gmra.mrb[30].mxu0 %v1384_v46 }
 0x3ca   : > { %1785 = vmatmul.mubr.f32.gmra.mrb[30].mxu1 %v1384_v46 }
 0x3cb   : > { %3261 = vmatpush3.bf16.msra.mxu1 %v3260_v54 }
 0x3cc   : > { %3310 = vmatprep.subr.bf16.mxu1 %v4508_v57 }
 0x460   : > { %v1535_v7 = vpop.f32.mrb[0].mxu0 }
 0x461   : > { %v1536_v11 = vadd.f32 %v1535_v7, %v4530_v2  ;;  %v1696_v12 = vpop.f32.mrb[0].mxu1  ;;  %v1537_v18 = vpop.f32.mrb[1].mxu0 }
 0x462   : > { %v1697_v24 = vadd.f32 %v1696_v12, %v4532_v3  ;;  %v1538_v25 = vadd.f32 %v1537_v18, %v4534_v5  ;;  %v1698_v13 = vpop.f32.mrb[1].mxu1 }
 0x463   : > { %vm1791_vm7 = vcmp.ge.f32.partialorder %v1536_v11, 0.0  ;;  %v1855_v27 = vmul.f32 0.01, %v1536_v11  ;;  %v1699_v14 = vadd.f32 %v1698_v13, %v4536_v6 }
 0x464   : > { %v1857_v29 = vmul.f32 0.01, %v1697_v24  ;;  %v1856_v30 = vmul.f32 0.01, %v1538_v25  ;;  %v1541_v31 = vpop.f32.mrb[2].mxu0  ;;  %vm1793_vm8 = vcmp.ge.f32.partialorder %v1697_v24, 0.0 }
 0x465   : > { %v1858_v16 = vmul.f32 0.01, %v1699_v14  ;;  %v1542_v17 = vadd.f32 %v1541_v31, %v4530_v2  ;;  %v1702_v34 = vpop.f32.mrb[2].mxu1  ;;  %v1543_v35 = vpop.f32.mrb[3].mxu0  ;;  %vm1792_vm9 = vcmp.ge.f32.partialorder %v1538_v25, 0.0  ;;  %v1919_v36 = vsel %vm1791_vm7, %v1536_v11, %v1855_v27 }
 0x466   : > { %v1703_v37 = vadd.f32 %v1702_v34, %v4532_v3  ;;  %v1544_v38 = vadd.f32 %v1543_v35, %v4534_v5  ;;  %v1704_v20 = vpop.f32.mrb[3].mxu1  ;;  %v1920_v21 = vsel %vm1792_vm9, %v1538_v25, %v1856_v30  ;;  %vm1794_vm10 = vcmp.ge.f32.partialorder %v1699_v14, 0.0 }
 0x467   : > { %v1859_v15 = vmul.f32 0.01, %v1542_v17  ;;  %v1705_v39 = vadd.f32 %v1704_v20, %v4536_v6  ;;  %2115 = vmatprep.mubr.f32.mxu0 %v1920_v21  ;;  %vm1795_vm11 = vcmp.ge.f32.partialorder %v1542_v17, 0.0  ;;  %v1922_v42 = vsel %vm1794_vm10, %v1699_v14, %v1858_v16 }
 0x468   : > { %v1861_v40 = vmul.f32 0.01, %v1703_v37  ;;  %v1860_v41 = vmul.f32 0.01, %v1544_v38  ;;  %v1547_v44 = vpop.f32.mrb[4].mxu0  ;;  %2116 = vmatmul.mubr.f32.vlgmr.msra.gmra.mrb[32].mxu0 %v1919_v36  ;;  %vm1796_vm12 = vcmp.ge.f32.partialorder %v1544_v38, 0.0  ;;  %v1921_v45 = vsel %vm1793_vm8, %v1697_v24, %v1857_v29  ;;  %2260 = vmatprep.mubr.f32.mxu1 %v1922_v42 }
 0x469   : > { %v1862_v46 = vmul.f32 0.01, %v1705_v39  ;;  %v1548_v48 = vadd.f32 %v1547_v44, %v4530_v2  ;;  %v1708_v49 = vpop.f32.mrb[4].mxu1  ;;  %v1549_v50 = vpop.f32.mrb[5].mxu0  ;;  %vm1798_vm13 = vcmp.ge.f32.partialorder %v1705_v39, 0.0  ;;  %3265 = vmatpush3.bf16.msra.mxu0 %v4508_v57  ;;  %2261 = vmatmul.mubr.f32.vlgmr.msra.gmra.mrb[32].mxu1 %v1921_v45  ;;  %vm1797_vm14 = vcmp.ge.f32.partialorder %v1703_v37, 0.0 }
 0x46a   : > { %v1709_v51 = vadd.f32 %v1708_v49, %v4532_v3  ;;  %v1550_v52 = vadd.f32 %v1549_v50, %v4534_v5  ;;  %v1710_v43 = vpop.f32.mrb[5].mxu1  ;;  %v1924_v53 = vsel %vm1796_vm12, %v1544_v38, %v1860_v41  ;;  %3267 = vmatprep.subr.bf16.mxu0 %v4565_v26  ;;  %v1923_v56 = vsel %vm1795_vm11, %v1542_v17, %v1859_v15 }
 0x46b   : > { %v1863_v47 = vmul.f32 0.01, %v1548_v48  ;;  %v1711_v54 = vadd.f32 %v1710_v43, %v4536_v6  ;;  %2120 = vmatprep.mubr.f32.mxu0 %v1924_v53  ;;  %v1926_v55 = vsel %vm1798_vm13, %v1705_v39, %v1862_v46  ;;  %3318 = vmatpush3.bf16.msra.mxu1 %v4508_v57  ;;  %v1925_v63 = vsel %vm1797_vm14, %v1703_v37, %v1861_v40 }
 0x46c   : > { %v1865_v58 = vmul.f32 0.01, %v1709_v51  ;;  %v1864_v60 = vmul.f32 0.01, %v1550_v52  ;;  %2265 = vmatprep.mubr.f32.mxu1 %v1926_v55  ;;  %v1553_v62 = vpop.f32.mrb[6].mxu0  ;;  %2121 = vmatmul.mubr.f32.gmra.mrb[34].mxu0 %v1923_v56  ;;  %vm1800_vm15 = vcmp.ge.f32.partialorder %v1550_v52, 0.0 }
 0x46d   : > { %v1866_v0 = vmul.f32 0.01, %v1711_v54  ;;  %v1554_v1 = vadd.f32 %v1553_v62, %v4530_v2  ;;  %v1714_v4 = vpop.f32.mrb[6].mxu1  ;;  %v1555_v7 = vpop.f32.mrb[7].mxu0  ;;  %vm1802_vm0 = vcmp.ge.f32.partialorder %v1711_v54, 0.0  ;;  %vm1799_vm2 = vcmp.ge.f32.partialorder %v1548_v48, 0.0  ;;  %3269 = vmatpush3.bf16.msra.mxu0 %v4565_v26  ;;  %3311 = vmatprep.subr.bf16.mxu1 %v4565_v26 }
 0x46e   : > { %v1715_v57 = vadd.f32 %v1714_v4, %v4532_v3  ;;  %2266 = vmatmul.mubr.f32.gmra.mrb[34].mxu1 %v1925_v63  ;;  %v1556_v8 = vadd.f32 %v1555_v7, %v4534_v5  ;;  %v1716_v9 = vpop.f32.mrb[7].mxu1  ;;  %v1928_v10 = vsel %vm1800_vm15, %v1550_v52, %v1864_v60  ;;  %v1927_v11 = vsel %vm1799_vm2, %v1548_v48, %v1863_v47 }
 0x46f   : > { %v1867_v12 = vmul.f32 0.01, %v1554_v1  ;;  %v1717_v18 = vadd.f32 %v1716_v9, %v4536_v6  ;;  %2125 = vmatprep.mubr.f32.mxu0 %v1928_v10  ;;  %v1930_v19 = vsel %vm1802_vm0, %v1711_v54, %v1866_v0  ;;  %vm1801_vm1 = vcmp.ge.f32.partialorder %v1709_v51, 0.0  ;;  %3271 = vmatprep.subr.bf16.mxu0 %v4568_v28 }
 0x470   : > { %v1869_v22 = vmul.f32 0.01, %v1715_v57  ;;  %v1868_v23 = vmul.f32 0.01, %v1556_v8  ;;  %2270 = vmatprep.mubr.f32.mxu1 %v1930_v19  ;;  %v1559_v24 = vpop.f32.mrb[8].mxu0  ;;  %2126 = vmatmul.mubr.f32.gmra.mrb[36].mxu0 %v1927_v11  ;;  %v1929_v25 = vsel %vm1801_vm1, %v1709_v51, %v1865_v58  ;;  %vm1804_vm3 = vcmp.ge.f32.partialorder %v1556_v8, 0.0 }
 0x471   : > { %v1870_v13 = vmul.f32 0.01, %v1717_v18  ;;  %v1560_v27 = vadd.f32 %v1559_v24, %v4530_v2  ;;  %v1720_v14 = vpop.f32.mrb[8].mxu1  ;;  %v1561_v29 = vpop.f32.mrb[9].mxu0  ;;  %vm1806_vm4 = vcmp.ge.f32.partialorder %v1717_v18, 0.0  ;;  %vm1803_vm5 = vcmp.ge.f32.partialorder %v1554_v1, 0.0  ;;  %3273 = vmatpush3.bf16.msra.mxu0 %v4568_v28  ;;  %3319 = vmatpush3.bf16.msra.mxu1 %v4565_v26 }
 0x472   : > { %v1721_v30 = vadd.f32 %v1720_v14, %v4532_v3  ;;  %2271 = vmatmul.mubr.f32.gmra.mrb[36].mxu1 %v1929_v25  ;;  %v1562_v31 = vadd.f32 %v1561_v29, %v4534_v5  ;;  %v1722_v16 = vpop.f32.mrb[9].mxu1  ;;  %v1932_v17 = vsel %vm1804_vm3, %v1556_v8, %v1868_v23  ;;  %v1931_v34 = vsel %vm1803_vm5, %v1554_v1, %v1867_v12 }
 0x473   : > { %v1871_v35 = vmul.f32 0.01, %v1560_v27  ;;  %v1723_v36 = vadd.f32 %v1722_v16, %v4536_v6  ;;  %2130 = vmatprep.mubr.f32.mxu0 %v1932_v17  ;;  %v1934_v37 = vsel %vm1806_vm4, %v1717_v18, %v1870_v13  ;;  %vm1805_vm6 = vcmp.ge.f32.partialorder %v1715_v57, 0.0  ;;  %3275 = vmatprep.subr.bf16.mxu0 %v4570_v32 }
 0x474   : > { %v1873_v38 = vmul.f32 0.01, %v1721_v30  ;;  %v1872_v20 = vmul.f32 0.01, %v1562_v31  ;;  %2275 = vmatprep.mubr.f32.mxu1 %v1934_v37  ;;  %v1565_v26 = vpop.f32.mrb[10].mxu0  ;;  %2131 = vmatmul.mubr.f32.gmra.mrb[38].mxu0 %v1931_v34  ;;  %v1933_v21 = vsel %vm1805_vm6, %v1715_v57, %v1869_v22  ;;  %vm1808_vm7 = vcmp.ge.f32.partialorder %v1562_v31, 0.0 }
 0x475   : > { %v1874_v15 = vmul.f32 0.01, %v1723_v36  ;;  %v1566_v39 = vadd.f32 %v1565_v26, %v4530_v2  ;;  %v1726_v40 = vpop.f32.mrb[10].mxu1  ;;  %v1567_v41 = vpop.f32.mrb[11].mxu0  ;;  %vm1810_vm8 = vcmp.ge.f32.partialorder %v1723_v36, 0.0  ;;  %vm1807_vm9 = vcmp.ge.f32.partialorder %v1560_v27, 0.0  ;;  %3277 = vmatpush3.bf16.msra.mxu0 %v4570_v32  ;;  %3312 = vmatprep.subr.bf16.mxu1 %v4568_v28 }
 0x476   : > { %v1727_v42 = vadd.f32 %v1726_v40, %v4532_v3  ;;  %2276 = vmatmul.mubr.f32.gmra.mrb[38].mxu1 %v1933_v21  ;;  %v1568_v44 = vadd.f32 %v1567_v41, %v4534_v5  ;;  %v1728_v45 = vpop.f32.mrb[11].mxu1  ;;  %v1936_v46 = vsel %vm1808_vm7, %v1562_v31, %v1872_v20  ;;  %v1935_v48 = vsel %vm1807_vm9, %v1560_v27, %v1871_v35 }
 0x477   : > { %v1875_v49 = vmul.f32 0.01, %v1566_v39  ;;  %v1729_v50 = vadd.f32 %v1728_v45, %v4536_v6  ;;  %2135 = vmatprep.mubr.f32.mxu0 %v1936_v46  ;;  %v1938_v51 = vsel %vm1810_vm8, %v1723_v36, %v1874_v15  ;;  %vm1809_vm10 = vcmp.ge.f32.partialorder %v1721_v30, 0.0  ;;  %3279 = vmatprep.subr.bf16.mxu0 %v4572_v33 }
 0x478   : > { %v1877_v52 = vmul.f32 0.01, %v1727_v42  ;;  %v1876_v43 = vmul.f32 0.01, %v1568_v44  ;;  %2280 = vmatprep.mubr.f32.mxu1 %v1938_v51  ;;  %v1571_v53 = vpop.f32.mrb[12].mxu0  ;;  %2136 = vmatmul.mubr.f32.gmra.mrb[40].mxu0 %v1935_v48  ;;  %v1937_v47 = vsel %vm1809_vm10, %v1721_v30, %v1873_v38  ;;  %vm1812_vm11 = vcmp.ge.f32.partialorder %v1568_v44, 0.0 }
 0x479   : > { %v1878_v54 = vmul.f32 0.01, %v1729_v50  ;;  %v1572_v55 = vadd.f32 %v1571_v53, %v4530_v2  ;;  %v1732_v56 = vpop.f32.mrb[12].mxu1  ;;  %v1573_v58 = vpop.f32.mrb[13].mxu0  ;;  %vm1814_vm12 = vcmp.ge.f32.partialorder %v1729_v50, 0.0  ;;  %vm1811_vm13 = vcmp.ge.f32.partialorder %v1566_v39, 0.0  ;;  %3281 = vmatpush3.bf16.msra.mxu0 %v4572_v33  ;;  %3320 = vmatpush3.bf16.msra.mxu1 %v4568_v28 }
 0x47a   : > { %v1733_v60 = vadd.f32 %v1732_v56, %v4532_v3  ;;  %2281 = vmatmul.mubr.f32.gmra.mrb[40].mxu1 %v1937_v47  ;;  %v1574_v62 = vadd.f32 %v1573_v58, %v4534_v5  ;;  %v1734_v63 = vpop.f32.mrb[13].mxu1  ;;  %v1940_v0 = vsel %vm1812_vm11, %v1568_v44, %v1876_v43  ;;  %v1939_v1 = vsel %vm1811_vm13, %v1566_v39, %v1875_v49 }
 0x47b   : > { %v1879_v4 = vmul.f32 0.01, %v1572_v55  ;;  %v1735_v7 = vadd.f32 %v1734_v63, %v4536_v6  ;;  %2140 = vmatprep.mubr.f32.mxu0 %v1940_v0  ;;  %v1942_v57 = vsel %vm1814_vm12, %v1729_v50, %v1878_v54  ;;  %vm1813_vm14 = vcmp.ge.f32.partialorder %v1727_v42, 0.0  ;;  %3313 = vmatprep.subr.bf16.mxu1 %v4570_v32 }
 0x47c   : > { %v1881_v8 = vmul.f32 0.01, %v1733_v60  ;;  %v1880_v9 = vmul.f32 0.01, %v1574_v62  ;;  %2285 = vmatprep.mubr.f32.mxu1 %v1942_v57  ;;  %v1577_v28 = vpop.f32.mrb[14].mxu0  ;;  %2141 = vmatmul.mubr.f32.gmra.mrb[42].mxu0 %v1939_v1  ;;  %v1941_v10 = vsel %vm1813_vm14, %v1727_v42, %v1877_v52  ;;  %vm1816_vm15 = vcmp.ge.f32.partialorder %v1574_v62, 0.0 }
 0x47d   : > { %v1882_v11 = vmul.f32 0.01, %v1735_v7  ;;  %v1578_v12 = vadd.f32 %v1577_v28, %v4530_v2  ;;  %v1738_v18 = vpop.f32.mrb[14].mxu1  ;;  %v1579_v19 = vpop.f32.mrb[15].mxu0  ;;  %vm1818_vm0 = vcmp.ge.f32.partialorder %v1735_v7, 0.0  ;;  %vm1815_vm2 = vcmp.ge.f32.partialorder %v1572_v55, 0.0  ;;  %3321 = vmatpush3.bf16.msra.mxu1 %v4570_v32 }
 0x47e   : > { %v1739_v22 = vadd.f32 %v1738_v18, %v4532_v3  ;;  %2286 = vmatmul.mubr.f32.gmra.mrb[42].mxu1 %v1941_v10  ;;  %v1580_v23 = vadd.f32 %v1579_v19, %v4534_v5  ;;  %v1740_v24 = vpop.f32.mrb[15].mxu1  ;;  %v1944_v25 = vsel %vm1816_vm15, %v1574_v62, %v1880_v9  ;;  %v1943_v13 = vsel %vm1815_vm2, %v1572_v55, %v1879_v4 }
 0x47f   : > { %v1883_v27 = vmul.f32 0.01, %v1578_v12  ;;  %v1741_v14 = vadd.f32 %v1740_v24, %v4536_v6  ;;  %2145 = vmatprep.mubr.f32.mxu0 %v1944_v25  ;;  %v1946_v29 = vsel %vm1818_vm0, %v1735_v7, %v1882_v11  ;;  %vm1817_vm1 = vcmp.ge.f32.partialorder %v1733_v60, 0.0  ;;  %3314 = vmatprep.subr.bf16.mxu1 %v4572_v33 }
 0x480   : > { %v1885_v30 = vmul.f32 0.01, %v1739_v22  ;;  %v1884_v31 = vmul.f32 0.01, %v1580_v23  ;;  %2290 = vmatprep.mubr.f32.mxu1 %v1946_v29  ;;  %v1583_v32 = vpop.f32.mrb[16].mxu0  ;;  %2146 = vmatmul.mubr.f32.gmra.mrb[44].mxu0 %v1943_v13  ;;  %v1945_v16 = vsel %vm1817_vm1, %v1733_v60, %v1881_v8  ;;  %vm1820_vm3 = vcmp.ge.f32.partialorder %v1580_v23, 0.0 }
 0x481   : > { %v1886_v17 = vmul.f32 0.01, %v1741_v14  ;;  %v1584_v34 = vadd.f32 %v1583_v32, %v4530_v2  ;;  %v1744_v35 = vpop.f32.mrb[16].mxu1  ;;  %v1585_v36 = vpop.f32.mrb[17].mxu0  ;;  %vm1822_vm4 = vcmp.ge.f32.partialorder %v1741_v14, 0.0  ;;  %vm1819_vm5 = vcmp.ge.f32.partialorder %v1578_v12, 0.0  ;;  %3322 = vmatpush3.bf16.msra.mxu1 %v4572_v33 }
 0x482   : > { %v1745_v37 = vadd.f32 %v1744_v35, %v4532_v3  ;;  %2291 = vmatmul.mubr.f32.gmra.mrb[44].mxu1 %v1945_v16  ;;  %v1586_v38 = vadd.f32 %v1585_v36, %v4534_v5  ;;  %v1746_v20 = vpop.f32.mrb[17].mxu1  ;;  %v1948_v26 = vsel %vm1820_vm3, %v1580_v23, %v1884_v31  ;;  %v1947_v21 = vsel %vm1819_vm5, %v1578_v12, %v1883_v27 }
 0x483   : > { %v1887_v15 = vmul.f32 0.01, %v1584_v34  ;;  %v1747_v39 = vadd.f32 %v1746_v20, %v4536_v6  ;;  %2150 = vmatprep.mubr.f32.mxu0 %v1948_v26  ;;  %v1950_v40 = vsel %vm1822_vm4, %v1741_v14, %v1886_v17  ;;  %vm1821_vm6 = vcmp.ge.f32.partialorder %v1739_v22, 0.0 }
 0x484   : > { %v1889_v41 = vmul.f32 0.01, %v1745_v37  ;;  %v1888_v42 = vmul.f32 0.01, %v1586_v38  ;;  %2295 = vmatprep.mubr.f32.mxu1 %v1950_v40  ;;  %v1589_v44 = vpop.f32.mrb[18].mxu0  ;;  %2151 = vmatmul.mubr.f32.gmra.mrb[46].mxu0 %v1947_v21  ;;  %v1949_v33 = vsel %vm1821_vm6, %v1739_v22, %v1885_v30  ;;  %vm1824_vm7 = vcmp.ge.f32.partialorder %v1586_v38, 0.0 }
 0x485   : > { %v1890_v45 = vmul.f32 0.01, %v1747_v39  ;;  %v1590_v46 = vadd.f32 %v1589_v44, %v4530_v2  ;;  %v1750_v48 = vpop.f32.mrb[18].mxu1  ;;  %v1591_v49 = vpop.f32.mrb[19].mxu0  ;;  %vm1826_vm8 = vcmp.ge.f32.partialorder %v1747_v39, 0.0  ;;  %vm1823_vm9 = vcmp.ge.f32.partialorder %v1584_v34, 0.0 }
 0x486   : > { %v1751_v50 = vadd.f32 %v1750_v48, %v4532_v3  ;;  %2296 = vmatmul.mubr.f32.gmra.mrb[46].mxu1 %v1949_v33  ;;  %v1592_v51 = vadd.f32 %v1591_v49, %v4534_v5  ;;  %v1752_v52 = vpop.f32.mrb[19].mxu1  ;;  %v1952_v43 = vsel %vm1824_vm7, %v1586_v38, %v1888_v42  ;;  %v1951_v53 = vsel %vm1823_vm9, %v1584_v34, %v1887_v15 }
 0x487   : > { %v1891_v47 = vmul.f32 0.01, %v1590_v46  ;;  %v1753_v54 = vadd.f32 %v1752_v52, %v4536_v6  ;;  %2155 = vmatprep.mubr.f32.mxu0 %v1952_v43  ;;  %v1954_v55 = vsel %vm1826_vm8, %v1747_v39, %v1890_v45  ;;  %vm1825_vm10 = vcmp.ge.f32.partialorder %v1745_v37, 0.0 }
 0x488   : > { %v1893_v56 = vmul.f32 0.01, %v1751_v50  ;;  %v1892_v58 = vmul.f32 0.01, %v1592_v51  ;;  %2300 = vmatprep.mubr.f32.mxu1 %v1954_v55  ;;  %v1595_v60 = vpop.f32.mrb[20].mxu0  ;;  %2156 = vmatmul.mubr.f32.gmra.mrb[48].mxu0 %v1951_v53  ;;  %v1953_v62 = vsel %vm1825_vm10, %v1745_v37, %v1889_v41  ;;  %vm1828_vm11 = vcmp.ge.f32.partialorder %v1592_v51, 0.0 }
 0x489   : > { %v1894_v63 = vmul.f32 0.01, %v1753_v54  ;;  %v1596_v0 = vadd.f32 %v1595_v60, %v4530_v2  ;;  %v1756_v1 = vpop.f32.mrb[20].mxu1  ;;  %v1597_v4 = vpop.f32.mrb[21].mxu0  ;;  %vm1830_vm12 = vcmp.ge.f32.partialorder %v1753_v54, 0.0  ;;  %vm1827_vm13 = vcmp.ge.f32.partialorder %v1590_v46, 0.0 }
 0x48a   : > { %v1757_v7 = vadd.f32 %v1756_v1, %v4532_v3  ;;  %2301 = vmatmul.mubr.f32.gmra.mrb[48].mxu1 %v1953_v62  ;;  %v1598_v57 = vadd.f32 %v1597_v4, %v4534_v5  ;;  %v1758_v8 = vpop.f32.mrb[21].mxu1  ;;  %v1956_v9 = vsel %vm1828_vm11, %v1592_v51, %v1892_v58  ;;  %v1955_v28 = vsel %vm1827_vm13, %v1590_v46, %v1891_v47 }
 0x48b   : > { %v1895_v10 = vmul.f32 0.01, %v1596_v0  ;;  %v1759_v11 = vadd.f32 %v1758_v8, %v4536_v6  ;;  %2160 = vmatprep.mubr.f32.mxu0 %v1956_v9  ;;  %v1958_v12 = vsel %vm1830_vm12, %v1753_v54, %v1894_v63  ;;  %vm1829_vm14 = vcmp.ge.f32.partialorder %v1751_v50, 0.0 }
 0x48c   : > { %v1897_v18 = vmul.f32 0.01, %v1757_v7  ;;  %v1896_v19 = vmul.f32 0.01, %v1598_v57  ;;  %2305 = vmatprep.mubr.f32.mxu1 %v1958_v12  ;;  %v1601_v22 = vpop.f32.mrb[22].mxu0  ;;  %2161 = vmatmul.mubr.f32.gmra.mrb[50].mxu0 %v1955_v28  ;;  %v1957_v23 = vsel %vm1829_vm14, %v1751_v50, %v1893_v56  ;;  %vm1832_vm15 = vcmp.ge.f32.partialorder %v1598_v57, 0.0 }
 0x48d   : > { %v1898_v24 = vmul.f32 0.01, %v1759_v11  ;;  %v1602_v25 = vadd.f32 %v1601_v22, %v4530_v2  ;;  %v1762_v13 = vpop.f32.mrb[22].mxu1  ;;  %v1603_v27 = vpop.f32.mrb[23].mxu0  ;;  %vm1834_vm0 = vcmp.ge.f32.partialorder %v1759_v11, 0.0  ;;  %vm1831_vm2 = vcmp.ge.f32.partialorder %v1596_v0, 0.0 }
 0x48e   : > { %v1763_v14 = vadd.f32 %v1762_v13, %v4532_v3  ;;  %2306 = vmatmul.mubr.f32.gmra.mrb[50].mxu1 %v1957_v23  ;;  %v1604_v29 = vadd.f32 %v1603_v27, %v4534_v5  ;;  %v1764_v30 = vpop.f32.mrb[23].mxu1  ;;  %v1960_v31 = vsel %vm1832_vm15, %v1598_v57, %v1896_v19  ;;  %v1959_v32 = vsel %vm1831_vm2, %v1596_v0, %v1895_v10 }
 0x48f   : > { %v1899_v16 = vmul.f32 0.01, %v1602_v25  ;;  %v1765_v17 = vadd.f32 %v1764_v30, %v4536_v6  ;;  %2165 = vmatprep.mubr.f32.mxu0 %v1960_v31  ;;  %v1962_v34 = vsel %vm1834_vm0, %v1759_v11, %v1898_v24  ;;  %vm1833_vm1 = vcmp.ge.f32.partialorder %v1757_v7, 0.0 }
 0x490   : > { %v1901_v35 = vmul.f32 0.01, %v1763_v14  ;;  %v1900_v36 = vmul.f32 0.01, %v1604_v29  ;;  %2310 = vmatprep.mubr.f32.mxu1 %v1962_v34  ;;  %v1607_v37 = vpop.f32.mrb[24].mxu0  ;;  %2166 = vmatmul.mubr.f32.gmra.mrb[52].mxu0 %v1959_v32  ;;  %v1961_v38 = vsel %vm1833_vm1, %v1757_v7, %v1897_v18  ;;  %vm1836_vm3 = vcmp.ge.f32.partialorder %v1604_v29, 0.0 }
 0x491   : > { %v1902_v20 = vmul.f32 0.01, %v1765_v17  ;;  %v1608_v26 = vadd.f32 %v1607_v37, %v4530_v2  ;;  %v1768_v21 = vpop.f32.mrb[24].mxu1  ;;  %v1609_v15 = vpop.f32.mrb[25].mxu0  ;;  %vm1838_vm4 = vcmp.ge.f32.partialorder %v1765_v17, 0.0  ;;  %vm1835_vm5 = vcmp.ge.f32.partialorder %v1602_v25, 0.0 }
 0x492   : > { %v1769_v39 = vadd.f32 %v1768_v21, %v4532_v3  ;;  %2311 = vmatmul.mubr.f32.gmra.mrb[52].mxu1 %v1961_v38  ;;  %v1610_v40 = vadd.f32 %v1609_v15, %v4534_v5  ;;  %v1770_v41 = vpop.f32.mrb[25].mxu1  ;;  %v1964_v42 = vsel %vm1836_vm3, %v1604_v29, %v1900_v36  ;;  %v1963_v44 = vsel %vm1835_vm5, %v1602_v25, %v1899_v16 }
 0x493   : > { %v1903_v33 = vmul.f32 0.01, %v1608_v26  ;;  %v1771_v45 = vadd.f32 %v1770_v41, %v4536_v6  ;;  %2170 = vmatprep.mubr.f32.mxu0 %v1964_v42  ;;  %v1966_v46 = vsel %vm1838_vm4, %v1765_v17, %v1902_v20  ;;  %vm1837_vm6 = vcmp.ge.f32.partialorder %v1763_v14, 0.0  ;;  %v2399_v41 = vld [vmem:[%s4762_s5 + $0x50] sm:$0xff]  ;;  %v2400_v42 = vld [vmem:[%s4762_s5 + $0x58] sm:$0xff] }
 0x494   : > { %v1905_v48 = vmul.f32 0.01, %v1769_v39  ;;  %v1904_v49 = vmul.f32 0.01, %v1610_v40  ;;  %2315 = vmatprep.mubr.f32.mxu1 %v1966_v46  ;;  %v1613_v50 = vpop.f32.mrb[26].mxu0  ;;  %2171 = vmatmul.mubr.f32.gmra.mrb[54].mxu0 %v1963_v44  ;;  %v1965_v51 = vsel %vm1837_vm6, %v1763_v14, %v1901_v35  ;;  %vm1840_vm7 = vcmp.ge.f32.partialorder %v1610_v40, 0.0 }
 0x495   : > { %v1906_v52 = vmul.f32 0.01, %v1771_v45  ;;  %v1614_v43 = vadd.f32 %v1613_v50, %v4530_v2  ;;  %v1774_v53 = vpop.f32.mrb[26].mxu1  ;;  %v1615_v47 = vpop.f32.mrb[27].mxu0  ;;  %vm1842_vm8 = vcmp.ge.f32.partialorder %v1771_v45, 0.0  ;;  %vm1839_vm9 = vcmp.ge.f32.partialorder %v1608_v26, 0.0 }
 0x496   : > { %v1775_v54 = vadd.f32 %v1774_v53, %v4532_v3  ;;  %2316 = vmatmul.mubr.f32.gmra.mrb[54].mxu1 %v1965_v51  ;;  %v1616_v55 = vadd.f32 %v1615_v47, %v4534_v5  ;;  %v1776_v56 = vpop.f32.mrb[27].mxu1  ;;  %v1968_v58 = vsel %vm1840_vm7, %v1610_v40, %v1904_v49  ;;  %v1967_v60 = vsel %vm1839_vm9, %v1608_v26, %v1903_v33  ;;  %v2401_v33 = vld [vmem:[%s4762_s5 + $0x60] sm:$0xff]  ;;  %v2404_v49 = vld [vmem:[%s4762_s5 + $0x78] sm:$0xff] }
 0x497   : > { %v1907_v62 = vmul.f32 0.01, %v1614_v43  ;;  %v1777_v63 = vadd.f32 %v1776_v56, %v4536_v6  ;;  %2175 = vmatprep.mubr.f32.mxu0 %v1968_v58  ;;  %v1970_v0 = vsel %vm1842_vm8, %v1771_v45, %v1906_v52  ;;  %vm1841_vm10 = vcmp.ge.f32.partialorder %v1769_v39, 0.0  ;;  %v2402_v45 = vld [vmem:[%s4762_s5 + $0x68] sm:$0xff] }
 0x498   : > { %v1909_v1 = vmul.f32 0.01, %v1775_v54  ;;  %v1908_v4 = vmul.f32 0.01, %v1616_v55  ;;  %2320 = vmatprep.mubr.f32.mxu1 %v1970_v0  ;;  %v1619_v7 = vpop.f32.mrb[28].mxu0  ;;  %2176 = vmatmul.mubr.f32.gmra.mrb[56].mxu0 %v1967_v60  ;;  %v1969_v57 = vsel %vm1841_vm10, %v1769_v39, %v1905_v48  ;;  %vm1844_vm11 = vcmp.ge.f32.partialorder %v1616_v55, 0.0 }
 0x499   : > { %v1910_v8 = vmul.f32 0.01, %v1777_v63  ;;  %v1620_v9 = vadd.f32 %v1619_v7, %v4530_v2  ;;  %v1780_v28 = vpop.f32.mrb[28].mxu1  ;;  %v1621_v10 = vpop.f32.mrb[29].mxu0  ;;  %vm1846_vm12 = vcmp.ge.f32.partialorder %v1777_v63, 0.0  ;;  %vm1843_vm13 = vcmp.ge.f32.partialorder %v1614_v43, 0.0 }
 0x49a   : > { %v1781_v11 = vadd.f32 %v1780_v28, %v4532_v3  ;;  %2321 = vmatmul.mubr.f32.gmra.mrb[56].mxu1 %v1969_v57  ;;  %v1622_v12 = vadd.f32 %v1621_v10, %v4534_v5  ;;  %v1782_v18 = vpop.f32.mrb[29].mxu1  ;;  %v1972_v19 = vsel %vm1844_vm11, %v1616_v55, %v1908_v4  ;;  %v1971_v22 = vsel %vm1843_vm13, %v1614_v43, %v1907_v62  ;;  %v2403_v48 = vld [vmem:[%s4762_s5 + $0x70] sm:$0xff] }
 0x49b   : > { %v1911_v23 = vmul.f32 0.01, %v1620_v9  ;;  %v1783_v24 = vadd.f32 %v1782_v18, %v4536_v6  ;;  %2180 = vmatprep.mubr.f32.mxu0 %v1972_v19  ;;  %v1974_v25 = vsel %vm1846_vm12, %v1777_v63, %v1910_v8  ;;  %vm1845_vm14 = vcmp.ge.f32.partialorder %v1775_v54, 0.0 }
 0x49c   : > { %v1913_v13 = vmul.f32 0.01, %v1781_v11  ;;  %v1912_v27 = vmul.f32 0.01, %v1622_v12  ;;  %2325 = vmatprep.mubr.f32.mxu1 %v1974_v25  ;;  %v1625_v14 = vpop.f32.mrb[30].mxu0  ;;  %2181 = vmatmul.mubr.f32.gmra.mrb[58].mxu0 %v1971_v22  ;;  %v1973_v29 = vsel %vm1845_vm14, %v1775_v54, %v1909_v1  ;;  %vm1848_vm15 = vcmp.ge.f32.partialorder %v1622_v12, 0.0 }
 0x49d   : > { %v1914_v30 = vmul.f32 0.01, %v1783_v24  ;;  %v1626_v31 = vadd.f32 %v1625_v14, %v4530_v2  ;;  %v1786_v32 = vpop.f32.mrb[30].mxu1  ;;  %v1627_v16 = vpop.f32.mrb[31].mxu0  ;;  %vm1850_vm0 = vcmp.ge.f32.partialorder %v1783_v24, 0.0  ;;  %vm1847_vm2 = vcmp.ge.f32.partialorder %v1620_v9, 0.0 }
 0x49e   : > { %v1787_v17 = vadd.f32 %v1786_v32, %v4532_v3  ;;  %2326 = vmatmul.mubr.f32.gmra.mrb[58].mxu1 %v1973_v29  ;;  %v1628_v34 = vadd.f32 %v1627_v16, %v4534_v5  ;;  %v1788_v35 = vpop.f32.mrb[31].mxu1  ;;  %v1976_v36 = vsel %vm1848_vm15, %v1622_v12, %v1912_v27  ;;  %v1975_v37 = vsel %vm1847_vm2, %v1620_v9, %v1911_v23 }
 0x49f   : > { %v1915_v38 = vmul.f32 0.01, %v1626_v31  ;;  %v1789_v20 = vadd.f32 %v1788_v35, %v4536_v6  ;;  %2185 = vmatprep.mubr.f32.mxu0 %v1976_v36  ;;  %v1978_v26 = vsel %vm1850_vm0, %v1783_v24, %v1914_v30  ;;  %vm1849_vm1 = vcmp.ge.f32.partialorder %v1781_v11, 0.0 }
 0x4a0   : > { %v1917_v21 = vmul.f32 0.01, %v1787_v17  ;;  %v1916_v2 = vmul.f32 0.01, %v1628_v34  ;;  %2330 = vmatprep.mubr.f32.mxu1 %v1978_v26  ;;  %2186 = vmatmul.mubr.f32.gmra.mrb[60].mxu0 %v1975_v37  ;;  %vm1852_vm3 = vcmp.ge.f32.partialorder %v1628_v34, 0.0  ;;  %v1977_v39 = vsel %vm1849_vm1, %v1781_v11, %v1913_v13 }
 0x4a1   : > { %v1918_v15 = vmul.f32 0.01, %v1789_v20  ;;  %vm1854_vm4 = vcmp.ge.f32.partialorder %v1789_v20, 0.0  ;;  %vm1851_vm5 = vcmp.ge.f32.partialorder %v1626_v31, 0.0  ;;  %vm1853_vm6 = vcmp.ge.f32.partialorder %v1787_v17, 0.0 }
 0x4a2   : > { %2331 = vmatmul.mubr.f32.gmra.mrb[60].mxu1 %v1977_v39  ;;  %v1980_v3 = vsel %vm1852_vm3, %v1628_v34, %v1916_v2  ;;  %v1979_v40 = vsel %vm1851_vm5, %v1626_v31, %v1915_v38  ;;  %v1981_v6 = vsel %vm1853_vm6, %v1787_v17, %v1917_v21  ;;  %v3282_v44 = vpack.c.bf16 %v2400_v42, %v2399_v41 }
 0x4a3   : > { %2190 = vmatprep.mubr.f32.mxu0 %v1980_v3  ;;  %v1982_v5 = vsel %vm1854_vm4, %v1789_v20, %v1918_v15  ;;  %v3286_v46 = vpack.c.bf16 %v2402_v45, %v2401_v33  ;;  %v3290_v50 = vpack.c.bf16 %v2404_v49, %v2403_v48  ;;  %v2049_v51 = vsub.s32 1, %v4512_v59 }
 0x4a4   : > { %2335 = vmatprep.mubr.f32.mxu1 %v1982_v5  ;;  %2191 = vmatmul.mubr.f32.gmra.mrb[62].mxu0 %v1979_v40 }
 0x4a5   : > { %3283 = vmatprep.subr.bf16.mxu0 %v3282_v44  ;;  %3315 = vmatprep.subr.bf16.mxu1 %v3282_v44  ;;  %v4674_v43 = vrot.slane %v4518_v61, %v2049_v51 }
 0x4a6   : > { %2336 = vmatmul.mubr.f32.gmra.mrb[62].mxu1 %v1981_v6  ;;  %3285 = vmatpush3.bf16.msra.mxu0 %v3282_v44 }
 0x4a7   : > { %3323 = vmatpush3.bf16.msra.mxu1 %v3282_v44  ;;  %3287 = vmatprep.subr.bf16.mxu0 %v3286_v46 }
 0x4a8   : > { %3316 = vmatprep.subr.bf16.mxu1 %v3286_v46 }
 0x4aa   : > { %3289 = vmatpush3.bf16.msra.mxu0 %v3286_v46 }
 0x4ab   : > { %3324 = vmatpush3.bf16.msra.mxu1 %v3286_v46  ;;  %3291 = vmatprep.subr.bf16.mxu0 %v3290_v50 }
 0x4ac   : > { %3317 = vmatprep.subr.bf16.mxu1 %v3290_v50 }
 0x4ae   : > { %3293 = vmatpush3.bf16.msra.mxu0 %v3290_v50 }
 0x4af   : > { %3325 = vmatpush3.bf16.msra.mxu1 %v3290_v50 }
 0x53b   : > { %v2830_v52 = vpop.f32.mrb[32].mxu0 }
 0x53c   : > { %v2831_v53 = vpop.f32.mrb[33].mxu0  ;;  %v2910_v47 = vpop.f32.mrb[32].mxu1 }
 0x53d   : > { %v2832_v54 = vadd.f32 %v2831_v53, %v2830_v52  ;;  %v2911_v55 = vpop.f32.mrb[33].mxu1 }
 0x53e   : > { %v2912_v58 = vadd.f32 %v2911_v55, %v2910_v47 }
 0x53f   : > { %v2118_v56 = vadd.f32 %v2832_v54, %v4674_v43  ;;  %v2833_v60 = vpop.f32.mrb[34].mxu0 }
 0x540   : > { %v2834_v62 = vpop.f32.mrb[35].mxu0 }
 0x541   : > { %v2263_v63 = vadd.f32 %v2912_v58, %v2118_v56  ;;  %v2913_v0 = vpop.f32.mrb[34].mxu1  ;;  %v2835_v1 = vadd.f32 %v2834_v62, %v2833_v60 }
 0x542   : > { %v2914_v4 = vpop.f32.mrb[35].mxu1 }
 0x543   : > { %v2123_v7 = vadd.f32 %v2835_v1, %v4674_v43  ;;  %v2915_v57 = vadd.f32 %v2914_v4, %v2913_v0  ;;  %v2836_v8 = vpop.f32.mrb[36].mxu0  ;;  %vm2341_vm7 = vcmp.ge.f32.partialorder %v2263_v63, 0.0  ;;  %v2357_v61 = vmul.f32 0.01, %v2263_v63 }
 0x544   : > { %v2837_v9 = vpop.f32.mrb[37].mxu0 }
 0x545   : > { %v2268_v28 = vadd.f32 %v2915_v57, %v2123_v7  ;;  %v2916_v10 = vpop.f32.mrb[36].mxu1  ;;  %v2838_v11 = vadd.f32 %v2837_v9, %v2836_v8  ;;  %v2373_v12 = vsel %vm2341_vm7, %v2263_v63, %v2357_v61 }
 0x546   : > { %v2917_v18 = vpop.f32.mrb[37].mxu1  ;;  %3078 = vmatprep.mubr.f32.mxu0 %v2373_v12 }
 0x547   : > { %vm2342_vm8 = vcmp.ge.f32.partialorder %v2268_v28, 0.0  ;;  %v2358_v19 = vmul.f32 0.01, %v2268_v28  ;;  %v2128_v22 = vadd.f32 %v2838_v11, %v4674_v43  ;;  %v2918_v23 = vadd.f32 %v2917_v18, %v2916_v10  ;;  %v2839_v24 = vpop.f32.mrb[38].mxu0 }
 0x548   : > { %v2840_v25 = vpop.f32.mrb[39].mxu0 }
 0x549   : > { %v2273_v13 = vadd.f32 %v2918_v23, %v2128_v22  ;;  %v2919_v27 = vpop.f32.mrb[38].mxu1  ;;  %v2841_v14 = vadd.f32 %v2840_v25, %v2839_v24  ;;  %v2374_v29 = vsel %vm2342_vm8, %v2268_v28, %v2358_v19 }
 0x54a   : > { %v2920_v30 = vpop.f32.mrb[39].mxu1  ;;  %3079 = vmatmul.mubr.f32.vlgmr.msra.gmra.mrb[64].mxu0 %v2374_v29 }
 0x54b   : > { %v2133_v31 = vadd.f32 %v2841_v14, %v4674_v43  ;;  %v2921_v32 = vadd.f32 %v2920_v30, %v2919_v27  ;;  %v2842_v16 = vpop.f32.mrb[40].mxu0  ;;  %vm2343_vm9 = vcmp.ge.f32.partialorder %v2273_v13, 0.0  ;;  %v2359_v17 = vmul.f32 0.01, %v2273_v13 }
 0x54c   : > { %v2843_v34 = vpop.f32.mrb[41].mxu0 }
 0x54d   : > { %v2278_v35 = vadd.f32 %v2921_v32, %v2133_v31  ;;  %v2922_v36 = vpop.f32.mrb[40].mxu1  ;;  %v2844_v37 = vadd.f32 %v2843_v34, %v2842_v16  ;;  %v2375_v38 = vsel %vm2343_vm9, %v2273_v13, %v2359_v17 }
 0x54e   : > { %v2923_v20 = vpop.f32.mrb[41].mxu1  ;;  %3081 = vmatprep.mubr.f32.mxu0 %v2375_v38 }
 0x54f   : > { %v2138_v26 = vadd.f32 %v2844_v37, %v4674_v43  ;;  %v2924_v21 = vadd.f32 %v2923_v20, %v2922_v36  ;;  %v2845_v2 = vpop.f32.mrb[42].mxu0  ;;  %vm2344_vm10 = vcmp.ge.f32.partialorder %v2278_v35, 0.0  ;;  %v2360_v15 = vmul.f32 0.01, %v2278_v35 }
 0x550   : > { %v2846_v39 = vpop.f32.mrb[43].mxu0 }
 0x551   : > { %v2283_v3 = vadd.f32 %v2924_v21, %v2138_v26  ;;  %v2925_v5 = vpop.f32.mrb[42].mxu1  ;;  %v2847_v40 = vadd.f32 %v2846_v39, %v2845_v2  ;;  %v2376_v6 = vsel %vm2344_vm10, %v2278_v35, %v2360_v15 }
 0x552   : > { %v2926_v41 = vpop.f32.mrb[43].mxu1  ;;  %3082 = vmatmul.mubr.f32.gmra.mrb[66].mxu0 %v2376_v6 }
 0x553   : > { %v2143_v42 = vadd.f32 %v2847_v40, %v4674_v43  ;;  %v2927_v44 = vadd.f32 %v2926_v41, %v2925_v5  ;;  %v2848_v33 = vpop.f32.mrb[44].mxu0  ;;  %vm2345_vm11 = vcmp.ge.f32.partialorder %v2283_v3, 0.0  ;;  %v2361_v45 = vmul.f32 0.01, %v2283_v3 }
 0x554   : > { %v2849_v46 = vpop.f32.mrb[45].mxu0 }
 0x555   : > { %v2288_v48 = vadd.f32 %v2927_v44, %v2143_v42  ;;  %v2928_v49 = vpop.f32.mrb[44].mxu1  ;;  %v2850_v50 = vadd.f32 %v2849_v46, %v2848_v33  ;;  %v2377_v51 = vsel %vm2345_vm11, %v2283_v3, %v2361_v45 }
 0x556   : > { %v2929_v52 = vpop.f32.mrb[45].mxu1  ;;  %3084 = vmatprep.mubr.f32.mxu0 %v2377_v51 }
 0x557   : > { %v2148_v53 = vadd.f32 %v2850_v50, %v4674_v43  ;;  %v2930_v47 = vadd.f32 %v2929_v52, %v2928_v49  ;;  %v2851_v54 = vpop.f32.mrb[46].mxu0  ;;  %vm2346_vm12 = vcmp.ge.f32.partialorder %v2288_v48, 0.0  ;;  %v2362_v55 = vmul.f32 0.01, %v2288_v48 }
 0x558   : > { %v2852_v56 = vpop.f32.mrb[47].mxu0 }
 0x559   : > { %v2293_v58 = vadd.f32 %v2930_v47, %v2148_v53  ;;  %v2931_v60 = vpop.f32.mrb[46].mxu1  ;;  %v2853_v62 = vadd.f32 %v2852_v56, %v2851_v54  ;;  %v2378_v63 = vsel %vm2346_vm12, %v2288_v48, %v2362_v55 }
 0x55a   : > { %v2932_v0 = vpop.f32.mrb[47].mxu1  ;;  %3085 = vmatmul.mubr.f32.gmra.mrb[68].mxu0 %v2378_v63 }
 0x55b   : > { %v2153_v1 = vadd.f32 %v2853_v62, %v4674_v43  ;;  %v2933_v4 = vadd.f32 %v2932_v0, %v2931_v60  ;;  %v2854_v7 = vpop.f32.mrb[48].mxu0  ;;  %vm2347_vm13 = vcmp.ge.f32.partialorder %v2293_v58, 0.0  ;;  %v2363_v57 = vmul.f32 0.01, %v2293_v58 }
 0x55c   : > { %v2855_v8 = vpop.f32.mrb[49].mxu0 }
 0x55d   : > { %v2298_v61 = vadd.f32 %v2933_v4, %v2153_v1  ;;  %v2934_v9 = vpop.f32.mrb[48].mxu1  ;;  %v2856_v28 = vadd.f32 %v2855_v8, %v2854_v7  ;;  %v2379_v10 = vsel %vm2347_vm13, %v2293_v58, %v2363_v57 }
 0x55e   : > { %v2935_v11 = vpop.f32.mrb[49].mxu1  ;;  %3087 = vmatprep.mubr.f32.mxu0 %v2379_v10 }
 0x55f   : > { %v2158_v12 = vadd.f32 %v2856_v28, %v4674_v43  ;;  %v2936_v18 = vadd.f32 %v2935_v11, %v2934_v9  ;;  %v2857_v19 = vpop.f32.mrb[50].mxu0  ;;  %vm2348_vm14 = vcmp.ge.f32.partialorder %v2298_v61, 0.0  ;;  %v2364_v22 = vmul.f32 0.01, %v2298_v61 }
 0x560   : > { %v2858_v23 = vpop.f32.mrb[51].mxu0 }
 0x561   : > { %v2303_v24 = vadd.f32 %v2936_v18, %v2158_v12  ;;  %v2937_v25 = vpop.f32.mrb[50].mxu1  ;;  %v2859_v13 = vadd.f32 %v2858_v23, %v2857_v19  ;;  %v2380_v27 = vsel %vm2348_vm14, %v2298_v61, %v2364_v22 }
 0x562   : > { %v2938_v14 = vpop.f32.mrb[51].mxu1  ;;  %3088 = vmatmul.mubr.f32.gmra.mrb[70].mxu0 %v2380_v27 }
 0x563   : > { %v2163_v29 = vadd.f32 %v2859_v13, %v4674_v43  ;;  %v2939_v30 = vadd.f32 %v2938_v14, %v2937_v25  ;;  %v2860_v31 = vpop.f32.mrb[52].mxu0  ;;  %vm2349_vm15 = vcmp.ge.f32.partialorder %v2303_v24, 0.0  ;;  %v2365_v32 = vmul.f32 0.01, %v2303_v24 }
 0x564   : > { %v2861_v16 = vpop.f32.mrb[53].mxu0 }
 0x565   : > { %v2308_v17 = vadd.f32 %v2939_v30, %v2163_v29  ;;  %v2940_v34 = vpop.f32.mrb[52].mxu1  ;;  %v2862_v35 = vadd.f32 %v2861_v16, %v2860_v31  ;;  %v2381_v36 = vsel %vm2349_vm15, %v2303_v24, %v2365_v32 }
 0x566   : > { %v2941_v37 = vpop.f32.mrb[53].mxu1  ;;  %3090 = vmatprep.mubr.f32.mxu1 %v2381_v36 }
 0x567   : > { %vm2350_vm0 = vcmp.ge.f32.partialorder %v2308_v17, 0.0  ;;  %v2366_v38 = vmul.f32 0.01, %v2308_v17  ;;  %v2168_v20 = vadd.f32 %v2862_v35, %v4674_v43  ;;  %v2942_v26 = vadd.f32 %v2941_v37, %v2940_v34  ;;  %v2863_v21 = vpop.f32.mrb[54].mxu0  ;;  %v3410_v34 = vld [vmem:[%s4763_s6] sm:$0xff] }
 0x568   : > { %v2864_v2 = vpop.f32.mrb[55].mxu0 }
 0x569   : > { %v2313_v15 = vadd.f32 %v2942_v26, %v2168_v20  ;;  %v2943_v39 = vpop.f32.mrb[54].mxu1  ;;  %v2865_v3 = vadd.f32 %v2864_v2, %v2863_v21  ;;  %v2382_v5 = vsel %vm2350_vm0, %v2308_v17, %v2366_v38  ;;  %v2407_v17 = vsub.s32 2, %v4512_v59 }
 0x56a   : > { %v2944_v40 = vpop.f32.mrb[55].mxu1  ;;  %3091 = vmatmul.mubr.f32.vlgmr.msra.gmra.mrb[64].mxu1 %v2382_v5 }
 0x56b   : > { %v2173_v6 = vadd.f32 %v2865_v3, %v4674_v43  ;;  %v2945_v41 = vadd.f32 %v2944_v40, %v2943_v39  ;;  %v2866_v42 = vpop.f32.mrb[56].mxu0  ;;  %vm2351_vm2 = vcmp.ge.f32.partialorder %v2313_v15, 0.0  ;;  %v2367_v44 = vmul.f32 0.01, %v2313_v15 }
 0x56c   : > { %v2867_v33 = vpop.f32.mrb[57].mxu0  ;;  %v4696_v35 = vrot.slane %v3410_v34, %v2407_v17 }
 0x56d   : > { %v2318_v45 = vadd.f32 %v2945_v41, %v2173_v6  ;;  %v2946_v46 = vpop.f32.mrb[56].mxu1  ;;  %v2868_v48 = vadd.f32 %v2867_v33, %v2866_v42  ;;  %v2383_v49 = vsel %vm2351_vm2, %v2313_v15, %v2367_v44 }
 0x56e   : > { %v2947_v50 = vpop.f32.mrb[57].mxu1  ;;  %3093 = vmatprep.mubr.f32.mxu1 %v2383_v49 }
 0x56f   : > { %v2178_v51 = vadd.f32 %v2868_v48, %v4674_v43  ;;  %v2948_v52 = vadd.f32 %v2947_v50, %v2946_v46  ;;  %v2869_v53 = vpop.f32.mrb[58].mxu0  ;;  %vm2352_vm1 = vcmp.ge.f32.partialorder %v2318_v45, 0.0  ;;  %v2368_v47 = vmul.f32 0.01, %v2318_v45 }
 0x570   : > { %v2870_v54 = vpop.f32.mrb[59].mxu0 }
 0x571   : > { %v2323_v55 = vadd.f32 %v2948_v52, %v2178_v51  ;;  %v2949_v56 = vpop.f32.mrb[58].mxu1  ;;  %v2871_v58 = vadd.f32 %v2870_v54, %v2869_v53  ;;  %v2384_v60 = vsel %vm2352_vm1, %v2318_v45, %v2368_v47 }
 0x572   : > { %v2950_v62 = vpop.f32.mrb[59].mxu1  ;;  %3094 = vmatmul.mubr.f32.gmra.mrb[66].mxu1 %v2384_v60 }
 0x573   : > { %v2183_v63 = vadd.f32 %v2871_v58, %v4674_v43  ;;  %v2951_v0 = vadd.f32 %v2950_v62, %v2949_v56  ;;  %v2872_v1 = vpop.f32.mrb[60].mxu0  ;;  %vm2353_vm3 = vcmp.ge.f32.partialorder %v2323_v55, 0.0  ;;  %v2369_v4 = vmul.f32 0.01, %v2323_v55 }
 0x574   : > { %v2873_v7 = vpop.f32.mrb[61].mxu0 }
 0x575   : > { %v2328_v57 = vadd.f32 %v2951_v0, %v2183_v63  ;;  %v2952_v8 = vpop.f32.mrb[60].mxu1  ;;  %v2874_v61 = vadd.f32 %v2873_v7, %v2872_v1  ;;  %v2385_v9 = vsel %vm2353_vm3, %v2323_v55, %v2369_v4 }
 0x576   : > { %v2953_v28 = vpop.f32.mrb[61].mxu1  ;;  %3096 = vmatprep.mubr.f32.mxu1 %v2385_v9 }
 0x577   : > { %v2188_v10 = vadd.f32 %v2874_v61, %v4674_v43  ;;  %v2954_v11 = vadd.f32 %v2953_v28, %v2952_v8  ;;  %v2875_v12 = vpop.f32.mrb[62].mxu0  ;;  %vm2354_vm4 = vcmp.ge.f32.partialorder %v2328_v57, 0.0  ;;  %v2370_v18 = vmul.f32 0.01, %v2328_v57 }
 0x578   : > { %v2876_v19 = vpop.f32.mrb[63].mxu0 }
 0x579   : > { %v2333_v22 = vadd.f32 %v2954_v11, %v2188_v10  ;;  %v2955_v23 = vpop.f32.mrb[62].mxu1  ;;  %v2877_v24 = vadd.f32 %v2876_v19, %v2875_v12  ;;  %v2386_v25 = vsel %vm2354_vm4, %v2328_v57, %v2370_v18 }
 0x57a   : > { %v2956_v13 = vpop.f32.mrb[63].mxu1  ;;  %3097 = vmatmul.mubr.f32.gmra.mrb[68].mxu1 %v2386_v25 }
 0x57b   : > { %v2193_v27 = vadd.f32 %v2877_v24, %v4674_v43  ;;  %v2957_v14 = vadd.f32 %v2956_v13, %v2955_v23  ;;  %vm2355_vm5 = vcmp.ge.f32.partialorder %v2333_v22, 0.0  ;;  %v2371_v29 = vmul.f32 0.01, %v2333_v22 }
 0x57d   : > { %v2338_v30 = vadd.f32 %v2957_v14, %v2193_v27  ;;  %v2387_v31 = vsel %vm2355_vm5, %v2333_v22, %v2371_v29 }
 0x57e   : > { %3099 = vmatprep.mubr.f32.mxu1 %v2387_v31 }
 0x57f   : > { %vm2356_vm6 = vcmp.ge.f32.partialorder %v2338_v30, 0.0  ;;  %v2372_v32 = vmul.f32 0.01, %v2338_v30 }
 0x581   : > { %v2388_v16 = vsel %vm2356_vm6, %v2338_v30, %v2372_v32 }
 0x582   : > { %3100 = vmatmul.mubr.f32.gmra.mrb[70].mxu1 %v2388_v16 }
 0x61d   : > { %v3080_v43 = vpop.f32.mrb[64].mxu0 }
 0x61e   : > { %v2481_v36 = vadd.f32 %v3080_v43, %v4696_v35  ;;  %v2475_v37 = vpop.f32.mrb[65].mxu0 }
 0x61f   : > { %v2476_v38 = vadd.f32 %v2475_v37, %v4696_v35 }
 0x620   : > { %vm2555_vm7 = vcmp.ge.f32.partialorder %v2481_v36, 0.0  ;;  %v2571_v20 = vmul.f32 0.01, %v2481_v36 }
 0x621   : > { %vm2554_vm8 = vcmp.ge.f32.partialorder %v2476_v38, 0.0  ;;  %v2570_v26 = vmul.f32 0.01, %v2476_v38 }
 0x622   : > { %v2587_v21 = vsel %vm2555_vm7, %v2481_v36, %v2571_v20 }
 0x623   : > { %2603 = vst [vmem:[%s3644_s2 + $0x8] sm:$0xff] %v2587_v21  ;;  %v2586_v59 = vsel %vm2554_vm8, %v2476_v38, %v2570_v26 }
 0x624   : > { %2602 = vst [vmem:[%s3644_s2] sm:$0xff] %v2586_v59 }
 0x625   : > { %v3083_v2 = vpop.f32.mrb[66].mxu0 }
 0x626   : > { %v2491_v15 = vadd.f32 %v3083_v2, %v4696_v35  ;;  %v2485_v39 = vpop.f32.mrb[67].mxu0 }
 0x627   : > { %v2486_v3 = vadd.f32 %v2485_v39, %v4696_v35 }
 0x628   : > { %vm2557_vm9 = vcmp.ge.f32.partialorder %v2491_v15, 0.0  ;;  %v2573_v5 = vmul.f32 0.01, %v2491_v15 }
 0x629   : > { %vm2556_vm10 = vcmp.ge.f32.partialorder %v2486_v3, 0.0  ;;  %v2572_v40 = vmul.f32 0.01, %v2486_v3 }
 0x62a   : > { %v2589_v6 = vsel %vm2557_vm9, %v2491_v15, %v2573_v5 }
 0x62b   : > { %2605 = vst [vmem:[%s3644_s2 + $0x18] sm:$0xff] %v2589_v6  ;;  %v2588_v41 = vsel %vm2556_vm10, %v2486_v3, %v2572_v40 }
 0x62c   : > { %2604 = vst [vmem:[%s3644_s2 + $0x10] sm:$0xff] %v2588_v41 }
 0x62d   : > { %v3086_v42 = vpop.f32.mrb[68].mxu0 }
 0x62e   : > { %v2501_v44 = vadd.f32 %v3086_v42, %v4696_v35  ;;  %v2495_v33 = vpop.f32.mrb[69].mxu0 }
 0x62f   : > { %v2496_v45 = vadd.f32 %v2495_v33, %v4696_v35 }
 0x630   : > { %vm2559_vm11 = vcmp.ge.f32.partialorder %v2501_v44, 0.0  ;;  %v2575_v46 = vmul.f32 0.01, %v2501_v44 }
 0x631   : > { %vm2558_vm12 = vcmp.ge.f32.partialorder %v2496_v45, 0.0  ;;  %v2574_v48 = vmul.f32 0.01, %v2496_v45 }
 0x632   : > { %v2591_v49 = vsel %vm2559_vm11, %v2501_v44, %v2575_v46 }
 0x633   : > { %2607 = vst [vmem:[%s3644_s2 + $0x28] sm:$0xff] %v2591_v49  ;;  %v2590_v50 = vsel %vm2558_vm12, %v2496_v45, %v2574_v48 }
 0x634   : > { %2606 = vst [vmem:[%s3644_s2 + $0x20] sm:$0xff] %v2590_v50 }
 0x635   : > { %v3089_v51 = vpop.f32.mrb[70].mxu0 }
 0x636   : > { %v2511_v52 = vadd.f32 %v3089_v51, %v4696_v35  ;;  %v2505_v53 = vpop.f32.mrb[71].mxu0 }
 0x637   : > { %v2506_v47 = vadd.f32 %v2505_v53, %v4696_v35 }
 0x638   : > { %vm2561_vm13 = vcmp.ge.f32.partialorder %v2511_v52, 0.0  ;;  %v2577_v54 = vmul.f32 0.01, %v2511_v52 }
 0x639   : > { %vm2560_vm14 = vcmp.ge.f32.partialorder %v2506_v47, 0.0  ;;  %v2576_v55 = vmul.f32 0.01, %v2506_v47 }
 0x63a   : > { %v2593_v56 = vsel %vm2561_vm13, %v2511_v52, %v2577_v54 }
 0x63b   : > { %2609 = vst [vmem:[%s3644_s2 + $0x38] sm:$0xff] %v2593_v56  ;;  %v2592_v58 = vsel %vm2560_vm14, %v2506_v47, %v2576_v55 }
 0x63c   : > { %2608 = vst [vmem:[%s3644_s2 + $0x30] sm:$0xff] %v2592_v58 }
 0x63d   : > { %v3092_v60 = vpop.f32.mrb[64].mxu1 }
 0x63e   : > { %v2521_v62 = vadd.f32 %v3092_v60, %v4696_v35  ;;  %v2515_v63 = vpop.f32.mrb[65].mxu1 }
 0x63f   : > { %v2516_v0 = vadd.f32 %v2515_v63, %v4696_v35 }
 0x640   : > { %vm2563_vm15 = vcmp.ge.f32.partialorder %v2521_v62, 0.0  ;;  %v2579_v1 = vmul.f32 0.01, %v2521_v62 }
 0x641   : > { %vm2562_vm0 = vcmp.ge.f32.partialorder %v2516_v0, 0.0  ;;  %v2578_v4 = vmul.f32 0.01, %v2516_v0 }
 0x642   : > { %v2595_v7 = vsel %vm2563_vm15, %v2521_v62, %v2579_v1 }
 0x643   : > { %2611 = vst [vmem:[%s3644_s2 + $0x48] sm:$0xff] %v2595_v7  ;;  %v2594_v57 = vsel %vm2562_vm0, %v2516_v0, %v2578_v4 }
 0x644   : > { %2610 = vst [vmem:[%s3644_s2 + $0x40] sm:$0xff] %v2594_v57 }
 0x645   : > { %v3095_v8 = vpop.f32.mrb[66].mxu1 }
 0x646   : > { %v2531_v61 = vadd.f32 %v3095_v8, %v4696_v35  ;;  %v2525_v9 = vpop.f32.mrb[67].mxu1 }
 0x647   : > { %v2526_v28 = vadd.f32 %v2525_v9, %v4696_v35 }
 0x648   : > { %vm2565_vm2 = vcmp.ge.f32.partialorder %v2531_v61, 0.0  ;;  %v2581_v10 = vmul.f32 0.01, %v2531_v61 }
 0x649   : > { %vm2564_vm1 = vcmp.ge.f32.partialorder %v2526_v28, 0.0  ;;  %v2580_v11 = vmul.f32 0.01, %v2526_v28 }
 0x64a   : > { %v2597_v12 = vsel %vm2565_vm2, %v2531_v61, %v2581_v10 }
 0x64b   : > { %2613 = vst [vmem:[%s3644_s2 + $0x58] sm:$0xff] %v2597_v12  ;;  %v2596_v18 = vsel %vm2564_vm1, %v2526_v28, %v2580_v11 }
 0x64c   : > { %2612 = vst [vmem:[%s3644_s2 + $0x50] sm:$0xff] %v2596_v18 }
 0x64d   : > { %v3098_v19 = vpop.f32.mrb[68].mxu1 }
 0x64e   : > { %v2541_v22 = vadd.f32 %v3098_v19, %v4696_v35  ;;  %v2535_v23 = vpop.f32.mrb[69].mxu1 }
 0x64f   : > { %v2536_v24 = vadd.f32 %v2535_v23, %v4696_v35 }
 0x650   : > { %vm2567_vm3 = vcmp.ge.f32.partialorder %v2541_v22, 0.0  ;;  %v2583_v25 = vmul.f32 0.01, %v2541_v22 }
 0x651   : > { %vm2566_vm4 = vcmp.ge.f32.partialorder %v2536_v24, 0.0  ;;  %v2582_v13 = vmul.f32 0.01, %v2536_v24 }
 0x652   : > { %v2599_v27 = vsel %vm2567_vm3, %v2541_v22, %v2583_v25 }
 0x653   : > { %2615 = vst [vmem:[%s3644_s2 + $0x68] sm:$0xff] %v2599_v27  ;;  %v2598_v14 = vsel %vm2566_vm4, %v2536_v24, %v2582_v13 }
 0x654   : > { %2614 = vst [vmem:[%s3644_s2 + $0x60] sm:$0xff] %v2598_v14 }
 0x655   : > { %v3101_v29 = vpop.f32.mrb[70].mxu1 }
 0x656   : > { %v2551_v30 = vadd.f32 %v3101_v29, %v4696_v35  ;;  %v2545_v31 = vpop.f32.mrb[71].mxu1 }
 0x657   : > { %v2546_v32 = vadd.f32 %v2545_v31, %v4696_v35 }
 0x658   : > { %vm2569_vm5 = vcmp.ge.f32.partialorder %v2551_v30, 0.0  ;;  %v2585_v16 = vmul.f32 0.01, %v2551_v30 }
 0x659   : > { %vm2568_vm6 = vcmp.ge.f32.partialorder %v2546_v32, 0.0  ;;  %v2584_v17 = vmul.f32 0.01, %v2546_v32 }
 0x65a   : > { %v2601_v34 = vsel %vm2569_vm5, %v2551_v30, %v2585_v16 }
 0x65b   : > { %2617 = vst [vmem:[%s3644_s2 + $0x78] sm:$0xff] %v2601_v34  ;;  %v2600_v43 = vsel %vm2568_vm6, %v2546_v32, %v2584_v17 }
 0x65c   : > { %2616 = vst [vmem:[%s3644_s2 + $0x70] sm:$0xff] %v2600_v43 }
 0x65d PF: > { %s17_s9 = sadd.s32 1, %s3481_s9   ;;  %s4780_s28 = sld [smem:[#allocation5_spill]] }
 0x65e   : > { %p14_p9 = scmp.ge.s32.totalorder %s17_s9, 14   ;;  %s4781_s10 = sld [smem:[#allocation6_spill]] }
 0x65f   : > { %s4782_s12 = sld [smem:[#allocation7_spill]]  ;;  %s4783_s8 = sld [smem:[#allocation8_spill]] }
 0x660   : > { %s4784_s24 = smov %s3453_s25  ;;  %s4785_s25 = smov %s3594_s17 }
 0x661   : > { %s4786_s26 = smov %s3469_s29  ;;  %s4787_s27 = smov %s3473_s30 }
 0x662   :  { %16 = sbr.rel (!%p14_p9) target bundleno = 7 (0x7), region = 151 }
 0x664   : > { %s4788_s29 = smov %s4781_s10 }
 0x665   : > { %s4789_s30 = smov %s4782_s12 }

</bundles_post_ra>
